<compile_context>
chip_gen: v5e
topology: v5e:2x2
jax: 0.10.0
libtpu: 0.0.40
codegen_flags: <defaults>
</compile_context>

<pallas_src>
import functools

import jax
import jax.numpy as jnp
from jax.experimental import pallas as pl
from jax.experimental.pallas import tpu as pltpu


def _round_up(x, m):
    return (x + m - 1) // m * m


# ---------------------------------------------------------------------------
# Pallas kernel: Y = relu?(X @ W + b)   (M-tiled, W/b resident)
# ---------------------------------------------------------------------------
def _matmul_bias_kernel(x_ref, w_ref, b_ref, o_ref, *, apply_relu):
    acc = jnp.dot(x_ref[...], w_ref[...], preferred_element_type=jnp.float32)
    acc = acc + b_ref[...]                      # b_ref is (1, N), broadcasts
    if apply_relu:
        acc = jnp.maximum(acc, 0.0)
    o_ref[...] = acc


def matmul_bias(x, w, b, *, apply_relu, tile_m=512):
    """x: (M, K) f32, w: (K, N) f32, b: (1, N) f32 -> (M, N) f32."""
    M, K = x.shape
    Kw, N = w.shape
    assert K == Kw and b.shape == (1, N)

    tm = _round_up(M, 8) if M <= tile_m else tile_m
    Mp = _round_up(M, tm)
    xp = jnp.pad(x, ((0, Mp - M), (0, 0))) if Mp != M else x

    cost = pl.CostEstimate(
        flops=2 * Mp * K * N,
        transcendentals=0,
        bytes_accessed=4 * (Mp * K + K * N + N + Mp * N),
    )
    out = pl.pallas_call(
        functools.partial(_matmul_bias_kernel, apply_relu=apply_relu),
        out_shape=jax.ShapeDtypeStruct((Mp, N), jnp.float32),
        grid=(Mp // tm,),
        in_specs=[
            pl.BlockSpec((tm, K), lambda i: (i, 0)),   # activations: M-tiled
            pl.BlockSpec((K, N), lambda i: (0, 0)),    # weight: resident
            pl.BlockSpec((1, N), lambda i: (0, 0)),    # bias: resident
        ],
        out_specs=pl.BlockSpec((tm, N), lambda i: (i, 0)),
        compiler_params=pltpu.CompilerParams(
            dimension_semantics=("parallel",)),
        cost_estimate=cost,
    )(xp, w, b)
    return out if Mp == M else out[:M]


# ---------------------------------------------------------------------------
# Pallas kernel: fused flatten-MLP   out = relu(x @ W1 + b1) @ W2 + b2
# ---------------------------------------------------------------------------
def _mlp_kernel(x_ref, w1_ref, b1_ref, w2_ref, b2_ref, o_ref):
    h = jnp.dot(x_ref[...], w1_ref[...], preferred_element_type=jnp.float32)
    h = jnp.maximum(h + b1_ref[...], 0.0)
    o_ref[...] = jnp.dot(h, w2_ref[...],
                         preferred_element_type=jnp.float32) + b2_ref[...]


def mlp_fused(x, w1, b1, w2, b2):
    M, K = x.shape
    _, H = w1.shape
    _, N = w2.shape
    Mp = _round_up(M, 8)
    xp = jnp.pad(x, ((0, Mp - M), (0, 0))) if Mp != M else x

    cost = pl.CostEstimate(
        flops=2 * Mp * K * H + 2 * Mp * H * N,
        transcendentals=0,
        bytes_accessed=4 * (Mp * K + K * H + H + H * N + N + Mp * N),
    )
    out = pl.pallas_call(
        _mlp_kernel,
        out_shape=jax.ShapeDtypeStruct((Mp, N), jnp.float32),
        grid=(1,),
        in_specs=[
            pl.BlockSpec((Mp, K), lambda i: (0, 0)),
            pl.BlockSpec((K, H), lambda i: (0, 0)),
            pl.BlockSpec((1, H), lambda i: (0, 0)),
            pl.BlockSpec((H, N), lambda i: (0, 0)),
            pl.BlockSpec((1, N), lambda i: (0, 0)),
        ],
        out_specs=pl.BlockSpec((Mp, N), lambda i: (0, 0)),
        compiler_params=pltpu.CompilerParams(
            dimension_semantics=("arbitrary",)),
        cost_estimate=cost,
    )(xp, w1, b1, w2, b2)
    return out if Mp == M else out[:M]


# ---------------------------------------------------------------------------
# Patch extraction (XLA glue): NHWC -> (B*Ho*Wo, k*k*C), (dy, dx, c) order.
# k*k static strided slices + one concat; no gathers, no 6-D transpose.
# ---------------------------------------------------------------------------
def extract_patches_nhwc(x, k, stride, pad):
    B, H, W, C = x.shape
    xp = jnp.pad(x, ((0, 0), (pad, pad), (pad, pad), (0, 0)))
    Ho = (H + 2 * pad - k) // stride + 1
    Wo = (W + 2 * pad - k) // stride + 1
    taps = []
    for dy in range(k):
        for dx in range(k):
            taps.append(xp[:, dy:dy + stride * (Ho - 1) + 1:stride,
                            dx:dx + stride * (Wo - 1) + 1:stride, :])
    p = jnp.concatenate(taps, axis=-1)            # (B, Ho, Wo, k*k*C)
    return p.reshape(B * Ho * Wo, k * k * C), Ho, Wo


# ---------------------------------------------------------------------------
# Parameters (PyTorch-shaped) + one-time packing
# ---------------------------------------------------------------------------
def init_params(key, num_fruits):
    ks = jax.random.split(key, 10)
    scale = 0.05
    return {
        "c1_w": scale * jax.random.normal(ks[0], (10, 3, 5, 5), jnp.float32),
        "c1_b": scale * jax.random.normal(ks[1], (10,), jnp.float32),
        "c2_w": scale * jax.random.normal(ks[2], (24, 10, 5, 5), jnp.float32),
        "c2_b": scale * jax.random.normal(ks[3], (24,), jnp.float32),
        "c3_w": scale * jax.random.normal(ks[4], (32, 24, 5, 5), jnp.float32),
        "c3_b": scale * jax.random.normal(ks[5], (32,), jnp.float32),
        "l1_w": scale * jax.random.normal(ks[6], (400, 800), jnp.float32),
        "l1_b": scale * jax.random.normal(ks[7], (400,), jnp.float32),
        "l2_w": scale * jax.random.normal(ks[8], (num_fruits, 400), jnp.float32),
        "l2_b": scale * jax.random.normal(ks[9], (num_fruits,), jnp.float32),
    }


def pack_params(p):
    """One-time packing: matmul-ready layouts, done outside the jitted fwd."""
    def conv_w(w):  # (Cout, Cin, k, k) -> (k*k*Cin, Cout), rows in (dy,dx,ci)
        cout, cin, k, _ = w.shape
        return jnp.transpose(w, (2, 3, 1, 0)).reshape(k * k * cin, cout)

    c3_out = p["c3_w"].shape[0]                       # 32
    hw = int(round((p["l1_w"].shape[1] // c3_out) ** 0.5))   # 5
    # PyTorch flattens NCHW (c,h,w); our features are NHWC-flattened (h,w,c):
    # permute fc1 input columns once so the kernel sees a matching layout.
    l1 = p["l1_w"].reshape(p["l1_w"].shape[0], c3_out, hw, hw)     # (400,c,h,w)
    l1 = jnp.transpose(l1, (0, 2, 3, 1)).reshape(p["l1_w"].shape[0], -1)
    return {
        "c1_w": conv_w(p["c1_w"]), "c1_b": p["c1_b"].reshape(1, -1),
        "c2_w": conv_w(p["c2_w"]), "c2_b": p["c2_b"].reshape(1, -1),
        "c3_w": conv_w(p["c3_w"]), "c3_b": p["c3_b"].reshape(1, -1),
        "l1_w": l1.T,              "l1_b": p["l1_b"].reshape(1, -1),
        "l2_w": p["l2_w"].T,       "l2_b": p["l2_b"].reshape(1, -1),
    }


# ---------------------------------------------------------------------------
# FruitClassifier forward (activations NHWC throughout)
# ---------------------------------------------------------------------------
def fruit_classifier_forward(params, x_nchw):
    x = jnp.transpose(x_nchw, (0, 2, 3, 1))            # NCHW -> NHWC, once
    B = x.shape[0]

    # Conv2d(3, 10, 5, 3, 3) + ReLU
    p1, h1, w1 = extract_patches_nhwc(x, 5, 3, 3)
    y = matmul_bias(p1, params["c1_w"], params["c1_b"], apply_relu=True)
    y = y.reshape(B, h1, w1, -1)                       # (B, 34, 34, 10)

    # Conv2d(10, 24, 5, 3, 3) + ReLU
    p2, h2, w2 = extract_patches_nhwc(y, 5, 3, 3)
    y = matmul_bias(p2, params["c2_w"], params["c2_b"], apply_relu=True)
    y = y.reshape(B, h2, w2, -1)                       # (B, 12, 12, 24)

    # Conv2d(24, 32, 5, 3, 3) (no ReLU before flatten, per the module)
    p3, h3, w3 = extract_patches_nhwc(y, 5, 3, 3)
    y = matmul_bias(p3, params["c3_w"], params["c3_b"], apply_relu=False)
    feat = y.reshape(B, -1)                            # (B, 800), free reshape

    # Flatten + Linear(800,400) + ReLU + Linear(400,nf): one fused kernel
    return mlp_fused(feat, params["l1_w"], params["l1_b"],
                     params["l2_w"], params["l2_b"])


if __name__ == "__main__":
    num_fruits = 10
    key = jax.random.PRNGKey(0)
    k_params, k_x = jax.random.split(key)

    raw = init_params(k_params, num_fruits)
    packed = pack_params(raw)          # one-time weight packing (not per call)

    # Input spatial size 100x100 is implied by Linear(800, 400):
    # 100 -> 34 -> 12 -> 5 with (k=5, s=3, p=3), and 32*5*5 = 800.
    x = jax.random.normal(k_x, (2, 3, 100, 100), jnp.float32)

    fwd = jax.jit(fruit_classifier_forward)
    out = jax.block_until_ready(fwd(packed, x))
    assert out.shape == (2, num_fruits), out.shape
    print("KERNEL_OK")
</pallas_src>

<mosaic_0001>
module attributes {stable_mosaic.version = 11 : i64} {
  func.func @_matmul_bias_kernel(%arg0: i32, %arg1: memref<512x75xf32, #tpu.memory_space<vmem>>, %arg2: memref<75x10xf32, #tpu.memory_space<vmem>>, %arg3: memref<1x10xf32, #tpu.memory_space<vmem>>, %arg4: memref<512x10xf32, #tpu.memory_space<vmem>>) attributes {dimension_semantics = [#tpu.dimension_semantics<parallel>], iteration_bounds = array<i64: 5>, scalar_prefetch = 0 : i64, scratch_operands = 0 : i64, tpu.core_type = #tpu.core_type<tc>, window_params = [{transform_indices = @transform_0, window_bounds = array<i64: 512, 75>}, {pipeline_mode = #tpu.pipeline_mode<synchronous>, transform_indices = @transform_1, window_bounds = array<i64: 75, 10>}, {pipeline_mode = #tpu.pipeline_mode<synchronous>, transform_indices = @transform_2, window_bounds = array<i64: 1, 10>}, {transform_indices = @transform_3, window_bounds = array<i64: 512, 10>}]} {
    %c0 = arith.constant 0 : index
    %c0_0 = arith.constant 0 : index
    %0 = vector.load %arg1[%c0, %c0_0] : memref<512x75xf32, #tpu.memory_space<vmem>>, vector<512x75xf32>
    %c0_1 = arith.constant 0 : index
    %c0_2 = arith.constant 0 : index
    %1 = vector.load %arg2[%c0_1, %c0_2] : memref<75x10xf32, #tpu.memory_space<vmem>>, vector<75x10xf32>
    %cst = arith.constant dense<0.000000e+00> : vector<512x10xf32>
    %2 = tpu.matmul %0, %1, %cst {dimension_numbers = #tpu.dot_dimension_numbers<[1], [0], [0], [1], [0, 0, 1, 1], [], []>} : vector<512x75xf32>, vector<75x10xf32>, vector<512x10xf32> -> vector<512x10xf32>
    %c0_3 = arith.constant 0 : index
    %c0_4 = arith.constant 0 : index
    %3 = vector.load %arg3[%c0_3, %c0_4] : memref<1x10xf32, #tpu.memory_space<vmem>>, vector<1x10xf32>
    %4 = vector.broadcast %3 : vector<1x10xf32> to vector<512x10xf32>
    %5 = arith.addf %2, %4 : vector<512x10xf32>
    %cst_5 = arith.constant 0.000000e+00 : f32
    %6 = vector.broadcast %cst_5 : f32 to vector<512x10xf32>
    %7 = arith.maximumf %5, %6 : vector<512x10xf32>
    %c0_6 = arith.constant 0 : index
    %c0_7 = arith.constant 0 : index
    %8 = vector.load %arg4[%c0_6, %c0_7] : memref<512x10xf32, #tpu.memory_space<vmem>>, vector<512x10xf32>
    tpu.vector_store %arg4[%c0_6, %c0_7], %7 {strides = array<i32>} : memref<512x10xf32, #tpu.memory_space<vmem>>, vector<512x10xf32>,
    return
  }
  func.func @transform_0(%arg0: i32) -> (i32, i32) {
    %c0_i32 = arith.constant 0 : i32
    %c0_i32_0 = arith.constant 0 : i32
    return %arg0, %c0_i32 : i32, i32
  }
  func.func @transform_1(%arg0: i32) -> (i32, i32) {
    %c0_i32 = arith.constant 0 : i32
    %c0_i32_0 = arith.constant 0 : i32
    %c0_i32_1 = arith.constant 0 : i32
    return %c0_i32, %c0_i32_0 : i32, i32
  }
  func.func @transform_2(%arg0: i32) -> (i32, i32) {
    %c0_i32 = arith.constant 0 : i32
    %c0_i32_0 = arith.constant 0 : i32
    %c0_i32_1 = arith.constant 0 : i32
    return %c0_i32, %c0_i32_0 : i32, i32
  }
  func.func @transform_3(%arg0: i32) -> (i32, i32) {
    %c0_i32 = arith.constant 0 : i32
    %c0_i32_0 = arith.constant 0 : i32
    return %arg0, %c0_i32 : i32, i32
  }
}

module attributes {stable_mosaic.version = 11 : i64} {
  func.func @_matmul_bias_kernel(%arg0: i32, %arg1: memref<288x250xf32, #tpu.memory_space<vmem>>, %arg2: memref<250x24xf32, #tpu.memory_space<vmem>>, %arg3: memref<1x24xf32, #tpu.memory_space<vmem>>, %arg4: memref<288x24xf32, #tpu.memory_space<vmem>>) attributes {dimension_semantics = [#tpu.dimension_semantics<parallel>], iteration_bounds = array<i64: 1>, scalar_prefetch = 0 : i64, scratch_operands = 0 : i64, tpu.core_type = #tpu.core_type<tc>, window_params = [{transform_indices = @transform_0, window_bounds = array<i64: 288, 250>}, {pipeline_mode = #tpu.pipeline_mode<synchronous>, transform_indices = @transform_1, window_bounds = array<i64: 250, 24>}, {pipeline_mode = #tpu.pipeline_mode<synchronous>, transform_indices = @transform_2, window_bounds = array<i64: 1, 24>}, {transform_indices = @transform_3, window_bounds = array<i64: 288, 24>}]} {
    %c0 = arith.constant 0 : index
    %c0_0 = arith.constant 0 : index
    %0 = vector.load %arg1[%c0, %c0_0] : memref<288x250xf32, #tpu.memory_space<vmem>>, vector<288x250xf32>
    %c0_1 = arith.constant 0 : index
    %c0_2 = arith.constant 0 : index
    %1 = vector.load %arg2[%c0_1, %c0_2] : memref<250x24xf32, #tpu.memory_space<vmem>>, vector<250x24xf32>
    %cst = arith.constant dense<0.000000e+00> : vector<288x24xf32>
    %2 = tpu.matmul %0, %1, %cst {dimension_numbers = #tpu.dot_dimension_numbers<[1], [0], [0], [1], [0, 0, 1, 1], [], []>} : vector<288x250xf32>, vector<250x24xf32>, vector<288x24xf32> -> vector<288x24xf32>
    %c0_3 = arith.constant 0 : index
    %c0_4 = arith.constant 0 : index
    %3 = vector.load %arg3[%c0_3, %c0_4] : memref<1x24xf32, #tpu.memory_space<vmem>>, vector<1x24xf32>
    %4 = vector.broadcast %3 : vector<1x24xf32> to vector<288x24xf32>
    %5 = arith.addf %2, %4 : vector<288x24xf32>
    %cst_5 = arith.constant 0.000000e+00 : f32
    %6 = vector.broadcast %cst_5 : f32 to vector<288x24xf32>
    %7 = arith.maximumf %5, %6 : vector<288x24xf32>
    %c0_6 = arith.constant 0 : index
    %c0_7 = arith.constant 0 : index
    %8 = vector.load %arg4[%c0_6, %c0_7] : memref<288x24xf32, #tpu.memory_space<vmem>>, vector<288x24xf32>
    tpu.vector_store %arg4[%c0_6, %c0_7], %7 {strides = array<i32>} : memref<288x24xf32, #tpu.memory_space<vmem>>, vector<288x24xf32>,
    return
  }
  func.func @transform_0(%arg0: i32) -> (i32, i32) {
    %c0_i32 = arith.constant 0 : i32
    %c0_i32_0 = arith.constant 0 : i32
    return %arg0, %c0_i32 : i32, i32
  }
  func.func @transform_1(%arg0: i32) -> (i32, i32) {
    %c0_i32 = arith.constant 0 : i32
    %c0_i32_0 = arith.constant 0 : i32
    %c0_i32_1 = arith.constant 0 : i32
    return %c0_i32, %c0_i32_0 : i32, i32
  }
  func.func @transform_2(%arg0: i32) -> (i32, i32) {
    %c0_i32 = arith.constant 0 : i32
    %c0_i32_0 = arith.constant 0 : i32
    %c0_i32_1 = arith.constant 0 : i32
    return %c0_i32, %c0_i32_0 : i32, i32
  }
  func.func @transform_3(%arg0: i32) -> (i32, i32) {
    %c0_i32 = arith.constant 0 : i32
    %c0_i32_0 = arith.constant 0 : i32
    return %arg0, %c0_i32 : i32, i32
  }
}

module attributes {stable_mosaic.version = 11 : i64} {
  func.func @_matmul_bias_kernel(%arg0: i32, %arg1: memref<56x600xf32, #tpu.memory_space<vmem>>, %arg2: memref<600x32xf32, #tpu.memory_space<vmem>>, %arg3: memref<1x32xf32, #tpu.memory_space<vmem>>, %arg4: memref<56x32xf32, #tpu.memory_space<vmem>>) attributes {dimension_semantics = [#tpu.dimension_semantics<parallel>], iteration_bounds = array<i64: 1>, scalar_prefetch = 0 : i64, scratch_operands = 0 : i64, tpu.core_type = #tpu.core_type<tc>, window_params = [{transform_indices = @transform_0, window_bounds = array<i64: 56, 600>}, {pipeline_mode = #tpu.pipeline_mode<synchronous>, transform_indices = @transform_1, window_bounds = array<i64: 600, 32>}, {pipeline_mode = #tpu.pipeline_mode<synchronous>, transform_indices = @transform_2, window_bounds = array<i64: 1, 32>}, {transform_indices = @transform_3, window_bounds = array<i64: 56, 32>}]} {
    %c0 = arith.constant 0 : index
    %c0_0 = arith.constant 0 : index
    %0 = vector.load %arg1[%c0, %c0_0] : memref<56x600xf32, #tpu.memory_space<vmem>>, vector<56x600xf32>
    %c0_1 = arith.constant 0 : index
    %c0_2 = arith.constant 0 : index
    %1 = vector.load %arg2[%c0_1, %c0_2] : memref<600x32xf32, #tpu.memory_space<vmem>>, vector<600x32xf32>
    %cst = arith.constant dense<0.000000e+00> : vector<56x32xf32>
    %2 = tpu.matmul %0, %1, %cst {dimension_numbers = #tpu.dot_dimension_numbers<[1], [0], [0], [1], [0, 0, 1, 1], [], []>} : vector<56x600xf32>, vector<600x32xf32>, vector<56x32xf32> -> vector<56x32xf32>
    %c0_3 = arith.constant 0 : index
    %c0_4 = arith.constant 0 : index
    %3 = vector.load %arg3[%c0_3, %c0_4] : memref<1x32xf32, #tpu.memory_space<vmem>>, vector<1x32xf32>
    %4 = vector.broadcast %3 : vector<1x32xf32> to vector<56x32xf32>
    %5 = arith.addf %2, %4 : vector<56x32xf32>
    %c0_5 = arith.constant 0 : index
    %c0_6 = arith.constant 0 : index
    %6 = vector.load %arg4[%c0_5, %c0_6] : memref<56x32xf32, #tpu.memory_space<vmem>>, vector<56x32xf32>
    tpu.vector_store %arg4[%c0_5, %c0_6], %5 {strides = array<i32>} : memref<56x32xf32, #tpu.memory_space<vmem>>, vector<56x32xf32>,
    return
  }
  func.func @transform_0(%arg0: i32) -> (i32, i32) {
    %c0_i32 = arith.constant 0 : i32
    %c0_i32_0 = arith.constant 0 : i32
    return %arg0, %c0_i32 : i32, i32
  }
  func.func @transform_1(%arg0: i32) -> (i32, i32) {
    %c0_i32 = arith.constant 0 : i32
    %c0_i32_0 = arith.constant 0 : i32
    %c0_i32_1 = arith.constant 0 : i32
    return %c0_i32, %c0_i32_0 : i32, i32
  }
  func.func @transform_2(%arg0: i32) -> (i32, i32) {
    %c0_i32 = arith.constant 0 : i32
    %c0_i32_0 = arith.constant 0 : i32
    %c0_i32_1 = arith.constant 0 : i32
    return %c0_i32, %c0_i32_0 : i32, i32
  }
  func.func @transform_3(%arg0: i32) -> (i32, i32) {
    %c0_i32 = arith.constant 0 : i32
    %c0_i32_0 = arith.constant 0 : i32
    return %arg0, %c0_i32 : i32, i32
  }
}

module attributes {stable_mosaic.version = 11 : i64} {
  func.func @_mlp_kernel(%arg0: i32, %arg1: memref<8x800xf32, #tpu.memory_space<vmem>>, %arg2: memref<800x400xf32, #tpu.memory_space<vmem>>, %arg3: memref<1x400xf32, #tpu.memory_space<vmem>>, %arg4: memref<400x10xf32, #tpu.memory_space<vmem>>, %arg5: memref<1x10xf32, #tpu.memory_space<vmem>>, %arg6: memref<8x10xf32, #tpu.memory_space<vmem>>) attributes {dimension_semantics = [#tpu.dimension_semantics<arbitrary>], iteration_bounds = array<i64: 1>, scalar_prefetch = 0 : i64, scratch_operands = 0 : i64, tpu.core_type = #tpu.core_type<tc>, window_params = [{pipeline_mode = #tpu.pipeline_mode<synchronous>, transform_indices = @transform_0, window_bounds = array<i64: 8, 800>}, {pipeline_mode = #tpu.pipeline_mode<synchronous>, transform_indices = @transform_1, window_bounds = array<i64: 800, 400>}, {pipeline_mode = #tpu.pipeline_mode<synchronous>, transform_indices = @transform_2, window_bounds = array<i64: 1, 400>}, {pipeline_mode = #tpu.pipeline_mode<synchronous>, transform_indices = @transform_3, window_bounds = array<i64: 400, 10>}, {pipeline_mode = #tpu.pipeline_mode<synchronous>, transform_indices = @transform_4, window_bounds = array<i64: 1, 10>}, {pipeline_mode = #tpu.pipeline_mode<synchronous>, transform_indices = @transform_5, window_bounds = array<i64: 8, 10>}]} {
    %c0 = arith.constant 0 : index
    %c0_0 = arith.constant 0 : index
    %0 = vector.load %arg1[%c0, %c0_0] : memref<8x800xf32, #tpu.memory_space<vmem>>, vector<8x800xf32>
    %c0_1 = arith.constant 0 : index
    %c0_2 = arith.constant 0 : index
    %1 = vector.load %arg2[%c0_1, %c0_2] : memref<800x400xf32, #tpu.memory_space<vmem>>, vector<800x400xf32>
    %cst = arith.constant dense<0.000000e+00> : vector<8x400xf32>
    %2 = tpu.matmul %0, %1, %cst {dimension_numbers = #tpu.dot_dimension_numbers<[1], [0], [0], [1], [0, 0, 1, 1], [], []>} : vector<8x800xf32>, vector<800x400xf32>, vector<8x400xf32> -> vector<8x400xf32>
    %c0_3 = arith.constant 0 : index
    %c0_4 = arith.constant 0 : index
    %3 = vector.load %arg3[%c0_3, %c0_4] : memref<1x400xf32, #tpu.memory_space<vmem>>, vector<1x400xf32>
    %4 = vector.broadcast %3 : vector<1x400xf32> to vector<8x400xf32>
    %5 = arith.addf %2, %4 : vector<8x400xf32>
    %cst_5 = arith.constant 0.000000e+00 : f32
    %6 = vector.broadcast %cst_5 : f32 to vector<8x400xf32>
    %7 = arith.maximumf %5, %6 : vector<8x400xf32>
    %c0_6 = arith.constant 0 : index
    %c0_7 = arith.constant 0 : index
    %8 = vector.load %arg4[%c0_6, %c0_7] : memref<400x10xf32, #tpu.memory_space<vmem>>, vector<400x10xf32>
    %cst_8 = arith.constant dense<0.000000e+00> : vector<8x10xf32>
    %9 = tpu.matmul %7, %8, %cst_8 {dimension_numbers = #tpu.dot_dimension_numbers<[1], [0], [0], [1], [0, 0, 1, 1], [], []>} : vector<8x400xf32>, vector<400x10xf32>, vector<8x10xf32> -> vector<8x10xf32>
    %c0_9 = arith.constant 0 : index
    %c0_10 = arith.constant 0 : index
    %10 = vector.load %arg5[%c0_9, %c0_10] : memref<1x10xf32, #tpu.memory_space<vmem>>, vector<1x10xf32>
    %11 = vector.broadcast %10 : vector<1x10xf32> to vector<8x10xf32>
    %12 = arith.addf %9, %11 : vector<8x10xf32>
    %c0_11 = arith.constant 0 : index
    %c0_12 = arith.constant 0 : index
    %13 = vector.load %arg6[%c0_11, %c0_12] : memref<8x10xf32, #tpu.memory_space<vmem>>, vector<8x10xf32>
    tpu.vector_store %arg6[%c0_11, %c0_12], %12 {strides = array<i32>} : memref<8x10xf32, #tpu.memory_space<vmem>>, vector<8x10xf32>,
    return
  }
  func.func @transform_0(%arg0: i32) -> (i32, i32) {
    %c0_i32 = arith.constant 0 : i32
    %c0_i32_0 = arith.constant 0 : i32
    %c0_i32_1 = arith.constant 0 : i32
    return %c0_i32, %c0_i32_0 : i32, i32
  }
  func.func @transform_1(%arg0: i32) -> (i32, i32) {
    %c0_i32 = arith.constant 0 : i32
    %c0_i32_0 = arith.constant 0 : i32
    %c0_i32_1 = arith.constant 0 : i32
    return %c0_i32, %c0_i32_0 : i32, i32
  }
  func.func @transform_2(%arg0: i32) -> (i32, i32) {
    %c0_i32 = arith.constant 0 : i32
    %c0_i32_0 = arith.constant 0 : i32
    %c0_i32_1 = arith.constant 0 : i32
    return %c0_i32, %c0_i32_0 : i32, i32
  }
  func.func @transform_3(%arg0: i32) -> (i32, i32) {
    %c0_i32 = arith.constant 0 : i32
    %c0_i32_0 = arith.constant 0 : i32
    %c0_i32_1 = arith.constant 0 : i32
    return %c0_i32, %c0_i32_0 : i32, i32
  }
  func.func @transform_4(%arg0: i32) -> (i32, i32) {
    %c0_i32 = arith.constant 0 : i32
    %c0_i32_0 = arith.constant 0 : i32
    %c0_i32_1 = arith.constant 0 : i32
    return %c0_i32, %c0_i32_0 : i32, i32
  }
  func.func @transform_5(%arg0: i32) -> (i32, i32) {
    %c0_i32 = arith.constant 0 : i32
    %c0_i32_0 = arith.constant 0 : i32
    %c0_i32_1 = arith.constant 0 : i32
    return %c0_i32, %c0_i32_0 : i32, i32
  }
}

</mosaic_0001>

<bundles_post_ra>
// kernel: fruit_classifier_forward.4
= control target key start
LH: loop header
LB: loop body
LE: loop exit
PB: predicated region body
PF: predicated region fallthrough
CT: control target
= control target key end

     0   :  { %s986_s12 = smov 0   ;;  %s1369_s0 = inlined_call_operand.vmem [shape: f32[2560,75], index: 0, kind: input, shape index: {}]   ;;  %s1370_s1 = inlined_call_operand.vmem [shape: f32[75,10], index: 1, kind: input, shape index: {}]   ;;  %s1371_s2 = inlined_call_operand.vmem [shape: f32[1,10], index: 2, kind: input, shape index: {}]   ;;  %s1372_s3 = inlined_call_operand.vmem [shape: f32[2560,10], index: 3, kind: output, shape index: {}]  }
   0x1 LB: > { %s843_s13 = sadd.s32 4294967295, %s964_s12   ;;  %p847_p0 = scmp.ge.s32.totalorder %s964_s12, 1  ;;  %s964_s12 = sphi %s986_s12, %s13_s12  }
   0x2   : > { %p138_p1 = scmp.lt.s32.totalorder %s964_s12, 6 }
   0x4   : > { %p139_p2 = pnand %p847_p0, %p138_p1 }
   0x5   : > { %s848_s18 = sshll.u32 (!%p139_p2), %s843_s13, 6 }
   0x6   : > { %142 = sbr.rel (%p139_p2) target bundleno = 289 (0x121), region = 32  ;;  %p163_p3 = scmp.lt.s32.totalorder (!%p139_p2), %s848_s18, 319 }
   0xb   : > { %v247_v0 = vld [vmem:[%s1370_s1 + $0x48] sm:$0x7]  ;;  %vm445_vm0 = vcmask 1042432   ;;  %v246_v1 = vld [vmem:[%s1370_s1 + $0x40] sm:$0xff]  ;;  %v245_v2 = vld [vmem:[%s1370_s1 + $0x38] sm:$0xff]  ;;  %s1374_s18 = smov (!%p163_p3, %s848_s18), 319 }
   0xc   : > { %920 = vmatpush.msk.msra.mxu2 %vm445_vm0, %v247_v0  ;;  %921 = vmatpush.msk.msra.mxu3 %vm445_vm0, %v247_v0  ;;  %v244_v3 = vld [vmem:[%s1370_s1 + $0x30] sm:$0xff]  ;;  %v243_v4 = vld [vmem:[%s1370_s1 + $0x28] sm:$0xff]  ;;  %v242_v5 = vld [vmem:[%s1370_s1 + $0x20] sm:$0xff]  ;;  %s849_s29 = sshll.u32 %s1374_s18, 3  ;;  %vm252_vm1 = vcmask 613376   ;;  %vm722_vm2 = vcmask 80896  }
   0xd   : > { %852 = vmatpush.msk.msra.mxu0 %vm445_vm0, %v247_v0  ;;  %919 = vmatpush.msk.msra.mxu1 %vm445_vm0, %v247_v0  ;;  %v241_v6 = vld [vmem:[%s1370_s1 + $0x18] sm:$0xff]  ;;  %v240_v7 = vld [vmem:[%s1370_s1 + $0x10] sm:$0xff]  ;;  %v239_v8 = vld [vmem:[%s1370_s1 + $0x8] sm:$0xff]  ;;  %s1029_s9 = scalar_lea.vmem %s1369_s0, %s849_s29  ;;  %s1174_s17 = scalar_lea.vmem %s1372_s3, %s849_s29 }
   0xe   : > { %923 = vmatpush.msra.mxu2 %v246_v1  ;;  %924 = vmatpush.msra.mxu3 %v246_v1  ;;  %v238_v9 = vld [vmem:[%s1370_s1] sm:$0xff]  ;;  %v207_v14 = vld [vmem:[%s1029_s9 + $0x108] sm:$0xff]  ;;  %v208_v18 = vld [vmem:[%s1029_s9 + $0x110] sm:$0xff] }
   0xf   : > { %456 = vmatpush.msra.mxu0 %v246_v1  ;;  %922 = vmatpush.msra.mxu1 %v246_v1  ;;  %v206_v10 = vld [vmem:[%s1029_s9 + $0x100] sm:$0xff]  ;;  %v223_v15 = vld [vmem:[%s1029_s9 + $0x188] sm:$0xff]  ;;  %v224_v19 = vld [vmem:[%s1029_s9 + $0x190] sm:$0xff] }
  0x10   : > { %926 = vmatpush.msra.mxu2 %v245_v2  ;;  %927 = vmatpush.msra.mxu3 %v245_v2  ;;  %v222_v11 = vld [vmem:[%s1029_s9 + $0x180] sm:$0xff]  ;;  %v175_v16 = vld [vmem:[%s1029_s9 + $0x8] sm:$0xff]  ;;  %v176_v20 = vld [vmem:[%s1029_s9 + $0x10] sm:$0xff] }
  0x11   : > { %457 = vmatpush.msra.mxu0 %v245_v2  ;;  %925 = vmatpush.msra.mxu1 %v245_v2  ;;  %v174_v12 = vld [vmem:[%s1029_s9] sm:$0xff]  ;;  %v191_v17 = vld [vmem:[%s1029_s9 + $0x88] sm:$0xff]  ;;  %v192_v21 = vld [vmem:[%s1029_s9 + $0x90] sm:$0xff] }
  0x12   : > { %929 = vmatpush.msra.mxu2 %v244_v3  ;;  %930 = vmatpush.msra.mxu3 %v244_v3  ;;  %v190_v13 = vld [vmem:[%s1029_s9 + $0x80] sm:$0xff]  ;;  %v209_v22 = vld [vmem:[%s1029_s9 + $0x118] sm:$0xff]  ;;  %v211_v30 = vld [vmem:[%s1029_s9 + $0x128] sm:$0xff] }
  0x13   : > { %458 = vmatpush.msra.mxu0 %v244_v3  ;;  %928 = vmatpush.msra.mxu1 %v244_v3  ;;  %v225_v23 = vld [vmem:[%s1029_s9 + $0x198] sm:$0xff]  ;;  %v210_v26 = vld [vmem:[%s1029_s9 + $0x120] sm:$0xff]  ;;  %v227_v31 = vld [vmem:[%s1029_s9 + $0x1a8] sm:$0xff] }
  0x14   : > { %932 = vmatpush.msra.mxu2 %v243_v4  ;;  %933 = vmatpush.msra.mxu3 %v243_v4  ;;  %v177_v24 = vld [vmem:[%s1029_s9 + $0x18] sm:$0xff]  ;;  %v226_v27 = vld [vmem:[%s1029_s9 + $0x1a0] sm:$0xff]  ;;  %v179_v32 = vld [vmem:[%s1029_s9 + $0x28] sm:$0xff] }
  0x15   : > { %459 = vmatpush.msra.mxu0 %v243_v4  ;;  %931 = vmatpush.msra.mxu1 %v243_v4  ;;  %v193_v25 = vld [vmem:[%s1029_s9 + $0x98] sm:$0xff]  ;;  %v178_v28 = vld [vmem:[%s1029_s9 + $0x20] sm:$0xff]  ;;  %v195_v33 = vld [vmem:[%s1029_s9 + $0xa8] sm:$0xff] }
  0x16   : > { %935 = vmatpush.msra.mxu2 %v242_v5  ;;  %936 = vmatpush.msra.mxu3 %v242_v5  ;;  %v194_v29 = vld [vmem:[%s1029_s9 + $0xa0] sm:$0xff]  ;;  %v212_v34 = vld [vmem:[%s1029_s9 + $0x130] sm:$0xff]  ;;  %v213_v38 = vld [vmem:[%s1029_s9 + $0x138] sm:$0xff] }
  0x17   : > { %460 = vmatpush.msra.mxu0 %v242_v5  ;;  %934 = vmatpush.msra.mxu1 %v242_v5  ;;  %v228_v35 = vld [vmem:[%s1029_s9 + $0x1b0] sm:$0xff]  ;;  %v229_v39 = vld [vmem:[%s1029_s9 + $0x1b8] sm:$0xff]  ;;  %v214_v42 = vld [vmem:[%s1029_s9 + $0x140] sm:$0xff] }
  0x18   : > { %938 = vmatpush.msra.mxu2 %v241_v6  ;;  %939 = vmatpush.msra.mxu3 %v241_v6  ;;  %v180_v36 = vld [vmem:[%s1029_s9 + $0x30] sm:$0xff]  ;;  %v181_v40 = vld [vmem:[%s1029_s9 + $0x38] sm:$0xff]  ;;  %v230_v43 = vld [vmem:[%s1029_s9 + $0x1c0] sm:$0xff] }
  0x19   : > { %461 = vmatpush.msra.mxu0 %v241_v6  ;;  %937 = vmatpush.msra.mxu1 %v241_v6  ;;  %v196_v37 = vld [vmem:[%s1029_s9 + $0xb0] sm:$0xff]  ;;  %v197_v41 = vld [vmem:[%s1029_s9 + $0xb8] sm:$0xff]  ;;  %v182_v44 = vld [vmem:[%s1029_s9 + $0x40] sm:$0xff] }
  0x1a   : > { %941 = vmatpush.msra.mxu2 %v240_v7  ;;  %942 = vmatpush.msra.mxu3 %v240_v7  ;;  %v198_v45 = vld [vmem:[%s1029_s9 + $0xc0] sm:$0xff]  ;;  %v215_v46 = vld [vmem:[%s1029_s9 + $0x148] sm:$0xff]  ;;  %v216_v50 = vld [vmem:[%s1029_s9 + $0x150] sm:$0xff] }
  0x1b   : > { %462 = vmatpush.msra.mxu0 %v240_v7  ;;  %940 = vmatpush.msra.mxu1 %v240_v7  ;;  %v231_v47 = vld [vmem:[%s1029_s9 + $0x1c8] sm:$0xff]  ;;  %v232_v51 = vld [vmem:[%s1029_s9 + $0x1d0] sm:$0xff]  ;;  %v217_v54 = vld [vmem:[%s1029_s9 + $0x158] sm:$0xff] }
  0x1c   : > { %944 = vmatpush.msra.mxu2 %v239_v8  ;;  %945 = vmatpush.msra.mxu3 %v239_v8  ;;  %v183_v48 = vld [vmem:[%s1029_s9 + $0x48] sm:$0xff]  ;;  %v184_v52 = vld [vmem:[%s1029_s9 + $0x50] sm:$0xff]  ;;  %v233_v55 = vld [vmem:[%s1029_s9 + $0x1d8] sm:$0xff] }
  0x1d   : > { %463 = vmatpush.msra.mxu0 %v239_v8  ;;  %943 = vmatpush.msra.mxu1 %v239_v8  ;;  %v199_v49 = vld [vmem:[%s1029_s9 + $0xc8] sm:$0xff]  ;;  %v200_v53 = vld [vmem:[%s1029_s9 + $0xd0] sm:$0xff]  ;;  %v185_v56 = vld [vmem:[%s1029_s9 + $0x58] sm:$0xff] }
  0x1e   : > { %947 = vmatpush.msra.mxu2 %v238_v9  ;;  %948 = vmatpush.msra.mxu3 %v238_v9  ;;  %v201_v57 = vld [vmem:[%s1029_s9 + $0xd8] sm:$0xff]  ;;  %v218_v58 = vld [vmem:[%s1029_s9 + $0x160] sm:$0xff]  ;;  %v219_v62 = vld [vmem:[%s1029_s9 + $0x168] sm:$0xff] }
  0x1f   : > { %885 = vmatmul.msk.f32.vlgmr.msra.gmra.mxu2 %vm252_vm1, %v206_v10  ;;  %901 = vmatmul.msk.f32.vlgmr.msra.gmra.mxu3 %vm252_vm1, %v222_v11  ;;  %v234_v59 = vld [vmem:[%s1029_s9 + $0x1e0] sm:$0xff]  ;;  %v235_v63 = vld [vmem:[%s1029_s9 + $0x1e8] sm:$0xff]  ;;  %v220_v2 = vld [vmem:[%s1029_s9 + $0x170] sm:$0xff] }
  0x20   : > { %464 = vmatpush.msra.mxu0 %v238_v9  ;;  %946 = vmatpush.msra.mxu1 %v238_v9  ;;  %v186_v60 = vld [vmem:[%s1029_s9 + $0x60] sm:$0xff]  ;;  %v187_v0 = vld [vmem:[%s1029_s9 + $0x68] sm:$0xff]  ;;  %v236_v3 = vld [vmem:[%s1029_s9 + $0x1f0] sm:$0xff] }
  0x21   : > { %853 = vmatmul.msk.f32.vlgmr.msra.gmra.mxu0 %vm252_vm1, %v174_v12  ;;  %869 = vmatmul.msk.f32.vlgmr.msra.gmra.mxu1 %vm252_vm1, %v190_v13  ;;  %v202_v61 = vld [vmem:[%s1029_s9 + $0xe0] sm:$0xff]  ;;  %v203_v1 = vld [vmem:[%s1029_s9 + $0xe8] sm:$0xff]  ;;  %v188_v4 = vld [vmem:[%s1029_s9 + $0x70] sm:$0xff] }
  0x22   : > { %v204_v5 = vld [vmem:[%s1029_s9 + $0xf0] sm:$0xff]  ;;  %v221_v6 = vld [vmem:[%s1029_s9 + $0x178] sm:$0xff]  ;;  %v1165_v10 = vld [vmem:[%s1371_s2] ss:$0 sm:$0xff] }
  0x23   : > { %v237_v7 = vld [vmem:[%s1029_s9 + $0x1f8] sm:$0xff] }
  0x24   : > { %v189_v8 = vld [vmem:[%s1029_s9 + $0x78] sm:$0xff] }
  0x25   : > { %v205_v9 = vld [vmem:[%s1029_s9 + $0xf8] sm:$0xff] }
  0x27   : > { %886 = vmatmul.msk.f32.gmra.mxu2 %vm252_vm1, %v207_v14  ;;  %902 = vmatmul.msk.f32.gmra.mxu3 %vm252_vm1, %v223_v15 }
  0x29   : > { %854 = vmatmul.msk.f32.gmra.mxu0 %vm252_vm1, %v175_v16  ;;  %870 = vmatmul.msk.f32.gmra.mxu1 %vm252_vm1, %v191_v17 }
  0x2f   : > { %887 = vmatmul.msk.f32.gmra.mxu2 %vm252_vm1, %v208_v18  ;;  %903 = vmatmul.msk.f32.gmra.mxu3 %vm252_vm1, %v224_v19 }
  0x31   : > { %855 = vmatmul.msk.f32.gmra.mxu0 %vm252_vm1, %v176_v20  ;;  %871 = vmatmul.msk.f32.gmra.mxu1 %vm252_vm1, %v192_v21 }
  0x37   : > { %888 = vmatmul.msk.f32.gmra.mxu2 %vm252_vm1, %v209_v22  ;;  %904 = vmatmul.msk.f32.gmra.mxu3 %vm252_vm1, %v225_v23 }
  0x39   : > { %856 = vmatmul.msk.f32.gmra.mxu0 %vm252_vm1, %v177_v24  ;;  %872 = vmatmul.msk.f32.gmra.mxu1 %vm252_vm1, %v193_v25 }
  0x3f   : > { %889 = vmatmul.msk.f32.gmra.mxu2 %vm252_vm1, %v210_v26  ;;  %905 = vmatmul.msk.f32.gmra.mxu3 %vm252_vm1, %v226_v27 }
  0x41   : > { %857 = vmatmul.msk.f32.gmra.mxu0 %vm252_vm1, %v178_v28  ;;  %873 = vmatmul.msk.f32.gmra.mxu1 %vm252_vm1, %v194_v29 }
  0x47   : > { %890 = vmatmul.msk.f32.gmra.mxu2 %vm252_vm1, %v211_v30  ;;  %906 = vmatmul.msk.f32.gmra.mxu3 %vm252_vm1, %v227_v31 }
  0x49   : > { %858 = vmatmul.msk.f32.gmra.mxu0 %vm252_vm1, %v179_v32  ;;  %874 = vmatmul.msk.f32.gmra.mxu1 %vm252_vm1, %v195_v33 }
  0x4f   : > { %891 = vmatmul.msk.f32.gmra.mxu2 %vm252_vm1, %v212_v34  ;;  %907 = vmatmul.msk.f32.gmra.mxu3 %vm252_vm1, %v228_v35 }
  0x51   : > { %859 = vmatmul.msk.f32.gmra.mxu0 %vm252_vm1, %v180_v36  ;;  %875 = vmatmul.msk.f32.gmra.mxu1 %vm252_vm1, %v196_v37 }
  0x57   : > { %892 = vmatmul.msk.f32.gmra.mxu2 %vm252_vm1, %v213_v38  ;;  %908 = vmatmul.msk.f32.gmra.mxu3 %vm252_vm1, %v229_v39 }
  0x59   : > { %860 = vmatmul.msk.f32.gmra.mxu0 %vm252_vm1, %v181_v40  ;;  %876 = vmatmul.msk.f32.gmra.mxu1 %vm252_vm1, %v197_v41 }
  0x5f   : > { %893 = vmatmul.msk.f32.gmra.mxu2 %vm252_vm1, %v214_v42  ;;  %909 = vmatmul.msk.f32.gmra.mxu3 %vm252_vm1, %v230_v43 }
  0x61   : > { %861 = vmatmul.msk.f32.gmra.mxu0 %vm252_vm1, %v182_v44  ;;  %877 = vmatmul.msk.f32.gmra.mxu1 %vm252_vm1, %v198_v45 }
  0x67   : > { %894 = vmatmul.msk.f32.gmra.mxu2 %vm252_vm1, %v215_v46  ;;  %910 = vmatmul.msk.f32.gmra.mxu3 %vm252_vm1, %v231_v47 }
  0x69   : > { %862 = vmatmul.msk.f32.gmra.mxu0 %vm252_vm1, %v183_v48  ;;  %878 = vmatmul.msk.f32.gmra.mxu1 %vm252_vm1, %v199_v49 }
  0x6f   : > { %895 = vmatmul.msk.f32.gmra.mxu2 %vm252_vm1, %v216_v50  ;;  %911 = vmatmul.msk.f32.gmra.mxu3 %vm252_vm1, %v232_v51 }
  0x71   : > { %863 = vmatmul.msk.f32.gmra.mxu0 %vm252_vm1, %v184_v52  ;;  %879 = vmatmul.msk.f32.gmra.mxu1 %vm252_vm1, %v200_v53 }
  0x77   : > { %896 = vmatmul.msk.f32.gmra.mxu2 %vm252_vm1, %v217_v54  ;;  %912 = vmatmul.msk.f32.gmra.mxu3 %vm252_vm1, %v233_v55 }
  0x79   : > { %864 = vmatmul.msk.f32.gmra.mxu0 %vm252_vm1, %v185_v56  ;;  %880 = vmatmul.msk.f32.gmra.mxu1 %vm252_vm1, %v201_v57 }
  0x7f   : > { %897 = vmatmul.msk.f32.gmra.mxu2 %vm252_vm1, %v218_v58  ;;  %913 = vmatmul.msk.f32.gmra.mxu3 %vm252_vm1, %v234_v59 }
  0x81   : > { %865 = vmatmul.msk.f32.gmra.mxu0 %vm252_vm1, %v186_v60  ;;  %881 = vmatmul.msk.f32.gmra.mxu1 %vm252_vm1, %v202_v61 }
  0x87   : > { %898 = vmatmul.msk.f32.gmra.mxu2 %vm252_vm1, %v219_v62  ;;  %914 = vmatmul.msk.f32.gmra.mxu3 %vm252_vm1, %v235_v63 }
  0x89   : > { %866 = vmatmul.msk.f32.gmra.mxu0 %vm252_vm1, %v187_v0  ;;  %882 = vmatmul.msk.f32.gmra.mxu1 %vm252_vm1, %v203_v1 }
  0x8f   : > { %899 = vmatmul.msk.f32.gmra.mxu2 %vm252_vm1, %v220_v2  ;;  %915 = vmatmul.msk.f32.gmra.mxu3 %vm252_vm1, %v236_v3 }
  0x91   : > { %867 = vmatmul.msk.f32.gmra.mxu0 %vm252_vm1, %v188_v4  ;;  %883 = vmatmul.msk.f32.gmra.mxu1 %vm252_vm1, %v204_v5 }
  0x97   : > { %900 = vmatmul.msk.f32.gmra.mxu2 %vm252_vm1, %v221_v6  ;;  %916 = vmatmul.msk.f32.gmra.mxu3 %vm252_vm1, %v237_v7 }
  0x99   : > { %868 = vmatmul.msk.f32.gmra.mxu0 %vm252_vm1, %v189_v8  ;;  %884 = vmatmul.msk.f32.gmra.mxu1 %vm252_vm1, %v205_v9 }
  0x9e   : > { %v466_v11 = vpop.f32.mrf.mxu0  ;;  %v514_v12 = vpop.f32.mrf.mxu1 }
  0x9f   : > { %v467_v13 = vadd.f32 %v1165_v10, %v466_v11  ;;  %v515_v14 = vadd.f32 %v1165_v10, %v514_v12 }
  0xa1   : > { %v658_v15 = vmax.f32 %v467_v13, 0.0  ;;  %v674_v16 = vmax.f32 %v515_v14, 0.0 }
  0xa2   : > { %v562_v17 = vpop.f32.mrf.mxu2  ;;  %v610_v18 = vpop.f32.mrf.mxu3 }
  0xa3   : > { %723 = vst.msk [vmem:[%s1174_s17] sm:$0xff] %vm722_vm2, %v658_v15  ;;  %v563_v19 = vadd.f32 %v1165_v10, %v562_v17  ;;  %v611_v20 = vadd.f32 %v1165_v10, %v610_v18 }
  0xa4   : > { %739 = vst.msk [vmem:[%s1174_s17 + $0x80] sm:$0xff] %vm722_vm2, %v674_v16 }
  0xa5   : > { %v690_v21 = vmax.f32 %v563_v19, 0.0  ;;  %v706_v22 = vmax.f32 %v611_v20, 0.0 }
  0xa6   : > { %v469_v23 = vpop.f32.mrf.mxu0  ;;  %v517_v24 = vpop.f32.mrf.mxu1 }
  0xa7   : > { %755 = vst.msk [vmem:[%s1174_s17 + $0x100] sm:$0xff] %vm722_vm2, %v690_v21  ;;  %v470_v25 = vadd.f32 %v1165_v10, %v469_v23  ;;  %v518_v26 = vadd.f32 %v1165_v10, %v517_v24 }
  0xa8   : > { %771 = vst.msk [vmem:[%s1174_s17 + $0x180] sm:$0xff] %vm722_vm2, %v706_v22 }
  0xa9   : > { %v659_v27 = vmax.f32 %v470_v25, 0.0  ;;  %v675_v28 = vmax.f32 %v518_v26, 0.0 }
  0xaa   : > { %v565_v29 = vpop.f32.mrf.mxu2  ;;  %v613_v30 = vpop.f32.mrf.mxu3 }
  0xab   : > { %724 = vst.msk [vmem:[%s1174_s17 + $0x8] sm:$0xff] %vm722_vm2, %v659_v27  ;;  %v566_v31 = vadd.f32 %v1165_v10, %v565_v29  ;;  %v614_v32 = vadd.f32 %v1165_v10, %v613_v30 }
  0xac   : > { %740 = vst.msk [vmem:[%s1174_s17 + $0x88] sm:$0xff] %vm722_vm2, %v675_v28 }
  0xad   : > { %v691_v33 = vmax.f32 %v566_v31, 0.0  ;;  %v707_v34 = vmax.f32 %v614_v32, 0.0 }
  0xae   : > { %v472_v35 = vpop.f32.mrf.mxu0  ;;  %v520_v36 = vpop.f32.mrf.mxu1 }
  0xaf   : > { %756 = vst.msk [vmem:[%s1174_s17 + $0x108] sm:$0xff] %vm722_vm2, %v691_v33  ;;  %v473_v37 = vadd.f32 %v1165_v10, %v472_v35  ;;  %v521_v38 = vadd.f32 %v1165_v10, %v520_v36 }
  0xb0   : > { %772 = vst.msk [vmem:[%s1174_s17 + $0x188] sm:$0xff] %vm722_vm2, %v707_v34 }
  0xb1   : > { %v660_v39 = vmax.f32 %v473_v37, 0.0  ;;  %v676_v40 = vmax.f32 %v521_v38, 0.0 }
  0xb2   : > { %v568_v41 = vpop.f32.mrf.mxu2  ;;  %v616_v42 = vpop.f32.mrf.mxu3 }
  0xb3   : > { %725 = vst.msk [vmem:[%s1174_s17 + $0x10] sm:$0xff] %vm722_vm2, %v660_v39  ;;  %v569_v43 = vadd.f32 %v1165_v10, %v568_v41  ;;  %v617_v44 = vadd.f32 %v1165_v10, %v616_v42 }
  0xb4   : > { %741 = vst.msk [vmem:[%s1174_s17 + $0x90] sm:$0xff] %vm722_vm2, %v676_v40 }
  0xb5   : > { %v692_v45 = vmax.f32 %v569_v43, 0.0  ;;  %v708_v46 = vmax.f32 %v617_v44, 0.0 }
  0xb6   : > { %v475_v47 = vpop.f32.mrf.mxu0  ;;  %v523_v48 = vpop.f32.mrf.mxu1 }
  0xb7   : > { %757 = vst.msk [vmem:[%s1174_s17 + $0x110] sm:$0xff] %vm722_vm2, %v692_v45  ;;  %v476_v49 = vadd.f32 %v1165_v10, %v475_v47  ;;  %v524_v50 = vadd.f32 %v1165_v10, %v523_v48 }
  0xb8   : > { %773 = vst.msk [vmem:[%s1174_s17 + $0x190] sm:$0xff] %vm722_vm2, %v708_v46 }
  0xb9   : > { %v661_v51 = vmax.f32 %v476_v49, 0.0  ;;  %v677_v52 = vmax.f32 %v524_v50, 0.0 }
  0xba   : > { %v571_v53 = vpop.f32.mrf.mxu2  ;;  %v619_v54 = vpop.f32.mrf.mxu3 }
  0xbb   : > { %726 = vst.msk [vmem:[%s1174_s17 + $0x18] sm:$0xff] %vm722_vm2, %v661_v51  ;;  %v572_v55 = vadd.f32 %v1165_v10, %v571_v53  ;;  %v620_v56 = vadd.f32 %v1165_v10, %v619_v54 }
  0xbc   : > { %742 = vst.msk [vmem:[%s1174_s17 + $0x98] sm:$0xff] %vm722_vm2, %v677_v52 }
  0xbd   : > { %v693_v57 = vmax.f32 %v572_v55, 0.0  ;;  %v709_v58 = vmax.f32 %v620_v56, 0.0 }
  0xbe   : > { %v478_v59 = vpop.f32.mrf.mxu0  ;;  %v526_v60 = vpop.f32.mrf.mxu1 }
  0xbf   : > { %758 = vst.msk [vmem:[%s1174_s17 + $0x118] sm:$0xff] %vm722_vm2, %v693_v57  ;;  %v479_v61 = vadd.f32 %v1165_v10, %v478_v59  ;;  %v527_v62 = vadd.f32 %v1165_v10, %v526_v60 }
  0xc0   : > { %774 = vst.msk [vmem:[%s1174_s17 + $0x198] sm:$0xff] %vm722_vm2, %v709_v58 }
  0xc1   : > { %v662_v63 = vmax.f32 %v479_v61, 0.0  ;;  %v678_v0 = vmax.f32 %v527_v62, 0.0 }
  0xc2   : > { %v574_v1 = vpop.f32.mrf.mxu2  ;;  %v622_v2 = vpop.f32.mrf.mxu3 }
  0xc3   : > { %727 = vst.msk [vmem:[%s1174_s17 + $0x20] sm:$0xff] %vm722_vm2, %v662_v63  ;;  %v575_v3 = vadd.f32 %v1165_v10, %v574_v1  ;;  %v623_v4 = vadd.f32 %v1165_v10, %v622_v2 }
  0xc4   : > { %743 = vst.msk [vmem:[%s1174_s17 + $0xa0] sm:$0xff] %vm722_vm2, %v678_v0 }
  0xc5   : > { %v694_v5 = vmax.f32 %v575_v3, 0.0  ;;  %v710_v6 = vmax.f32 %v623_v4, 0.0 }
  0xc6   : > { %v481_v7 = vpop.f32.mrf.mxu0  ;;  %v529_v8 = vpop.f32.mrf.mxu1 }
  0xc7   : > { %759 = vst.msk [vmem:[%s1174_s17 + $0x120] sm:$0xff] %vm722_vm2, %v694_v5  ;;  %v482_v9 = vadd.f32 %v1165_v10, %v481_v7  ;;  %v530_v11 = vadd.f32 %v1165_v10, %v529_v8 }
  0xc8   : > { %775 = vst.msk [vmem:[%s1174_s17 + $0x1a0] sm:$0xff] %vm722_vm2, %v710_v6 }
  0xc9   : > { %v663_v12 = vmax.f32 %v482_v9, 0.0  ;;  %v679_v13 = vmax.f32 %v530_v11, 0.0 }
  0xca   : > { %v577_v14 = vpop.f32.mrf.mxu2  ;;  %v625_v15 = vpop.f32.mrf.mxu3 }
  0xcb   : > { %728 = vst.msk [vmem:[%s1174_s17 + $0x28] sm:$0xff] %vm722_vm2, %v663_v12  ;;  %v578_v16 = vadd.f32 %v1165_v10, %v577_v14  ;;  %v626_v17 = vadd.f32 %v1165_v10, %v625_v15 }
  0xcc   : > { %744 = vst.msk [vmem:[%s1174_s17 + $0xa8] sm:$0xff] %vm722_vm2, %v679_v13 }
  0xcd   : > { %v695_v18 = vmax.f32 %v578_v16, 0.0  ;;  %v711_v19 = vmax.f32 %v626_v17, 0.0 }
  0xce   : > { %v484_v20 = vpop.f32.mrf.mxu0  ;;  %v532_v21 = vpop.f32.mrf.mxu1 }
  0xcf   : > { %760 = vst.msk [vmem:[%s1174_s17 + $0x128] sm:$0xff] %vm722_vm2, %v695_v18  ;;  %v485_v22 = vadd.f32 %v1165_v10, %v484_v20  ;;  %v533_v23 = vadd.f32 %v1165_v10, %v532_v21 }
  0xd0   : > { %776 = vst.msk [vmem:[%s1174_s17 + $0x1a8] sm:$0xff] %vm722_vm2, %v711_v19 }
  0xd1   : > { %v664_v24 = vmax.f32 %v485_v22, 0.0  ;;  %v680_v25 = vmax.f32 %v533_v23, 0.0 }
  0xd2   : > { %v580_v26 = vpop.f32.mrf.mxu2  ;;  %v628_v27 = vpop.f32.mrf.mxu3 }
  0xd3   : > { %729 = vst.msk [vmem:[%s1174_s17 + $0x30] sm:$0xff] %vm722_vm2, %v664_v24  ;;  %v581_v28 = vadd.f32 %v1165_v10, %v580_v26  ;;  %v629_v29 = vadd.f32 %v1165_v10, %v628_v27 }
  0xd4   : > { %745 = vst.msk [vmem:[%s1174_s17 + $0xb0] sm:$0xff] %vm722_vm2, %v680_v25 }
  0xd5   : > { %v696_v30 = vmax.f32 %v581_v28, 0.0  ;;  %v712_v31 = vmax.f32 %v629_v29, 0.0 }
  0xd6   : > { %v487_v32 = vpop.f32.mrf.mxu0  ;;  %v535_v33 = vpop.f32.mrf.mxu1 }
  0xd7   : > { %761 = vst.msk [vmem:[%s1174_s17 + $0x130] sm:$0xff] %vm722_vm2, %v696_v30  ;;  %v488_v34 = vadd.f32 %v1165_v10, %v487_v32  ;;  %v536_v35 = vadd.f32 %v1165_v10, %v535_v33 }
  0xd8   : > { %777 = vst.msk [vmem:[%s1174_s17 + $0x1b0] sm:$0xff] %vm722_vm2, %v712_v31 }
  0xd9   : > { %v665_v36 = vmax.f32 %v488_v34, 0.0  ;;  %v681_v37 = vmax.f32 %v536_v35, 0.0 }
  0xda   : > { %v583_v38 = vpop.f32.mrf.mxu2  ;;  %v631_v39 = vpop.f32.mrf.mxu3 }
  0xdb   : > { %730 = vst.msk [vmem:[%s1174_s17 + $0x38] sm:$0xff] %vm722_vm2, %v665_v36  ;;  %v584_v40 = vadd.f32 %v1165_v10, %v583_v38  ;;  %v632_v41 = vadd.f32 %v1165_v10, %v631_v39 }
  0xdc   : > { %746 = vst.msk [vmem:[%s1174_s17 + $0xb8] sm:$0xff] %vm722_vm2, %v681_v37 }
  0xdd   : > { %v697_v42 = vmax.f32 %v584_v40, 0.0  ;;  %v713_v43 = vmax.f32 %v632_v41, 0.0 }
  0xde   : > { %v490_v44 = vpop.f32.mrf.mxu0  ;;  %v538_v45 = vpop.f32.mrf.mxu1 }
  0xdf   : > { %762 = vst.msk [vmem:[%s1174_s17 + $0x138] sm:$0xff] %vm722_vm2, %v697_v42  ;;  %v491_v46 = vadd.f32 %v1165_v10, %v490_v44  ;;  %v539_v47 = vadd.f32 %v1165_v10, %v538_v45 }
  0xe0   : > { %778 = vst.msk [vmem:[%s1174_s17 + $0x1b8] sm:$0xff] %vm722_vm2, %v713_v43 }
  0xe1   : > { %v666_v48 = vmax.f32 %v491_v46, 0.0  ;;  %v682_v49 = vmax.f32 %v539_v47, 0.0 }
  0xe2   : > { %v586_v50 = vpop.f32.mrf.mxu2  ;;  %v634_v51 = vpop.f32.mrf.mxu3 }
  0xe3   : > { %731 = vst.msk [vmem:[%s1174_s17 + $0x40] sm:$0xff] %vm722_vm2, %v666_v48  ;;  %v587_v52 = vadd.f32 %v1165_v10, %v586_v50  ;;  %v635_v53 = vadd.f32 %v1165_v10, %v634_v51 }
  0xe4   : > { %747 = vst.msk [vmem:[%s1174_s17 + $0xc0] sm:$0xff] %vm722_vm2, %v682_v49 }
  0xe5   : > { %v698_v54 = vmax.f32 %v587_v52, 0.0  ;;  %v714_v55 = vmax.f32 %v635_v53, 0.0 }
  0xe6   : > { %v493_v56 = vpop.f32.mrf.mxu0  ;;  %v541_v57 = vpop.f32.mrf.mxu1 }
  0xe7   : > { %763 = vst.msk [vmem:[%s1174_s17 + $0x140] sm:$0xff] %vm722_vm2, %v698_v54  ;;  %v494_v58 = vadd.f32 %v1165_v10, %v493_v56  ;;  %v542_v59 = vadd.f32 %v1165_v10, %v541_v57 }
  0xe8   : > { %779 = vst.msk [vmem:[%s1174_s17 + $0x1c0] sm:$0xff] %vm722_vm2, %v714_v55 }
  0xe9   : > { %v667_v60 = vmax.f32 %v494_v58, 0.0  ;;  %v683_v61 = vmax.f32 %v542_v59, 0.0 }
  0xea   : > { %v589_v62 = vpop.f32.mrf.mxu2  ;;  %v637_v63 = vpop.f32.mrf.mxu3 }
  0xeb   : > { %732 = vst.msk [vmem:[%s1174_s17 + $0x48] sm:$0xff] %vm722_vm2, %v667_v60  ;;  %v590_v0 = vadd.f32 %v1165_v10, %v589_v62  ;;  %v638_v1 = vadd.f32 %v1165_v10, %v637_v63 }
  0xec   : > { %748 = vst.msk [vmem:[%s1174_s17 + $0xc8] sm:$0xff] %vm722_vm2, %v683_v61 }
  0xed   : > { %v699_v2 = vmax.f32 %v590_v0, 0.0  ;;  %v715_v3 = vmax.f32 %v638_v1, 0.0 }
  0xee   : > { %v496_v4 = vpop.f32.mrf.mxu0  ;;  %v544_v5 = vpop.f32.mrf.mxu1 }
  0xef   : > { %764 = vst.msk [vmem:[%s1174_s17 + $0x148] sm:$0xff] %vm722_vm2, %v699_v2  ;;  %v497_v6 = vadd.f32 %v1165_v10, %v496_v4  ;;  %v545_v7 = vadd.f32 %v1165_v10, %v544_v5 }
  0xf0   : > { %780 = vst.msk [vmem:[%s1174_s17 + $0x1c8] sm:$0xff] %vm722_vm2, %v715_v3 }
  0xf1   : > { %v668_v8 = vmax.f32 %v497_v6, 0.0  ;;  %v684_v9 = vmax.f32 %v545_v7, 0.0 }
  0xf2   : > { %v592_v11 = vpop.f32.mrf.mxu2  ;;  %v640_v12 = vpop.f32.mrf.mxu3 }
  0xf3   : > { %733 = vst.msk [vmem:[%s1174_s17 + $0x50] sm:$0xff] %vm722_vm2, %v668_v8  ;;  %v593_v13 = vadd.f32 %v1165_v10, %v592_v11  ;;  %v641_v14 = vadd.f32 %v1165_v10, %v640_v12 }
  0xf4   : > { %749 = vst.msk [vmem:[%s1174_s17 + $0xd0] sm:$0xff] %vm722_vm2, %v684_v9 }
  0xf5   : > { %v700_v15 = vmax.f32 %v593_v13, 0.0  ;;  %v716_v16 = vmax.f32 %v641_v14, 0.0 }
  0xf6   : > { %v499_v17 = vpop.f32.mrf.mxu0  ;;  %v547_v18 = vpop.f32.mrf.mxu1 }
  0xf7   : > { %765 = vst.msk [vmem:[%s1174_s17 + $0x150] sm:$0xff] %vm722_vm2, %v700_v15  ;;  %v500_v19 = vadd.f32 %v1165_v10, %v499_v17  ;;  %v548_v20 = vadd.f32 %v1165_v10, %v547_v18 }
  0xf8   : > { %781 = vst.msk [vmem:[%s1174_s17 + $0x1d0] sm:$0xff] %vm722_vm2, %v716_v16 }
  0xf9   : > { %v669_v21 = vmax.f32 %v500_v19, 0.0  ;;  %v685_v22 = vmax.f32 %v548_v20, 0.0 }
  0xfa   : > { %v595_v23 = vpop.f32.mrf.mxu2  ;;  %v643_v24 = vpop.f32.mrf.mxu3 }
  0xfb   : > { %734 = vst.msk [vmem:[%s1174_s17 + $0x58] sm:$0xff] %vm722_vm2, %v669_v21  ;;  %v596_v25 = vadd.f32 %v1165_v10, %v595_v23  ;;  %v644_v26 = vadd.f32 %v1165_v10, %v643_v24 }
  0xfc   : > { %750 = vst.msk [vmem:[%s1174_s17 + $0xd8] sm:$0xff] %vm722_vm2, %v685_v22 }
  0xfd   : > { %v701_v27 = vmax.f32 %v596_v25, 0.0  ;;  %v717_v28 = vmax.f32 %v644_v26, 0.0 }
  0xfe   : > { %v502_v29 = vpop.f32.mrf.mxu0  ;;  %v550_v30 = vpop.f32.mrf.mxu1 }
  0xff   : > { %766 = vst.msk [vmem:[%s1174_s17 + $0x158] sm:$0xff] %vm722_vm2, %v701_v27  ;;  %v503_v31 = vadd.f32 %v1165_v10, %v502_v29  ;;  %v551_v32 = vadd.f32 %v1165_v10, %v550_v30 }
 0x100   : > { %782 = vst.msk [vmem:[%s1174_s17 + $0x1d8] sm:$0xff] %vm722_vm2, %v717_v28 }
 0x101   : > { %v670_v33 = vmax.f32 %v503_v31, 0.0  ;;  %v686_v34 = vmax.f32 %v551_v32, 0.0 }
 0x102   : > { %v598_v35 = vpop.f32.mrf.mxu2  ;;  %v646_v36 = vpop.f32.mrf.mxu3 }
 0x103   : > { %735 = vst.msk [vmem:[%s1174_s17 + $0x60] sm:$0xff] %vm722_vm2, %v670_v33  ;;  %v599_v37 = vadd.f32 %v1165_v10, %v598_v35  ;;  %v647_v38 = vadd.f32 %v1165_v10, %v646_v36 }
 0x104   : > { %751 = vst.msk [vmem:[%s1174_s17 + $0xe0] sm:$0xff] %vm722_vm2, %v686_v34 }
 0x105   : > { %v702_v39 = vmax.f32 %v599_v37, 0.0  ;;  %v718_v40 = vmax.f32 %v647_v38, 0.0 }
 0x106   : > { %v505_v41 = vpop.f32.mrf.mxu0  ;;  %v553_v42 = vpop.f32.mrf.mxu1 }
 0x107   : > { %767 = vst.msk [vmem:[%s1174_s17 + $0x160] sm:$0xff] %vm722_vm2, %v702_v39  ;;  %v506_v43 = vadd.f32 %v1165_v10, %v505_v41  ;;  %v554_v44 = vadd.f32 %v1165_v10, %v553_v42 }
 0x108   : > { %783 = vst.msk [vmem:[%s1174_s17 + $0x1e0] sm:$0xff] %vm722_vm2, %v718_v40 }
 0x109   : > { %v671_v45 = vmax.f32 %v506_v43, 0.0  ;;  %v687_v46 = vmax.f32 %v554_v44, 0.0 }
 0x10a   : > { %v601_v47 = vpop.f32.mrf.mxu2  ;;  %v649_v48 = vpop.f32.mrf.mxu3 }
 0x10b   : > { %736 = vst.msk [vmem:[%s1174_s17 + $0x68] sm:$0xff] %vm722_vm2, %v671_v45  ;;  %v602_v49 = vadd.f32 %v1165_v10, %v601_v47  ;;  %v650_v50 = vadd.f32 %v1165_v10, %v649_v48 }
 0x10c   : > { %752 = vst.msk [vmem:[%s1174_s17 + $0xe8] sm:$0xff] %vm722_vm2, %v687_v46 }
 0x10d   : > { %v703_v51 = vmax.f32 %v602_v49, 0.0  ;;  %v719_v52 = vmax.f32 %v650_v50, 0.0 }
 0x10e   : > { %v508_v53 = vpop.f32.mrf.mxu0  ;;  %v556_v54 = vpop.f32.mrf.mxu1 }
 0x10f   : > { %768 = vst.msk [vmem:[%s1174_s17 + $0x168] sm:$0xff] %vm722_vm2, %v703_v51  ;;  %v509_v55 = vadd.f32 %v1165_v10, %v508_v53  ;;  %v557_v56 = vadd.f32 %v1165_v10, %v556_v54 }
 0x110   : > { %784 = vst.msk [vmem:[%s1174_s17 + $0x1e8] sm:$0xff] %vm722_vm2, %v719_v52 }
 0x111   : > { %v672_v57 = vmax.f32 %v509_v55, 0.0  ;;  %v688_v58 = vmax.f32 %v557_v56, 0.0 }
 0x112   : > { %v604_v59 = vpop.f32.mrf.mxu2  ;;  %v652_v60 = vpop.f32.mrf.mxu3 }
 0x113   : > { %737 = vst.msk [vmem:[%s1174_s17 + $0x70] sm:$0xff] %vm722_vm2, %v672_v57  ;;  %v605_v61 = vadd.f32 %v1165_v10, %v604_v59  ;;  %v653_v62 = vadd.f32 %v1165_v10, %v652_v60 }
 0x114   : > { %753 = vst.msk [vmem:[%s1174_s17 + $0xf0] sm:$0xff] %vm722_vm2, %v688_v58 }
 0x115   : > { %v704_v63 = vmax.f32 %v605_v61, 0.0  ;;  %v720_v0 = vmax.f32 %v653_v62, 0.0 }
 0x116   : > { %v511_v1 = vpop.f32.mrf.mxu0  ;;  %v559_v2 = vpop.f32.mrf.mxu1 }
 0x117   : > { %769 = vst.msk [vmem:[%s1174_s17 + $0x170] sm:$0xff] %vm722_vm2, %v704_v63  ;;  %v512_v3 = vadd.f32 %v1165_v10, %v511_v1  ;;  %v560_v4 = vadd.f32 %v1165_v10, %v559_v2 }
 0x118   : > { %785 = vst.msk [vmem:[%s1174_s17 + $0x1f0] sm:$0xff] %vm722_vm2, %v720_v0 }
 0x119   : > { %v673_v5 = vmax.f32 %v512_v3, 0.0  ;;  %v689_v6 = vmax.f32 %v560_v4, 0.0 }
 0x11a   : > { %v607_v7 = vpop.f32.mrf.mxu2  ;;  %v655_v8 = vpop.f32.mrf.mxu3 }
 0x11b   : > { %738 = vst.msk [vmem:[%s1174_s17 + $0x78] sm:$0xff] %vm722_vm2, %v673_v5  ;;  %v608_v9 = vadd.f32 %v1165_v10, %v607_v7  ;;  %v656_v11 = vadd.f32 %v1165_v10, %v655_v8 }
 0x11c   : > { %754 = vst.msk [vmem:[%s1174_s17 + $0xf8] sm:$0xff] %vm722_vm2, %v689_v6 }
 0x11d   : > { %v705_v12 = vmax.f32 %v608_v9, 0.0  ;;  %v721_v13 = vmax.f32 %v656_v11, 0.0 }
 0x11f   : > { %770 = vst.msk [vmem:[%s1174_s17 + $0x178] sm:$0xff] %vm722_vm2, %v705_v12 }
 0x120   : > { %786 = vst.msk [vmem:[%s1174_s17 + $0x1f8] sm:$0xff] %vm722_vm2, %v721_v13 }
 0x121 PF: > { %s13_s12 = sadd.s32 1, %s964_s12  }
 0x122   : > { %p10_p4 = scmp.ge.s32.totalorder %s13_s12, 7  }
 0x124   :  { %12 = sbr.rel (!%p10_p4) target bundleno = 1 (0x1), region = 62 }

// kernel: fruit_classifier_forward.5
= control target key start
LH: loop header
LB: loop body
LE: loop exit
PB: predicated region body
PF: predicated region fallthrough
CT: control target
= control target key end

     0   :  { %vm231_vm0 = vcmask 1041408   ;;  %vm122_vm1 = vcmask 998400   ;;  %vm521_vm2 = vcmask 195584   ;;  %s1185_s1 = inlined_call_operand.vmem [shape: f32[250,24], index: 1, kind: input, shape index: {}]   ;;  %s1186_s0 = inlined_call_operand.vmem [shape: f32[288,250], index: 0, kind: input, shape index: {}]   ;;  %s1187_s2 = inlined_call_operand.vmem [shape: f32[1,24], index: 2, kind: input, shape index: {}]   ;;  %s1188_s3 = inlined_call_operand.vmem [shape: f32[288,24], index: 3, kind: output, shape index: {}]  }
   0x1   :  { %v101_v0 = vld [vmem:[%s1185_s1 + $0x78] sm:$0xff]  ;;  %v100_v1 = vld [vmem:[%s1185_s1 + $0x70] sm:$0xff]  ;;  %v99_v4 = vld [vmem:[%s1185_s1 + $0x68] sm:$0xff] }
   0x2   :  { %v117_v2 = vld [vmem:[%s1185_s1 + $0xf8] sm:$0x3]  ;;  %599 = vmatpush.msra.mxu2 %v101_v0  ;;  %v116_v3 = vld [vmem:[%s1185_s1 + $0xf0] sm:$0xff]  ;;  %235 = vmatpush.msra.mxu0 %v101_v0  ;;  %v115_v5 = vld [vmem:[%s1185_s1 + $0xe8] sm:$0xff] }
   0x3   :  { %615 = vmatpush.msk.msra.mxu3 %vm231_vm0, %v117_v2  ;;  %562 = vmatpush.msk.msra.mxu1 %vm231_vm0, %v117_v2  ;;  %v98_v6 = vld [vmem:[%s1185_s1 + $0x60] sm:$0xff]  ;;  %v97_v8 = vld [vmem:[%s1185_s1 + $0x58] sm:$0xff]  ;;  %v96_v10 = vld [vmem:[%s1185_s1 + $0x50] sm:$0xff] }
   0x4   :  { %600 = vmatpush.msra.mxu2 %v100_v1  ;;  %236 = vmatpush.msra.mxu0 %v100_v1  ;;  %v114_v7 = vld [vmem:[%s1185_s1 + $0xe0] sm:$0xff]  ;;  %v113_v9 = vld [vmem:[%s1185_s1 + $0xd8] sm:$0xff]  ;;  %v112_v11 = vld [vmem:[%s1185_s1 + $0xd0] sm:$0xff] }
   0x5   :  { %616 = vmatpush.msra.mxu3 %v116_v3  ;;  %361 = vmatpush.msra.mxu1 %v116_v3  ;;  %v95_v12 = vld [vmem:[%s1185_s1 + $0x48] sm:$0xff]  ;;  %v94_v14 = vld [vmem:[%s1185_s1 + $0x40] sm:$0xff]  ;;  %v93_v16 = vld [vmem:[%s1185_s1 + $0x38] sm:$0xff] }
   0x6   :  { %601 = vmatpush.msra.mxu2 %v99_v4  ;;  %237 = vmatpush.msra.mxu0 %v99_v4  ;;  %v111_v13 = vld [vmem:[%s1185_s1 + $0xc8] sm:$0xff]  ;;  %v110_v15 = vld [vmem:[%s1185_s1 + $0xc0] sm:$0xff]  ;;  %v109_v17 = vld [vmem:[%s1185_s1 + $0xb8] sm:$0xff] }
   0x7   :  { %617 = vmatpush.msra.mxu3 %v115_v5  ;;  %362 = vmatpush.msra.mxu1 %v115_v5  ;;  %v92_v18 = vld [vmem:[%s1185_s1 + $0x30] sm:$0xff]  ;;  %v91_v20 = vld [vmem:[%s1185_s1 + $0x28] sm:$0xff]  ;;  %v90_v22 = vld [vmem:[%s1185_s1 + $0x20] sm:$0xff] }
   0x8   :  { %602 = vmatpush.msra.mxu2 %v98_v6  ;;  %238 = vmatpush.msra.mxu0 %v98_v6  ;;  %v108_v19 = vld [vmem:[%s1185_s1 + $0xb0] sm:$0xff]  ;;  %v107_v21 = vld [vmem:[%s1185_s1 + $0xa8] sm:$0xff]  ;;  %v106_v23 = vld [vmem:[%s1185_s1 + $0xa0] sm:$0xff] }
   0x9   :  { %618 = vmatpush.msra.mxu3 %v114_v7  ;;  %363 = vmatpush.msra.mxu1 %v114_v7  ;;  %v89_v24 = vld [vmem:[%s1185_s1 + $0x18] sm:$0xff]  ;;  %v88_v26 = vld [vmem:[%s1185_s1 + $0x10] sm:$0xff]  ;;  %v87_v28 = vld [vmem:[%s1185_s1 + $0x8] sm:$0xff] }
   0xa   :  { %603 = vmatpush.msra.mxu2 %v97_v8  ;;  %239 = vmatpush.msra.mxu0 %v97_v8  ;;  %v105_v25 = vld [vmem:[%s1185_s1 + $0x98] sm:$0xff]  ;;  %v104_v27 = vld [vmem:[%s1185_s1 + $0x90] sm:$0xff]  ;;  %v103_v29 = vld [vmem:[%s1185_s1 + $0x88] sm:$0xff] }
   0xb   :  { %619 = vmatpush.msra.mxu3 %v113_v9  ;;  %364 = vmatpush.msra.mxu1 %v113_v9  ;;  %v86_v30 = vld [vmem:[%s1185_s1] sm:$0xff]  ;;  %v51_v33 = vld [vmem:[%s1186_s0 + $0x128] sm:$0xff]  ;;  %v52_v36 = vld [vmem:[%s1186_s0 + $0x130] sm:$0xff] }
   0xc   :  { %604 = vmatpush.msra.mxu2 %v96_v10  ;;  %240 = vmatpush.msra.mxu0 %v96_v10  ;;  %v102_v31 = vld [vmem:[%s1185_s1 + $0x80] sm:$0xff]  ;;  %v15_v35 = vld [vmem:[%s1186_s0 + $0x8] sm:$0xff]  ;;  %v53_v37 = vld [vmem:[%s1186_s0 + $0x138] sm:$0xff] }
   0xd   :  { %620 = vmatpush.msra.mxu3 %v112_v11  ;;  %365 = vmatpush.msra.mxu1 %v112_v11  ;;  %v50_v32 = vld [vmem:[%s1186_s0 + $0x120] sm:$0xff]  ;;  %v16_v38 = vld [vmem:[%s1186_s0 + $0x10] sm:$0xff]  ;;  %v17_v39 = vld [vmem:[%s1186_s0 + $0x18] sm:$0xff] }
   0xe   :  { %605 = vmatpush.msra.mxu2 %v95_v12  ;;  %241 = vmatpush.msra.mxu0 %v95_v12  ;;  %v14_v34 = vld [vmem:[%s1186_s0] sm:$0xff]  ;;  %v55_v41 = vld [vmem:[%s1186_s0 + $0x148] sm:$0xff]  ;;  %v56_v44 = vld [vmem:[%s1186_s0 + $0x150] sm:$0xff] }
   0xf   :  { %621 = vmatpush.msra.mxu3 %v111_v13  ;;  %366 = vmatpush.msra.mxu1 %v111_v13  ;;  %v54_v40 = vld [vmem:[%s1186_s0 + $0x140] sm:$0xff]  ;;  %v19_v43 = vld [vmem:[%s1186_s0 + $0x28] sm:$0xff]  ;;  %v57_v45 = vld [vmem:[%s1186_s0 + $0x158] sm:$0xff] }
  0x10   :  { %606 = vmatpush.msra.mxu2 %v94_v14  ;;  %242 = vmatpush.msra.mxu0 %v94_v14  ;;  %v18_v42 = vld [vmem:[%s1186_s0 + $0x20] sm:$0xff]  ;;  %v20_v46 = vld [vmem:[%s1186_s0 + $0x30] sm:$0xff]  ;;  %v21_v47 = vld [vmem:[%s1186_s0 + $0x38] sm:$0xff] }
  0x11   :  { %622 = vmatpush.msra.mxu3 %v110_v15  ;;  %367 = vmatpush.msra.mxu1 %v110_v15  ;;  %v58_v48 = vld [vmem:[%s1186_s0 + $0x160] sm:$0xff]  ;;  %v59_v49 = vld [vmem:[%s1186_s0 + $0x168] sm:$0xff]  ;;  %v60_v52 = vld [vmem:[%s1186_s0 + $0x170] sm:$0xff] }
  0x12   :  { %607 = vmatpush.msra.mxu2 %v93_v16  ;;  %243 = vmatpush.msra.mxu0 %v93_v16  ;;  %v22_v50 = vld [vmem:[%s1186_s0 + $0x40] sm:$0xff]  ;;  %v23_v51 = vld [vmem:[%s1186_s0 + $0x48] sm:$0xff]  ;;  %v61_v53 = vld [vmem:[%s1186_s0 + $0x178] sm:$0xff] }
  0x13   :  { %623 = vmatpush.msra.mxu3 %v109_v17  ;;  %368 = vmatpush.msra.mxu1 %v109_v17  ;;  %v24_v54 = vld [vmem:[%s1186_s0 + $0x50] sm:$0xff]  ;;  %v25_v55 = vld [vmem:[%s1186_s0 + $0x58] sm:$0xff]  ;;  %v62_v56 = vld [vmem:[%s1186_s0 + $0x180] sm:$0xff] }
  0x14   :  { %608 = vmatpush.msra.mxu2 %v92_v18  ;;  %244 = vmatpush.msra.mxu0 %v92_v18  ;;  %v63_v57 = vld [vmem:[%s1186_s0 + $0x188] sm:$0xff]  ;;  %v26_v58 = vld [vmem:[%s1186_s0 + $0x60] sm:$0xff]  ;;  %v64_v60 = vld [vmem:[%s1186_s0 + $0x190] sm:$0xff] }
  0x15   :  { %624 = vmatpush.msra.mxu3 %v108_v19  ;;  %369 = vmatpush.msra.mxu1 %v108_v19  ;;  %v27_v59 = vld [vmem:[%s1186_s0 + $0x68] sm:$0xff]  ;;  %v65_v61 = vld [vmem:[%s1186_s0 + $0x198] sm:$0xff]  ;;  %v28_v62 = vld [vmem:[%s1186_s0 + $0x70] sm:$0xff] }
  0x16   :  { %609 = vmatpush.msra.mxu2 %v91_v20  ;;  %245 = vmatpush.msra.mxu0 %v91_v20  ;;  %v29_v63 = vld [vmem:[%s1186_s0 + $0x78] sm:$0xff]  ;;  %v66_v0 = vld [vmem:[%s1186_s0 + $0x1a0] sm:$0xff]  ;;  %v67_v1 = vld [vmem:[%s1186_s0 + $0x1a8] sm:$0xff] }
  0x17   :  { %625 = vmatpush.msra.mxu3 %v107_v21  ;;  %370 = vmatpush.msra.mxu1 %v107_v21  ;;  %v30_v2 = vld [vmem:[%s1186_s0 + $0x80] sm:$0xff]  ;;  %v31_v3 = vld [vmem:[%s1186_s0 + $0x88] sm:$0xff]  ;;  %v68_v4 = vld [vmem:[%s1186_s0 + $0x1b0] sm:$0xff] }
  0x18   :  { %610 = vmatpush.msra.mxu2 %v90_v22  ;;  %246 = vmatpush.msra.mxu0 %v90_v22  ;;  %v69_v5 = vld [vmem:[%s1186_s0 + $0x1b8] sm:$0xff]  ;;  %v32_v6 = vld [vmem:[%s1186_s0 + $0x90] sm:$0xff]  ;;  %v70_v8 = vld [vmem:[%s1186_s0 + $0x1c0] sm:$0xff] }
  0x19   :  { %626 = vmatpush.msra.mxu3 %v106_v23  ;;  %371 = vmatpush.msra.mxu1 %v106_v23  ;;  %v33_v7 = vld [vmem:[%s1186_s0 + $0x98] sm:$0xff]  ;;  %v71_v9 = vld [vmem:[%s1186_s0 + $0x1c8] sm:$0xff]  ;;  %v34_v10 = vld [vmem:[%s1186_s0 + $0xa0] sm:$0xff] }
  0x1a   :  { %611 = vmatpush.msra.mxu2 %v89_v24  ;;  %247 = vmatpush.msra.mxu0 %v89_v24  ;;  %v35_v11 = vld [vmem:[%s1186_s0 + $0xa8] sm:$0xff]  ;;  %v72_v12 = vld [vmem:[%s1186_s0 + $0x1d0] sm:$0xff]  ;;  %v73_v13 = vld [vmem:[%s1186_s0 + $0x1d8] sm:$0xff] }
  0x1b   :  { %627 = vmatpush.msra.mxu3 %v105_v25  ;;  %372 = vmatpush.msra.mxu1 %v105_v25  ;;  %v36_v14 = vld [vmem:[%s1186_s0 + $0xb0] sm:$0xff]  ;;  %v37_v15 = vld [vmem:[%s1186_s0 + $0xb8] sm:$0xff]  ;;  %v74_v16 = vld [vmem:[%s1186_s0 + $0x1e0] sm:$0xff] }
  0x1c   :  { %612 = vmatpush.msra.mxu2 %v88_v26  ;;  %248 = vmatpush.msra.mxu0 %v88_v26  ;;  %v75_v17 = vld [vmem:[%s1186_s0 + $0x1e8] sm:$0xff]  ;;  %v38_v18 = vld [vmem:[%s1186_s0 + $0xc0] sm:$0xff]  ;;  %v76_v20 = vld [vmem:[%s1186_s0 + $0x1f0] sm:$0xff] }
  0x1d   :  { %628 = vmatpush.msra.mxu3 %v104_v27  ;;  %373 = vmatpush.msra.mxu1 %v104_v27  ;;  %v39_v19 = vld [vmem:[%s1186_s0 + $0xc8] sm:$0xff]  ;;  %v77_v21 = vld [vmem:[%s1186_s0 + $0x1f8] sm:$0xff]  ;;  %v40_v22 = vld [vmem:[%s1186_s0 + $0xd0] sm:$0xff] }
  0x1e   :  { %613 = vmatpush.msra.mxu2 %v87_v28  ;;  %249 = vmatpush.msra.mxu0 %v87_v28  ;;  %v41_v23 = vld [vmem:[%s1186_s0 + $0xd8] sm:$0xff]  ;;  %v78_v24 = vld [vmem:[%s1186_s0 + $0x200] sm:$0xff]  ;;  %v79_v25 = vld [vmem:[%s1186_s0 + $0x208] sm:$0xff] }
  0x1f   :  { %629 = vmatpush.msra.mxu3 %v103_v29  ;;  %374 = vmatpush.msra.mxu1 %v103_v29  ;;  %v42_v26 = vld [vmem:[%s1186_s0 + $0xe0] sm:$0xff]  ;;  %v43_v27 = vld [vmem:[%s1186_s0 + $0xe8] sm:$0xff]  ;;  %v80_v28 = vld [vmem:[%s1186_s0 + $0x210] sm:$0xff] }
  0x20   :  { %614 = vmatpush.msra.mxu2 %v86_v30  ;;  %250 = vmatpush.msra.mxu0 %v86_v30  ;;  %v81_v29 = vld [vmem:[%s1186_s0 + $0x218] sm:$0xff]  ;;  %v44_v30 = vld [vmem:[%s1186_s0 + $0xf0] sm:$0xff] }
  0x21   :  { %630 = vmatpush.msra.mxu3 %v102_v31  ;;  %305 = vmatmul.f32.vlgmr.msra.gmra.mxu2 %v50_v32  ;;  %v975_v32 = vld [vmem:[%s1187_s2] ss:$0 sm:$0xff] }
  0x22   :  { %581 = vmatmul.msk.f32.vlgmr.msra.gmra.mxu3 %vm122_vm1, %v51_v33  ;;  %375 = vmatpush.msra.mxu1 %v102_v31  ;;  %v45_v31 = vld [vmem:[%s1186_s0 + $0xf8] sm:$0xff]  ;;  %v82_v33 = vld [vmem:[%s1186_s0 + $0x220] sm:$0xff] }
  0x23   :  { %251 = vmatmul.f32.vlgmr.msra.gmra.mxu0 %v14_v34  ;;  %563 = vmatmul.msk.f32.vlgmr.msra.gmra.mxu1 %vm122_vm1, %v15_v35  ;;  %v83_v34 = vld [vmem:[%s1186_s0 + $0x228] sm:$0xff] }
  0x29   :  { %308 = vmatmul.f32.gmra.mxu2 %v52_v36 }
  0x2a   :  { %582 = vmatmul.msk.f32.gmra.mxu3 %vm122_vm1, %v53_v37  ;;  %v46_v37 = vld [vmem:[%s1186_s0 + $0x100] sm:$0xff] }
  0x2b   :  { %254 = vmatmul.f32.gmra.mxu0 %v16_v38  ;;  %564 = vmatmul.msk.f32.gmra.mxu1 %vm122_vm1, %v17_v39  ;;  %v47_v38 = vld [vmem:[%s1186_s0 + $0x108] sm:$0xff] }
  0x31   :  { %311 = vmatmul.f32.gmra.mxu2 %v54_v40 }
  0x32   :  { %583 = vmatmul.msk.f32.gmra.mxu3 %vm122_vm1, %v55_v41 }
  0x33   :  { %257 = vmatmul.f32.gmra.mxu0 %v18_v42  ;;  %565 = vmatmul.msk.f32.gmra.mxu1 %vm122_vm1, %v19_v43 }
  0x39   :  { %314 = vmatmul.f32.gmra.mxu2 %v56_v44 }
  0x3a   :  { %584 = vmatmul.msk.f32.gmra.mxu3 %vm122_vm1, %v57_v45  ;;  %v84_v45 = vld [vmem:[%s1186_s0 + $0x230] sm:$0xff] }
  0x3b   :  { %260 = vmatmul.f32.gmra.mxu0 %v20_v46  ;;  %566 = vmatmul.msk.f32.gmra.mxu1 %vm122_vm1, %v21_v47  ;;  %v85_v46 = vld [vmem:[%s1186_s0 + $0x238] sm:$0xff] }
  0x41   :  { %317 = vmatmul.f32.gmra.mxu2 %v58_v48 }
  0x42   :  { %585 = vmatmul.msk.f32.gmra.mxu3 %vm122_vm1, %v59_v49 }
  0x43   :  { %263 = vmatmul.f32.gmra.mxu0 %v22_v50  ;;  %567 = vmatmul.msk.f32.gmra.mxu1 %vm122_vm1, %v23_v51  ;;  %v48_v50 = vld [vmem:[%s1186_s0 + $0x110] sm:$0xff]  ;;  %v49_v51 = vld [vmem:[%s1186_s0 + $0x118] sm:$0xff] }
  0x49   :  { %320 = vmatmul.f32.gmra.mxu2 %v60_v52 }
  0x4a   :  { %586 = vmatmul.msk.f32.gmra.mxu3 %vm122_vm1, %v61_v53 }
  0x4b   :  { %266 = vmatmul.f32.gmra.mxu0 %v24_v54  ;;  %568 = vmatmul.msk.f32.gmra.mxu1 %vm122_vm1, %v25_v55 }
  0x51   :  { %323 = vmatmul.f32.gmra.mxu2 %v62_v56 }
  0x52   :  { %587 = vmatmul.msk.f32.gmra.mxu3 %vm122_vm1, %v63_v57 }
  0x53   :  { %269 = vmatmul.f32.gmra.mxu0 %v26_v58  ;;  %569 = vmatmul.msk.f32.gmra.mxu1 %vm122_vm1, %v27_v59 }
  0x59   :  { %326 = vmatmul.f32.gmra.mxu2 %v64_v60 }
  0x5a   :  { %588 = vmatmul.msk.f32.gmra.mxu3 %vm122_vm1, %v65_v61 }
  0x5b   :  { %272 = vmatmul.f32.gmra.mxu0 %v28_v62  ;;  %570 = vmatmul.msk.f32.gmra.mxu1 %vm122_vm1, %v29_v63 }
  0x61   :  { %329 = vmatmul.f32.gmra.mxu2 %v66_v0 }
  0x62   :  { %589 = vmatmul.msk.f32.gmra.mxu3 %vm122_vm1, %v67_v1 }
  0x63   :  { %275 = vmatmul.f32.gmra.mxu0 %v30_v2  ;;  %571 = vmatmul.msk.f32.gmra.mxu1 %vm122_vm1, %v31_v3 }
  0x69   :  { %332 = vmatmul.f32.gmra.mxu2 %v68_v4 }
  0x6a   :  { %590 = vmatmul.msk.f32.gmra.mxu3 %vm122_vm1, %v69_v5 }
  0x6b   :  { %278 = vmatmul.f32.gmra.mxu0 %v32_v6  ;;  %572 = vmatmul.msk.f32.gmra.mxu1 %vm122_vm1, %v33_v7 }
  0x71   :  { %335 = vmatmul.f32.gmra.mxu2 %v70_v8 }
  0x72   :  { %591 = vmatmul.msk.f32.gmra.mxu3 %vm122_vm1, %v71_v9 }
  0x73   :  { %281 = vmatmul.f32.gmra.mxu0 %v34_v10  ;;  %573 = vmatmul.msk.f32.gmra.mxu1 %vm122_vm1, %v35_v11 }
  0x79   :  { %338 = vmatmul.f32.gmra.mxu2 %v72_v12 }
  0x7a   :  { %592 = vmatmul.msk.f32.gmra.mxu3 %vm122_vm1, %v73_v13 }
  0x7b   :  { %284 = vmatmul.f32.gmra.mxu0 %v36_v14  ;;  %574 = vmatmul.msk.f32.gmra.mxu1 %vm122_vm1, %v37_v15 }
  0x81   :  { %341 = vmatmul.f32.gmra.mxu2 %v74_v16 }
  0x82   :  { %593 = vmatmul.msk.f32.gmra.mxu3 %vm122_vm1, %v75_v17 }
  0x83   :  { %287 = vmatmul.f32.gmra.mxu0 %v38_v18  ;;  %575 = vmatmul.msk.f32.gmra.mxu1 %vm122_vm1, %v39_v19 }
  0x89   :  { %344 = vmatmul.f32.gmra.mxu2 %v76_v20 }
  0x8a   :  { %594 = vmatmul.msk.f32.gmra.mxu3 %vm122_vm1, %v77_v21 }
  0x8b   :  { %290 = vmatmul.f32.gmra.mxu0 %v40_v22  ;;  %576 = vmatmul.msk.f32.gmra.mxu1 %vm122_vm1, %v41_v23 }
  0x91   :  { %347 = vmatmul.f32.gmra.mxu2 %v78_v24 }
  0x92   :  { %595 = vmatmul.msk.f32.gmra.mxu3 %vm122_vm1, %v79_v25 }
  0x93   :  { %293 = vmatmul.f32.gmra.mxu0 %v42_v26  ;;  %577 = vmatmul.msk.f32.gmra.mxu1 %vm122_vm1, %v43_v27 }
  0x99   :  { %350 = vmatmul.f32.gmra.mxu2 %v80_v28 }
  0x9a   :  { %596 = vmatmul.msk.f32.gmra.mxu3 %vm122_vm1, %v81_v29 }
  0x9b   :  { %296 = vmatmul.f32.gmra.mxu0 %v44_v30  ;;  %578 = vmatmul.msk.f32.gmra.mxu1 %vm122_vm1, %v45_v31 }
  0xa0   :  { %v252_v35 = vpop.f32.mrf.mxu0  ;;  %v377_v36 = vpop.f32.mrf.mxu1 }
  0xa1   :  { %353 = vmatmul.f32.gmra.mxu2 %v82_v33  ;;  %v253_v39 = vadd.f32 %v975_v32, %v252_v35 }
  0xa2   :  { %597 = vmatmul.msk.f32.gmra.mxu3 %vm122_vm1, %v83_v34 }
  0xa3   :  { %v378_v40 = vadd.f32 %v377_v36, %v253_v39  ;;  %299 = vmatmul.f32.gmra.mxu0 %v46_v37  ;;  %579 = vmatmul.msk.f32.gmra.mxu1 %vm122_vm1, %v47_v38 }
  0xa4   :  { %v306_v41 = vpop.f32.mrf.mxu2 }
  0xa5   :  { %v431_v42 = vpop.f32.mrf.mxu3  ;;  %v307_v43 = vadd.f32 %v975_v32, %v306_v41  ;;  %v485_v44 = vmax.f32 %v378_v40, 0.0 }
  0xa7   :  { %522 = vst.msk [vmem:[%s1188_s3] sm:$0xff] %vm521_vm2, %v485_v44  ;;  %v432_v47 = vadd.f32 %v431_v42, %v307_v43 }
  0xa8   :  { %v255_v48 = vpop.f32.mrf.mxu0  ;;  %v380_v49 = vpop.f32.mrf.mxu1 }
  0xa9   :  { %v503_v52 = vmax.f32 %v432_v47, 0.0  ;;  %356 = vmatmul.f32.gmra.mxu2 %v84_v45  ;;  %v256_v53 = vadd.f32 %v975_v32, %v255_v48 }
  0xaa   :  { %598 = vmatmul.msk.f32.gmra.mxu3 %vm122_vm1, %v85_v46 }
  0xab   :  { %540 = vst.msk [vmem:[%s1188_s3 + $0x90] sm:$0xff] %vm521_vm2, %v503_v52  ;;  %v381_v54 = vadd.f32 %v380_v49, %v256_v53  ;;  %302 = vmatmul.f32.gmra.mxu0 %v48_v50  ;;  %580 = vmatmul.msk.f32.gmra.mxu1 %vm122_vm1, %v49_v51 }
  0xac   :  { %v309_v55 = vpop.f32.mrf.mxu2 }
  0xad   :  { %v434_v56 = vpop.f32.mrf.mxu3  ;;  %v310_v57 = vadd.f32 %v975_v32, %v309_v55  ;;  %v486_v58 = vmax.f32 %v381_v54, 0.0 }
  0xaf   :  { %523 = vst.msk [vmem:[%s1188_s3 + $0x8] sm:$0xff] %vm521_vm2, %v486_v58  ;;  %v435_v59 = vadd.f32 %v434_v56, %v310_v57 }
  0xb0   :  { %v258_v60 = vpop.f32.mrf.mxu0  ;;  %v383_v61 = vpop.f32.mrf.mxu1 }
  0xb1   :  { %v504_v62 = vmax.f32 %v435_v59, 0.0  ;;  %v259_v63 = vadd.f32 %v975_v32, %v258_v60 }
  0xb3   :  { %541 = vst.msk [vmem:[%s1188_s3 + $0x98] sm:$0xff] %vm521_vm2, %v504_v62  ;;  %v384_v0 = vadd.f32 %v383_v61, %v259_v63 }
  0xb4   :  { %v312_v1 = vpop.f32.mrf.mxu2 }
  0xb5   :  { %v437_v2 = vpop.f32.mrf.mxu3  ;;  %v313_v3 = vadd.f32 %v975_v32, %v312_v1  ;;  %v487_v4 = vmax.f32 %v384_v0, 0.0 }
  0xb7   :  { %524 = vst.msk [vmem:[%s1188_s3 + $0x10] sm:$0xff] %vm521_vm2, %v487_v4  ;;  %v438_v5 = vadd.f32 %v437_v2, %v313_v3 }
  0xb8   :  { %v261_v6 = vpop.f32.mrf.mxu0  ;;  %v386_v7 = vpop.f32.mrf.mxu1 }
  0xb9   :  { %v505_v8 = vmax.f32 %v438_v5, 0.0  ;;  %v262_v9 = vadd.f32 %v975_v32, %v261_v6 }
  0xbb   :  { %542 = vst.msk [vmem:[%s1188_s3 + $0xa0] sm:$0xff] %vm521_vm2, %v505_v8  ;;  %v387_v10 = vadd.f32 %v386_v7, %v262_v9 }
  0xbc   :  { %v315_v11 = vpop.f32.mrf.mxu2 }
  0xbd   :  { %v440_v12 = vpop.f32.mrf.mxu3  ;;  %v316_v13 = vadd.f32 %v975_v32, %v315_v11  ;;  %v488_v14 = vmax.f32 %v387_v10, 0.0 }
  0xbf   :  { %525 = vst.msk [vmem:[%s1188_s3 + $0x18] sm:$0xff] %vm521_vm2, %v488_v14  ;;  %v441_v15 = vadd.f32 %v440_v12, %v316_v13 }
  0xc0   :  { %v264_v16 = vpop.f32.mrf.mxu0  ;;  %v389_v17 = vpop.f32.mrf.mxu1 }
  0xc1   :  { %v506_v18 = vmax.f32 %v441_v15, 0.0  ;;  %v265_v19 = vadd.f32 %v975_v32, %v264_v16 }
  0xc3   :  { %543 = vst.msk [vmem:[%s1188_s3 + $0xa8] sm:$0xff] %vm521_vm2, %v506_v18  ;;  %v390_v20 = vadd.f32 %v389_v17, %v265_v19 }
  0xc4   :  { %v318_v21 = vpop.f32.mrf.mxu2 }
  0xc5   :  { %v443_v22 = vpop.f32.mrf.mxu3  ;;  %v319_v23 = vadd.f32 %v975_v32, %v318_v21  ;;  %v489_v24 = vmax.f32 %v390_v20, 0.0 }
  0xc7   :  { %526 = vst.msk [vmem:[%s1188_s3 + $0x20] sm:$0xff] %vm521_vm2, %v489_v24  ;;  %v444_v25 = vadd.f32 %v443_v22, %v319_v23 }
  0xc8   :  { %v267_v26 = vpop.f32.mrf.mxu0  ;;  %v392_v27 = vpop.f32.mrf.mxu1 }
  0xc9   :  { %v507_v28 = vmax.f32 %v444_v25, 0.0  ;;  %v268_v29 = vadd.f32 %v975_v32, %v267_v26 }
  0xcb   :  { %544 = vst.msk [vmem:[%s1188_s3 + $0xb0] sm:$0xff] %vm521_vm2, %v507_v28  ;;  %v393_v30 = vadd.f32 %v392_v27, %v268_v29 }
  0xcc   :  { %v321_v31 = vpop.f32.mrf.mxu2 }
  0xcd   :  { %v446_v33 = vpop.f32.mrf.mxu3  ;;  %v322_v34 = vadd.f32 %v975_v32, %v321_v31  ;;  %v490_v35 = vmax.f32 %v393_v30, 0.0 }
  0xcf   :  { %527 = vst.msk [vmem:[%s1188_s3 + $0x28] sm:$0xff] %vm521_vm2, %v490_v35  ;;  %v447_v36 = vadd.f32 %v446_v33, %v322_v34 }
  0xd0   :  { %v270_v37 = vpop.f32.mrf.mxu0  ;;  %v395_v38 = vpop.f32.mrf.mxu1 }
  0xd1   :  { %v508_v39 = vmax.f32 %v447_v36, 0.0  ;;  %v271_v40 = vadd.f32 %v975_v32, %v270_v37 }
  0xd3   :  { %545 = vst.msk [vmem:[%s1188_s3 + $0xb8] sm:$0xff] %vm521_vm2, %v508_v39  ;;  %v396_v41 = vadd.f32 %v395_v38, %v271_v40 }
  0xd4   :  { %v324_v42 = vpop.f32.mrf.mxu2 }
  0xd5   :  { %v449_v43 = vpop.f32.mrf.mxu3  ;;  %v325_v44 = vadd.f32 %v975_v32, %v324_v42  ;;  %v491_v45 = vmax.f32 %v396_v41, 0.0 }
  0xd7   :  { %528 = vst.msk [vmem:[%s1188_s3 + $0x30] sm:$0xff] %vm521_vm2, %v491_v45  ;;  %v450_v46 = vadd.f32 %v449_v43, %v325_v44 }
  0xd8   :  { %v273_v47 = vpop.f32.mrf.mxu0  ;;  %v398_v48 = vpop.f32.mrf.mxu1 }
  0xd9   :  { %v509_v49 = vmax.f32 %v450_v46, 0.0  ;;  %v274_v50 = vadd.f32 %v975_v32, %v273_v47 }
  0xdb   :  { %546 = vst.msk [vmem:[%s1188_s3 + $0xc0] sm:$0xff] %vm521_vm2, %v509_v49  ;;  %v399_v51 = vadd.f32 %v398_v48, %v274_v50 }
  0xdc   :  { %v327_v52 = vpop.f32.mrf.mxu2 }
  0xdd   :  { %v452_v53 = vpop.f32.mrf.mxu3  ;;  %v328_v54 = vadd.f32 %v975_v32, %v327_v52  ;;  %v492_v55 = vmax.f32 %v399_v51, 0.0 }
  0xdf   :  { %529 = vst.msk [vmem:[%s1188_s3 + $0x38] sm:$0xff] %vm521_vm2, %v492_v55  ;;  %v453_v56 = vadd.f32 %v452_v53, %v328_v54 }
  0xe0   :  { %v276_v57 = vpop.f32.mrf.mxu0  ;;  %v401_v58 = vpop.f32.mrf.mxu1 }
  0xe1   :  { %v510_v59 = vmax.f32 %v453_v56, 0.0  ;;  %v277_v60 = vadd.f32 %v975_v32, %v276_v57 }
  0xe3   :  { %547 = vst.msk [vmem:[%s1188_s3 + $0xc8] sm:$0xff] %vm521_vm2, %v510_v59  ;;  %v402_v61 = vadd.f32 %v401_v58, %v277_v60 }
  0xe4   :  { %v330_v62 = vpop.f32.mrf.mxu2 }
  0xe5   :  { %v455_v63 = vpop.f32.mrf.mxu3  ;;  %v331_v0 = vadd.f32 %v975_v32, %v330_v62  ;;  %v493_v1 = vmax.f32 %v402_v61, 0.0 }
  0xe7   :  { %530 = vst.msk [vmem:[%s1188_s3 + $0x40] sm:$0xff] %vm521_vm2, %v493_v1  ;;  %v456_v2 = vadd.f32 %v455_v63, %v331_v0 }
  0xe8   :  { %v279_v3 = vpop.f32.mrf.mxu0  ;;  %v404_v4 = vpop.f32.mrf.mxu1 }
  0xe9   :  { %v511_v5 = vmax.f32 %v456_v2, 0.0  ;;  %v280_v6 = vadd.f32 %v975_v32, %v279_v3 }
  0xeb   :  { %548 = vst.msk [vmem:[%s1188_s3 + $0xd0] sm:$0xff] %vm521_vm2, %v511_v5  ;;  %v405_v7 = vadd.f32 %v404_v4, %v280_v6 }
  0xec   :  { %v333_v8 = vpop.f32.mrf.mxu2 }
  0xed   :  { %v458_v9 = vpop.f32.mrf.mxu3  ;;  %v334_v10 = vadd.f32 %v975_v32, %v333_v8  ;;  %v494_v11 = vmax.f32 %v405_v7, 0.0 }
  0xef   :  { %531 = vst.msk [vmem:[%s1188_s3 + $0x48] sm:$0xff] %vm521_vm2, %v494_v11  ;;  %v459_v12 = vadd.f32 %v458_v9, %v334_v10 }
  0xf0   :  { %v282_v13 = vpop.f32.mrf.mxu0  ;;  %v407_v14 = vpop.f32.mrf.mxu1 }
  0xf1   :  { %v512_v15 = vmax.f32 %v459_v12, 0.0  ;;  %v283_v16 = vadd.f32 %v975_v32, %v282_v13 }
  0xf3   :  { %549 = vst.msk [vmem:[%s1188_s3 + $0xd8] sm:$0xff] %vm521_vm2, %v512_v15  ;;  %v408_v17 = vadd.f32 %v407_v14, %v283_v16 }
  0xf4   :  { %v336_v18 = vpop.f32.mrf.mxu2 }
  0xf5   :  { %v461_v19 = vpop.f32.mrf.mxu3  ;;  %v337_v20 = vadd.f32 %v975_v32, %v336_v18  ;;  %v495_v21 = vmax.f32 %v408_v17, 0.0 }
  0xf7   :  { %532 = vst.msk [vmem:[%s1188_s3 + $0x50] sm:$0xff] %vm521_vm2, %v495_v21  ;;  %v462_v22 = vadd.f32 %v461_v19, %v337_v20 }
  0xf8   :  { %v285_v23 = vpop.f32.mrf.mxu0  ;;  %v410_v24 = vpop.f32.mrf.mxu1 }
  0xf9   :  { %v513_v25 = vmax.f32 %v462_v22, 0.0  ;;  %v286_v26 = vadd.f32 %v975_v32, %v285_v23 }
  0xfb   :  { %550 = vst.msk [vmem:[%s1188_s3 + $0xe0] sm:$0xff] %vm521_vm2, %v513_v25  ;;  %v411_v27 = vadd.f32 %v410_v24, %v286_v26 }
  0xfc   :  { %v339_v28 = vpop.f32.mrf.mxu2 }
  0xfd   :  { %v464_v29 = vpop.f32.mrf.mxu3  ;;  %v340_v30 = vadd.f32 %v975_v32, %v339_v28  ;;  %v496_v31 = vmax.f32 %v411_v27, 0.0 }
  0xff   :  { %533 = vst.msk [vmem:[%s1188_s3 + $0x58] sm:$0xff] %vm521_vm2, %v496_v31  ;;  %v465_v33 = vadd.f32 %v464_v29, %v340_v30 }
 0x100   :  { %v288_v34 = vpop.f32.mrf.mxu0  ;;  %v413_v35 = vpop.f32.mrf.mxu1 }
 0x101   :  { %v514_v36 = vmax.f32 %v465_v33, 0.0  ;;  %v289_v37 = vadd.f32 %v975_v32, %v288_v34 }
 0x103   :  { %551 = vst.msk [vmem:[%s1188_s3 + $0xe8] sm:$0xff] %vm521_vm2, %v514_v36  ;;  %v414_v38 = vadd.f32 %v413_v35, %v289_v37 }
 0x104   :  { %v342_v39 = vpop.f32.mrf.mxu2 }
 0x105   :  { %v467_v40 = vpop.f32.mrf.mxu3  ;;  %v343_v41 = vadd.f32 %v975_v32, %v342_v39  ;;  %v497_v42 = vmax.f32 %v414_v38, 0.0 }
 0x107   :  { %534 = vst.msk [vmem:[%s1188_s3 + $0x60] sm:$0xff] %vm521_vm2, %v497_v42  ;;  %v468_v43 = vadd.f32 %v467_v40, %v343_v41 }
 0x108   :  { %v291_v44 = vpop.f32.mrf.mxu0  ;;  %v416_v45 = vpop.f32.mrf.mxu1 }
 0x109   :  { %v515_v46 = vmax.f32 %v468_v43, 0.0  ;;  %v292_v47 = vadd.f32 %v975_v32, %v291_v44 }
 0x10b   :  { %552 = vst.msk [vmem:[%s1188_s3 + $0xf0] sm:$0xff] %vm521_vm2, %v515_v46  ;;  %v417_v48 = vadd.f32 %v416_v45, %v292_v47 }
 0x10c   :  { %v345_v49 = vpop.f32.mrf.mxu2 }
 0x10d   :  { %v470_v50 = vpop.f32.mrf.mxu3  ;;  %v346_v51 = vadd.f32 %v975_v32, %v345_v49  ;;  %v498_v52 = vmax.f32 %v417_v48, 0.0 }
 0x10f   :  { %535 = vst.msk [vmem:[%s1188_s3 + $0x68] sm:$0xff] %vm521_vm2, %v498_v52  ;;  %v471_v53 = vadd.f32 %v470_v50, %v346_v51 }
 0x110   :  { %v294_v54 = vpop.f32.mrf.mxu0  ;;  %v419_v55 = vpop.f32.mrf.mxu1 }
 0x111   :  { %v516_v56 = vmax.f32 %v471_v53, 0.0  ;;  %v295_v57 = vadd.f32 %v975_v32, %v294_v54 }
 0x113   :  { %553 = vst.msk [vmem:[%s1188_s3 + $0xf8] sm:$0xff] %vm521_vm2, %v516_v56  ;;  %v420_v58 = vadd.f32 %v419_v55, %v295_v57 }
 0x114   :  { %v348_v59 = vpop.f32.mrf.mxu2 }
 0x115   :  { %v473_v60 = vpop.f32.mrf.mxu3  ;;  %v349_v61 = vadd.f32 %v975_v32, %v348_v59  ;;  %v499_v62 = vmax.f32 %v420_v58, 0.0 }
 0x117   :  { %536 = vst.msk [vmem:[%s1188_s3 + $0x70] sm:$0xff] %vm521_vm2, %v499_v62  ;;  %v474_v63 = vadd.f32 %v473_v60, %v349_v61 }
 0x118   :  { %v297_v0 = vpop.f32.mrf.mxu0  ;;  %v422_v1 = vpop.f32.mrf.mxu1 }
 0x119   :  { %v517_v2 = vmax.f32 %v474_v63, 0.0  ;;  %v298_v3 = vadd.f32 %v975_v32, %v297_v0 }
 0x11b   :  { %554 = vst.msk [vmem:[%s1188_s3 + $0x100] sm:$0xff] %vm521_vm2, %v517_v2  ;;  %v423_v4 = vadd.f32 %v422_v1, %v298_v3 }
 0x11c   :  { %v351_v5 = vpop.f32.mrf.mxu2 }
 0x11d   :  { %v476_v6 = vpop.f32.mrf.mxu3  ;;  %v352_v7 = vadd.f32 %v975_v32, %v351_v5  ;;  %v500_v8 = vmax.f32 %v423_v4, 0.0 }
 0x11f   :  { %537 = vst.msk [vmem:[%s1188_s3 + $0x78] sm:$0xff] %vm521_vm2, %v500_v8  ;;  %v477_v9 = vadd.f32 %v476_v6, %v352_v7 }
 0x120   :  { %v300_v10 = vpop.f32.mrf.mxu0  ;;  %v425_v11 = vpop.f32.mrf.mxu1 }
 0x121   :  { %v518_v12 = vmax.f32 %v477_v9, 0.0  ;;  %v301_v13 = vadd.f32 %v975_v32, %v300_v10 }
 0x123   :  { %555 = vst.msk [vmem:[%s1188_s3 + $0x108] sm:$0xff] %vm521_vm2, %v518_v12  ;;  %v426_v14 = vadd.f32 %v425_v11, %v301_v13 }
 0x124   :  { %v354_v15 = vpop.f32.mrf.mxu2 }
 0x125   :  { %v479_v16 = vpop.f32.mrf.mxu3  ;;  %v355_v17 = vadd.f32 %v975_v32, %v354_v15  ;;  %v501_v18 = vmax.f32 %v426_v14, 0.0 }
 0x127   :  { %538 = vst.msk [vmem:[%s1188_s3 + $0x80] sm:$0xff] %vm521_vm2, %v501_v18  ;;  %v480_v19 = vadd.f32 %v479_v16, %v355_v17 }
 0x128   :  { %v303_v20 = vpop.f32.mrf.mxu0  ;;  %v428_v21 = vpop.f32.mrf.mxu1 }
 0x129   :  { %v519_v22 = vmax.f32 %v480_v19, 0.0  ;;  %v304_v23 = vadd.f32 %v975_v32, %v303_v20 }
 0x12b   :  { %556 = vst.msk [vmem:[%s1188_s3 + $0x110] sm:$0xff] %vm521_vm2, %v519_v22  ;;  %v429_v24 = vadd.f32 %v428_v21, %v304_v23 }
 0x12c   :  { %v357_v25 = vpop.f32.mrf.mxu2 }
 0x12d   :  { %v482_v26 = vpop.f32.mrf.mxu3  ;;  %v358_v27 = vadd.f32 %v975_v32, %v357_v25  ;;  %v502_v28 = vmax.f32 %v429_v24, 0.0 }
 0x12f   :  { %539 = vst.msk [vmem:[%s1188_s3 + $0x88] sm:$0xff] %vm521_vm2, %v502_v28  ;;  %v483_v29 = vadd.f32 %v482_v26, %v358_v27 }
 0x131   :  { %v520_v30 = vmax.f32 %v483_v29, 0.0 }
 0x133   :  { %557 = vst.msk [vmem:[%s1188_s3 + $0x118] sm:$0xff] %vm521_vm2, %v520_v30 }

// kernel: fruit_classifier_forward.6
= control target key start
LH: loop header
LB: loop body
LE: loop exit
PB: predicated region body
PF: predicated region fallthrough
CT: control target
= control target key end

     0   :  { %vm128_vm0 = vcmask 719872   ;;  %vm340_vm1 = vcmask 261120   ;;  %s764_s1 = inlined_call_operand.vmem [shape: f32[600,32], index: 1, kind: input, shape index: {}]   ;;  %s765_s2 = inlined_call_operand.vmem [shape: f32[1,32], index: 2, kind: input, shape index: {}]   ;;  %s766_s0 = inlined_call_operand.vmem [shape: f32[56,600], index: 0, kind: input, shape index: {}]   ;;  %s767_s3 = inlined_call_operand.vmem [shape: f32[56,32], index: 3, kind: output, shape index: {}]  }
   0x1   :  { %v64_v0 = vld [vmem:[%s764_s1 + $0x78] sm:$0xff]  ;;  %v63_v1 = vld [vmem:[%s764_s1 + $0x70] sm:$0xff]  ;;  %v62_v2 = vld [vmem:[%s764_s1 + $0x68] sm:$0xff] }
   0x2   :  { %359 = vmatpush.msra.mxu1 %v64_v0  ;;  %150 = vmatpush.msra.mxu0 %v64_v0  ;;  %v61_v3 = vld [vmem:[%s764_s1 + $0x60] sm:$0xff]  ;;  %v96_v4 = vld [vmem:[%s764_s1 + $0x178] sm:$0xff]  ;;  %v95_v5 = vld [vmem:[%s764_s1 + $0x170] sm:$0xff] }
   0x3   :  { %v60_v6 = vld [vmem:[%s764_s1 + $0x58] sm:$0xff]  ;;  %226 = vmatpush.msra.mxu2 %v96_v4  ;;  %v94_v8 = vld [vmem:[%s764_s1 + $0x168] sm:$0xff]  ;;  %v111_v9 = vld [vmem:[%s764_s1 + $0x1f0] sm:$0xff] }
   0x4   :  { %360 = vmatpush.msra.mxu1 %v63_v1  ;;  %151 = vmatpush.msra.mxu0 %v63_v1  ;;  %v112_v7 = vld [vmem:[%s764_s1 + $0x1f8] sm:$0xff]  ;;  %v59_v10 = vld [vmem:[%s764_s1 + $0x50] sm:$0xff]  ;;  %v93_v11 = vld [vmem:[%s764_s1 + $0x160] sm:$0xff] }
   0x5   :  { %227 = vmatpush.msra.mxu2 %v95_v5  ;;  %264 = vmatpush.msra.mxu3 %v112_v7  ;;  %v110_v12 = vld [vmem:[%s764_s1 + $0x1e8] sm:$0xff]  ;;  %v92_v14 = vld [vmem:[%s764_s1 + $0x158] sm:$0xff]  ;;  %v109_v15 = vld [vmem:[%s764_s1 + $0x1e0] sm:$0xff] }
   0x6   :  { %361 = vmatpush.msra.mxu1 %v62_v2  ;;  %152 = vmatpush.msra.mxu0 %v62_v2  ;;  %v58_v13 = vld [vmem:[%s764_s1 + $0x48] sm:$0xff]  ;;  %v57_v16 = vld [vmem:[%s764_s1 + $0x40] sm:$0xff]  ;;  %v91_v17 = vld [vmem:[%s764_s1 + $0x150] sm:$0xff] }
   0x7   :  { %228 = vmatpush.msra.mxu2 %v94_v8  ;;  %265 = vmatpush.msra.mxu3 %v111_v9  ;;  %v108_v18 = vld [vmem:[%s764_s1 + $0x1d8] sm:$0xff]  ;;  %v90_v20 = vld [vmem:[%s764_s1 + $0x148] sm:$0xff]  ;;  %v107_v21 = vld [vmem:[%s764_s1 + $0x1d0] sm:$0xff] }
   0x8   :  { %362 = vmatpush.msra.mxu1 %v61_v3  ;;  %153 = vmatpush.msra.mxu0 %v61_v3  ;;  %v56_v19 = vld [vmem:[%s764_s1 + $0x38] sm:$0xff]  ;;  %v55_v22 = vld [vmem:[%s764_s1 + $0x30] sm:$0xff]  ;;  %v89_v23 = vld [vmem:[%s764_s1 + $0x140] sm:$0xff] }
   0x9   :  { %229 = vmatpush.msra.mxu2 %v93_v11  ;;  %266 = vmatpush.msra.mxu3 %v110_v12  ;;  %v106_v24 = vld [vmem:[%s764_s1 + $0x1c8] sm:$0xff]  ;;  %v88_v26 = vld [vmem:[%s764_s1 + $0x138] sm:$0xff]  ;;  %v105_v27 = vld [vmem:[%s764_s1 + $0x1c0] sm:$0xff] }
   0xa   :  { %363 = vmatpush.msra.mxu1 %v60_v6  ;;  %154 = vmatpush.msra.mxu0 %v60_v6  ;;  %v54_v25 = vld [vmem:[%s764_s1 + $0x28] sm:$0xff]  ;;  %v53_v28 = vld [vmem:[%s764_s1 + $0x20] sm:$0xff]  ;;  %v87_v29 = vld [vmem:[%s764_s1 + $0x130] sm:$0xff] }
   0xb   :  { %230 = vmatpush.msra.mxu2 %v92_v14  ;;  %267 = vmatpush.msra.mxu3 %v109_v15  ;;  %v104_v30 = vld [vmem:[%s764_s1 + $0x1b8] sm:$0xff]  ;;  %v86_v32 = vld [vmem:[%s764_s1 + $0x128] sm:$0xff]  ;;  %v103_v33 = vld [vmem:[%s764_s1 + $0x1b0] sm:$0xff] }
   0xc   :  { %364 = vmatpush.msra.mxu1 %v59_v10  ;;  %155 = vmatpush.msra.mxu0 %v59_v10  ;;  %v52_v31 = vld [vmem:[%s764_s1 + $0x18] sm:$0xff]  ;;  %v51_v34 = vld [vmem:[%s764_s1 + $0x10] sm:$0xff]  ;;  %v85_v35 = vld [vmem:[%s764_s1 + $0x120] sm:$0xff] }
   0xd   :  { %231 = vmatpush.msra.mxu2 %v91_v17  ;;  %268 = vmatpush.msra.mxu3 %v108_v18  ;;  %v102_v36 = vld [vmem:[%s764_s1 + $0x1a8] sm:$0xff]  ;;  %v84_v38 = vld [vmem:[%s764_s1 + $0x118] sm:$0xff]  ;;  %v101_v39 = vld [vmem:[%s764_s1 + $0x1a0] sm:$0xff] }
   0xe   :  { %365 = vmatpush.msra.mxu1 %v58_v13  ;;  %156 = vmatpush.msra.mxu0 %v58_v13  ;;  %v50_v37 = vld [vmem:[%s764_s1 + $0x8] sm:$0xff]  ;;  %v49_v40 = vld [vmem:[%s764_s1] sm:$0xff]  ;;  %v29_v41 = vld [vmem:[%s766_s0 + $0x78] sm:$0xff] }
   0xf   :  { %232 = vmatpush.msra.mxu2 %v90_v20  ;;  %269 = vmatpush.msra.mxu3 %v107_v21  ;;  %v14_v42 = vld [vmem:[%s766_s0] sm:$0xff]  ;;  %v80_v43 = vld [vmem:[%s764_s1 + $0xf8] sm:$0xff]  ;;  %v123_v44 = vld [vmem:[%s764_s1 + $0x250] sm:$0xff] }
  0x10   :  { %366 = vmatpush.msra.mxu1 %v57_v16  ;;  %157 = vmatpush.msra.mxu0 %v57_v16  ;;  %v83_v45 = vld [vmem:[%s764_s1 + $0x110] sm:$0xff]  ;;  %v100_v46 = vld [vmem:[%s764_s1 + $0x198] sm:$0xff]  ;;  %v122_v48 = vld [vmem:[%s764_s1 + $0x248] sm:$0xff] }
  0x11   :  { %233 = vmatpush.msra.mxu2 %v89_v23  ;;  %270 = vmatpush.msra.mxu3 %v106_v24  ;;  %v79_v47 = vld [vmem:[%s764_s1 + $0xf0] sm:$0xff]  ;;  %v82_v49 = vld [vmem:[%s764_s1 + $0x108] sm:$0xff]  ;;  %v121_v52 = vld [vmem:[%s764_s1 + $0x240] sm:$0xff] }
  0x12   :  { %367 = vmatpush.msra.mxu1 %v56_v19  ;;  %158 = vmatpush.msra.mxu0 %v56_v19  ;;  %v99_v50 = vld [vmem:[%s764_s1 + $0x190] sm:$0xff]  ;;  %v78_v51 = vld [vmem:[%s764_s1 + $0xe8] sm:$0xff]  ;;  %v81_v53 = vld [vmem:[%s764_s1 + $0x100] sm:$0xff] }
  0x13   :  { %234 = vmatpush.msra.mxu2 %v88_v26  ;;  %271 = vmatpush.msra.mxu3 %v105_v27  ;;  %v98_v54 = vld [vmem:[%s764_s1 + $0x188] sm:$0xff]  ;;  %v77_v55 = vld [vmem:[%s764_s1 + $0xe0] sm:$0xff]  ;;  %v120_v56 = vld [vmem:[%s764_s1 + $0x238] sm:$0xff] }
  0x14   :  { %368 = vmatpush.msra.mxu1 %v55_v22  ;;  %159 = vmatpush.msra.mxu0 %v55_v22  ;;  %v34_v57 = vld [vmem:[%s766_s0 + $0xa0] sm:$0xff]  ;;  %v19_v58 = vld [vmem:[%s766_s0 + $0x28] sm:$0xff]  ;;  %v76_v59 = vld [vmem:[%s764_s1 + $0xd8] sm:$0xff] }
  0x15   :  { %235 = vmatpush.msra.mxu2 %v87_v29  ;;  %272 = vmatpush.msra.mxu3 %v104_v30  ;;  %v119_v60 = vld [vmem:[%s764_s1 + $0x230] sm:$0xff]  ;;  %v97_v62 = vld [vmem:[%s764_s1 + $0x180] sm:$0xff]  ;;  %v118_v0 = vld [vmem:[%s764_s1 + $0x228] sm:$0xff] }
  0x16   :  { %369 = vmatpush.msra.mxu1 %v54_v25  ;;  %160 = vmatpush.msra.mxu0 %v54_v25  ;;  %v16_v61 = vld [vmem:[%s766_s0 + $0x10] sm:$0xff]  ;;  %v17_v1 = vld [vmem:[%s766_s0 + $0x18] sm:$0xff]  ;;  %v74_v2 = vld [vmem:[%s764_s1 + $0xc8] sm:$0xff] }
  0x17   :  { %236 = vmatpush.msra.mxu2 %v86_v32  ;;  %273 = vmatpush.msra.mxu3 %v103_v33  ;;  %v75_v63 = vld [vmem:[%s764_s1 + $0xd0] sm:$0xff]  ;;  %v117_v3 = vld [vmem:[%s764_s1 + $0x220] sm:$0xff]  ;;  %v116_v5 = vld [vmem:[%s764_s1 + $0x218] sm:$0xff] }
  0x18   :  { %370 = vmatpush.msra.mxu1 %v53_v28  ;;  %161 = vmatpush.msra.mxu0 %v53_v28  ;;  %v73_v4 = vld [vmem:[%s764_s1 + $0xc0] sm:$0xff]  ;;  %v39_v6 = vld [vmem:[%s766_s0 + $0xc8] sm:$0xff]  ;;  %v24_v7 = vld [vmem:[%s766_s0 + $0x50] sm:$0xff] }
  0x19   :  { %237 = vmatpush.msra.mxu2 %v85_v35  ;;  %274 = vmatpush.msra.mxu3 %v102_v36  ;;  %v72_v8 = vld [vmem:[%s764_s1 + $0xb8] sm:$0xff]  ;;  %v115_v9 = vld [vmem:[%s764_s1 + $0x210] sm:$0xff]  ;;  %v114_v12 = vld [vmem:[%s764_s1 + $0x208] sm:$0xff] }
  0x1a   :  { %371 = vmatpush.msra.mxu1 %v52_v31  ;;  %162 = vmatpush.msra.mxu0 %v52_v31  ;;  %v21_v10 = vld [vmem:[%s766_s0 + $0x38] sm:$0xff]  ;;  %v71_v11 = vld [vmem:[%s764_s1 + $0xb0] sm:$0xff]  ;;  %v22_v13 = vld [vmem:[%s766_s0 + $0x40] sm:$0xff] }
  0x1b   :  { %238 = vmatpush.msra.mxu2 %v84_v38  ;;  %275 = vmatpush.msra.mxu3 %v101_v39  ;;  %v70_v14 = vld [vmem:[%s764_s1 + $0xa8] sm:$0xff]  ;;  %v113_v15 = vld [vmem:[%s764_s1 + $0x200] sm:$0xff]  ;;  %v44_v17 = vld [vmem:[%s766_s0 + $0xf0] sm:$0xff] }
  0x1c   :  { %372 = vmatpush.msra.mxu1 %v51_v34  ;;  %163 = vmatpush.msra.mxu0 %v51_v34  ;;  %v69_v16 = vld [vmem:[%s764_s1 + $0xa0] sm:$0xff]  ;;  %v68_v19 = vld [vmem:[%s764_s1 + $0x98] sm:$0xff]  ;;  %v67_v21 = vld [vmem:[%s764_s1 + $0x90] sm:$0xff] }
  0x1d   :  { %239 = vmatpush.msra.mxu2 %v83_v45  ;;  %276 = vmatpush.msra.mxu3 %v100_v46  ;;  %v18_v18 = vld [vmem:[%s766_s0 + $0x20] sm:$0xff]  ;;  %v27_v22 = vld [vmem:[%s766_s0 + $0x68] sm:$0xff]  ;;  %v32_v28 = vld [vmem:[%s766_s0 + $0x90] sm:$0xff] }
  0x1e   :  { %373 = vmatpush.msra.mxu1 %v50_v37  ;;  %164 = vmatpush.msra.mxu0 %v50_v37  ;;  %v26_v20 = vld [vmem:[%s766_s0 + $0x60] sm:$0xff]  ;;  %v66_v23 = vld [vmem:[%s764_s1 + $0x88] sm:$0xff]  ;;  %v20_v29 = vld [vmem:[%s766_s0 + $0x30] sm:$0xff] }
  0x1f   :  { %240 = vmatpush.msra.mxu2 %v82_v49  ;;  %277 = vmatpush.msra.mxu3 %v99_v50  ;;  %v65_v24 = vld [vmem:[%s764_s1 + $0x80] sm:$0xff]  ;;  %v15_v25 = vld [vmem:[%s766_s0 + $0x8] sm:$0xff]  ;;  %v28_v30 = vld [vmem:[%s766_s0 + $0x70] sm:$0xff] }
  0x20   :  { %374 = vmatpush.msra.mxu1 %v49_v40  ;;  %165 = vmatpush.msra.mxu0 %v49_v40  ;;  %v23_v26 = vld [vmem:[%s766_s0 + $0x48] sm:$0xff]  ;;  %v36_v31 = vld [vmem:[%s766_s0 + $0xb0] sm:$0xff]  ;;  %v37_v32 = vld [vmem:[%s766_s0 + $0xb8] sm:$0xff] }
  0x21   :  { %175 = vmatmul.f32.vlgmr.msra.gmra.mxu1 %v29_v41  ;;  %166 = vmatmul.f32.vlgmr.msra.gmra.mxu0 %v14_v42  ;;  %v31_v27 = vld [vmem:[%s766_s0 + $0x88] sm:$0xff]  ;;  %v25_v33 = vld [vmem:[%s766_s0 + $0x58] sm:$0xff]  ;;  %v42_v36 = vld [vmem:[%s766_s0 + $0xe0] sm:$0xff] }
  0x22   :  { %188 = vmatpush.msrb.mxu1 %v80_v43  ;;  %307 = vmatpush.msrb.mxu0 %v123_v44  ;;  %v33_v34 = vld [vmem:[%s766_s0 + $0x98] sm:$0xff]  ;;  %v30_v37 = vld [vmem:[%s766_s0 + $0x80] sm:$0xff]  ;;  %v47_v40 = vld [vmem:[%s766_s0 + $0x108] sm:$0xff] }
  0x23   :  { %241 = vmatpush.msra.mxu2 %v81_v53  ;;  %278 = vmatpush.msra.mxu3 %v98_v54  ;;  %v41_v35 = vld [vmem:[%s766_s0 + $0xd8] sm:$0xff]  ;;  %v38_v38 = vld [vmem:[%s766_s0 + $0xc0] sm:$0xff]  ;;  %v35_v41 = vld [vmem:[%s766_s0 + $0xa8] sm:$0xff] }
  0x24   :  { %189 = vmatpush.msrb.mxu1 %v79_v47  ;;  %308 = vmatpush.msrb.mxu0 %v122_v48  ;;  %v46_v39 = vld [vmem:[%s766_s0 + $0x100] sm:$0xff]  ;;  %v43_v42 = vld [vmem:[%s766_s0 + $0xe8] sm:$0xff]  ;;  %v40_v43 = vld [vmem:[%s766_s0 + $0xd0] sm:$0xff] }
  0x25   :  { %242 = vmatmul.f32.vlgmr.msra.gmra.mxu2 %v16_v61  ;;  %279 = vmatpush.msra.mxu3 %v97_v62  ;;  %v48_v44 = vld [vmem:[%s766_s0 + $0x110] sm:$0xff]  ;;  %v45_v45 = vld [vmem:[%s766_s0 + $0xf8] sm:$0xff] }
  0x26   :  { %190 = vmatpush.msrb.mxu1 %v78_v51  ;;  %309 = vmatpush.msrb.mxu0 %v121_v52 }
  0x27   :  { %280 = vmatmul.f32.vlgmr.msra.gmra.mxu3 %v17_v1 }
  0x28   :  { %191 = vmatpush.msrb.mxu1 %v77_v55  ;;  %310 = vmatpush.msrb.mxu0 %v120_v56  ;;  %v375_v56 = vld [vmem:[%s765_s2] ss:$0 sm:$0xff] }
  0x29   :  { %178 = vmatmul.f32.gmra.mxu1 %v34_v57  ;;  %169 = vmatmul.f32.gmra.mxu0 %v19_v58 }
  0x2a   :  { %192 = vmatpush.msrb.mxu1 %v76_v59  ;;  %311 = vmatpush.msrb.mxu0 %v119_v60 }
  0x2c   :  { %193 = vmatpush.msrb.mxu1 %v75_v63  ;;  %312 = vmatpush.msrb.mxu0 %v118_v0 }
  0x2d   :  { %245 = vmatmul.f32.gmra.mxu2 %v21_v10 }
  0x2e   :  { %194 = vmatpush.msrb.mxu1 %v74_v2  ;;  %313 = vmatpush.msrb.mxu0 %v117_v3 }
  0x2f   :  { %283 = vmatmul.f32.gmra.mxu3 %v22_v13 }
  0x30   :  { %195 = vmatpush.msrb.mxu1 %v73_v4  ;;  %314 = vmatpush.msrb.mxu0 %v116_v5 }
  0x31   :  { %181 = vmatmul.f32.gmra.mxu1 %v39_v6  ;;  %172 = vmatmul.f32.gmra.mxu0 %v24_v7 }
  0x32   :  { %196 = vmatpush.msrb.mxu1 %v72_v8  ;;  %315 = vmatpush.msrb.mxu0 %v115_v9 }
  0x34   :  { %197 = vmatpush.msrb.mxu1 %v71_v11  ;;  %316 = vmatpush.msrb.mxu0 %v114_v12 }
  0x35   :  { %248 = vmatmul.f32.gmra.mxu2 %v26_v20 }
  0x36   :  { %198 = vmatpush.msrb.mxu1 %v70_v14  ;;  %317 = vmatpush.msrb.mxu0 %v113_v15 }
  0x37   :  { %286 = vmatmul.f32.gmra.mxu3 %v27_v22 }
  0x38   :  { %199 = vmatpush.msrb.mxu1 %v69_v16 }
  0x39   :  { %184 = vmatmul.f32.gmra.mxu1 %v44_v17  ;;  %352 = vmatmul.msk.f32.vlgmr.msrb.gmra.mxu0 %vm128_vm0, %v18_v18 }
  0x3a   :  { %200 = vmatpush.msrb.mxu1 %v68_v19 }
  0x3c   :  { %201 = vmatpush.msrb.mxu1 %v67_v21 }
  0x3d   :  { %251 = vmatmul.f32.gmra.mxu2 %v31_v27 }
  0x3e   :  { %202 = vmatpush.msrb.mxu1 %v66_v23 }
  0x3f   :  { %289 = vmatmul.f32.gmra.mxu3 %v32_v28 }
  0x40   :  { %203 = vmatpush.msrb.mxu1 %v65_v24 }
  0x41   :  { %204 = vmatmul.f32.vlgmr.msrb.gmra.mxu1 %v15_v25  ;;  %353 = vmatmul.msk.f32.gmra.mxu0 %vm128_vm0, %v23_v26 }
  0x45   :  { %254 = vmatmul.f32.gmra.mxu2 %v36_v31 }
  0x47   :  { %292 = vmatmul.f32.gmra.mxu3 %v37_v32 }
  0x49   :  { %207 = vmatmul.f32.gmra.mxu1 %v20_v29  ;;  %354 = vmatmul.msk.f32.gmra.mxu0 %vm128_vm0, %v28_v30 }
  0x4d   :  { %257 = vmatmul.f32.gmra.mxu2 %v41_v35 }
  0x4f   :  { %295 = vmatmul.f32.gmra.mxu3 %v42_v36 }
  0x51   :  { %210 = vmatmul.f32.gmra.mxu1 %v25_v33  ;;  %355 = vmatmul.msk.f32.gmra.mxu0 %vm128_vm0, %v33_v34 }
  0x55   :  { %260 = vmatmul.f32.gmra.mxu2 %v46_v39 }
  0x57   :  { %298 = vmatmul.f32.gmra.mxu3 %v47_v40 }
  0x59   :  { %213 = vmatmul.f32.gmra.mxu1 %v30_v37  ;;  %356 = vmatmul.msk.f32.gmra.mxu0 %vm128_vm0, %v38_v38 }
  0x61   :  { %216 = vmatmul.f32.gmra.mxu1 %v35_v41  ;;  %357 = vmatmul.msk.f32.gmra.mxu0 %vm128_vm0, %v43_v42 }
  0x69   :  { %219 = vmatmul.f32.gmra.mxu1 %v40_v43  ;;  %358 = vmatmul.msk.f32.gmra.mxu0 %vm128_vm0, %v48_v44 }
  0x71   :  { %222 = vmatmul.f32.gmra.mxu1 %v45_v45 }
  0x9e   :  { %v176_v46 = vpop.f32.mrf.mxu1  ;;  %v167_v47 = vpop.f32.mrf.mxu0 }
  0x9f   :  { %v168_v58 = vadd.f32 %v375_v56, %v167_v47  ;;  %v177_v19 = vadd.f32 %v375_v56, %v176_v46 }
  0xa6   :  { %v179_v48 = vpop.f32.mrf.mxu1  ;;  %v170_v49 = vpop.f32.mrf.mxu0 }
  0xa7   :  { %v171_v1 = vadd.f32 %v375_v56, %v170_v49  ;;  %v180_v27 = vadd.f32 %v375_v56, %v179_v48 }
  0xa8   :  { %v243_v52 = vpop.f32.mrf.mxu2 }
  0xaa   :  { %v281_v53 = vpop.f32.mrf.mxu3 }
  0xae   :  { %v182_v50 = vpop.f32.mrf.mxu1  ;;  %v173_v51 = vpop.f32.mrf.mxu0 }
  0xaf   :  { %v174_v10 = vadd.f32 %v375_v56, %v173_v51  ;;  %v183_v35 = vadd.f32 %v375_v56, %v182_v50 }
  0xb0   :  { %v246_v57 = vpop.f32.mrf.mxu2 }
  0xb2   :  { %v284_v60 = vpop.f32.mrf.mxu3 }
  0xb6   :  { %v185_v54 = vpop.f32.mrf.mxu1  ;;  %v319_v55 = vpop.f32.mrf.mxu0 }
  0xb7   :  { %v186_v43 = vadd.f32 %v375_v56, %v185_v54 }
  0xb8   :  { %v249_v4 = vpop.f32.mrf.mxu2 }
  0xba   :  { %v287_v6 = vpop.f32.mrf.mxu3 }
  0xbe   :  { %v205_v59 = vpop.f32.mrf.mxu1  ;;  %v322_v62 = vpop.f32.mrf.mxu0 }
  0xbf   :  { %v206_v61 = vadd.f32 %v205_v59, %v168_v58 }
  0xc0   :  { %v252_v14 = vpop.f32.mrf.mxu2 }
  0xc1   :  { %v244_v63 = vadd.f32 %v243_v52, %v206_v61 }
  0xc2   :  { %v290_v16 = vpop.f32.mrf.mxu3 }
  0xc3   :  { %v282_v0 = vadd.f32 %v281_v53, %v244_v63 }
  0xc5   :  { %v320_v2 = vadd.f32 %v319_v55, %v282_v0 }
  0xc6   :  { %v208_v3 = vpop.f32.mrf.mxu1  ;;  %v325_v8 = vpop.f32.mrf.mxu0 }
  0xc7   :  { %341 = vst.msk [vmem:[%s767_s3] sm:$0xff] %vm340_vm1, %v320_v2  ;;  %v209_v5 = vadd.f32 %v208_v3, %v171_v1 }
  0xc8   :  { %v255_v24 = vpop.f32.mrf.mxu2 }
  0xc9   :  { %v247_v7 = vadd.f32 %v246_v57, %v209_v5 }
  0xca   :  { %v293_v26 = vpop.f32.mrf.mxu3 }
  0xcb   :  { %v285_v9 = vadd.f32 %v284_v60, %v247_v7 }
  0xcd   :  { %v323_v11 = vadd.f32 %v322_v62, %v285_v9 }
  0xce   :  { %v211_v12 = vpop.f32.mrf.mxu1  ;;  %v328_v18 = vpop.f32.mrf.mxu0 }
  0xcf   :  { %342 = vst.msk [vmem:[%s767_s3 + $0x8] sm:$0xff] %vm340_vm1, %v323_v11  ;;  %v212_v13 = vadd.f32 %v211_v12, %v174_v10 }
  0xd0   :  { %v258_v34 = vpop.f32.mrf.mxu2 }
  0xd1   :  { %v250_v15 = vadd.f32 %v249_v4, %v212_v13 }
  0xd2   :  { %v296_v38 = vpop.f32.mrf.mxu3 }
  0xd3   :  { %v288_v17 = vadd.f32 %v287_v6, %v250_v15 }
  0xd5   :  { %v326_v20 = vadd.f32 %v325_v8, %v288_v17 }
  0xd6   :  { %v214_v21 = vpop.f32.mrf.mxu1  ;;  %v331_v30 = vpop.f32.mrf.mxu0 }
  0xd7   :  { %343 = vst.msk [vmem:[%s767_s3 + $0x10] sm:$0xff] %vm340_vm1, %v326_v20  ;;  %v215_v22 = vadd.f32 %v214_v21, %v177_v19 }
  0xd8   :  { %v261_v46 = vpop.f32.mrf.mxu2 }
  0xd9   :  { %v253_v23 = vadd.f32 %v252_v14, %v215_v22 }
  0xda   :  { %v299_v48 = vpop.f32.mrf.mxu3 }
  0xdb   :  { %v291_v25 = vadd.f32 %v290_v16, %v253_v23 }
  0xdd   :  { %v329_v28 = vadd.f32 %v328_v18, %v291_v25 }
  0xde   :  { %v217_v29 = vpop.f32.mrf.mxu1  ;;  %v334_v40 = vpop.f32.mrf.mxu0 }
  0xdf   :  { %344 = vst.msk [vmem:[%s767_s3 + $0x18] sm:$0xff] %vm340_vm1, %v329_v28  ;;  %v218_v31 = vadd.f32 %v217_v29, %v180_v27 }
  0xe1   :  { %v256_v32 = vadd.f32 %v255_v24, %v218_v31 }
  0xe3   :  { %v294_v33 = vadd.f32 %v293_v26, %v256_v32 }
  0xe5   :  { %v332_v36 = vadd.f32 %v331_v30, %v294_v33 }
  0xe6   :  { %v220_v37 = vpop.f32.mrf.mxu1  ;;  %v337_v50 = vpop.f32.mrf.mxu0 }
  0xe7   :  { %345 = vst.msk [vmem:[%s767_s3 + $0x20] sm:$0xff] %vm340_vm1, %v332_v36  ;;  %v221_v39 = vadd.f32 %v220_v37, %v183_v35 }
  0xe9   :  { %v259_v41 = vadd.f32 %v258_v34, %v221_v39 }
  0xeb   :  { %v297_v42 = vadd.f32 %v296_v38, %v259_v41 }
  0xed   :  { %v335_v44 = vadd.f32 %v334_v40, %v297_v42 }
  0xee   :  { %v223_v45 = vpop.f32.mrf.mxu1 }
  0xef   :  { %346 = vst.msk [vmem:[%s767_s3 + $0x28] sm:$0xff] %vm340_vm1, %v335_v44  ;;  %v224_v47 = vadd.f32 %v223_v45, %v186_v43 }
  0xf1   :  { %v262_v49 = vadd.f32 %v261_v46, %v224_v47 }
  0xf3   :  { %v300_v51 = vadd.f32 %v299_v48, %v262_v49 }
  0xf5   :  { %v338_v52 = vadd.f32 %v337_v50, %v300_v51 }
  0xf7   :  { %347 = vst.msk [vmem:[%s767_s3 + $0x30] sm:$0xff] %vm340_vm1, %v338_v52 }

// kernel: fruit_classifier_forward.7
= control target key start
LH: loop header
LB: loop body
LE: loop exit
PB: predicated region body
PF: predicated region fallthrough
CT: control target
= control target key end

     0   :  { %vm437_vm0 = vcmask 261120   ;;  %vm1059_vm1 = vcmask 130048   ;;  %vm1143_vm2 = vcmask 80896   ;;  %s2638_s1 = inlined_call_operand.vmem [shape: f32[800,400], index: 1, kind: input, shape index: {}]   ;;  %s2639_s0 = inlined_call_operand.vmem [shape: f32[8,800], index: 0, kind: input, shape index: {}]   ;;  %s2640_s2 = inlined_call_operand.vmem [shape: f32[1,400], index: 2, kind: input, shape index: {}]   ;;  %s2641_s3 = inlined_call_operand.vmem [shape: f32[400,10], index: 3, kind: input, shape index: {}]   ;;  %s2642_s4 = inlined_call_operand.vmem [shape: f32[1,10], index: 4, kind: input, shape index: {}]   ;;  %s2643_s5 = inlined_call_operand.vmem [shape: f32[8,10], index: 5, kind: output, shape index: {}]  }
   0x1   :  { %v87_v0 = vld [vmem:[%s2638_s1 + $0x1e0] sm:$0xff] }
   0x2   :  { %v151_v1 = vld [vmem:[%s2638_s1 + $0x3e0] sm:$0xff]  ;;  %441 = vmatpush.msra.mxu0 %v87_v0 }
   0x3   :  { %v215_v2 = vld [vmem:[%s2638_s1 + $0x5e0] sm:$0xff]  ;;  %461 = vmatpush.msra.mxu1 %v151_v1 }
   0x4   :  { %v279_v3 = vld [vmem:[%s2638_s1 + $0x7e0] sm:$0xff]  ;;  %481 = vmatpush.msra.mxu2 %v215_v2 }
   0x5   :  { %v83_v4 = vld [vmem:[%s2638_s1 + $0x1c0] sm:$0xff]  ;;  %501 = vmatpush.msra.mxu3 %v279_v3  ;;  %v88_v3 = vld [vmem:[%s2638_s1 + $0x1e8] sm:$0xff] }
   0x6   :  { %v147_v5 = vld [vmem:[%s2638_s1 + $0x3c0] sm:$0xff]  ;;  %442 = vmatpush.msra.mxu0 %v83_v4 }
   0x7   :  { %v211_v6 = vld [vmem:[%s2638_s1 + $0x5c0] sm:$0xff]  ;;  %462 = vmatpush.msra.mxu1 %v147_v5 }
   0x8   :  { %v275_v7 = vld [vmem:[%s2638_s1 + $0x7c0] sm:$0xff]  ;;  %482 = vmatpush.msra.mxu2 %v211_v6 }
   0x9   :  { %v79_v8 = vld [vmem:[%s2638_s1 + $0x1a0] sm:$0xff]  ;;  %502 = vmatpush.msra.mxu3 %v275_v7  ;;  %v84_v7 = vld [vmem:[%s2638_s1 + $0x1c8] sm:$0xff] }
   0xa   :  { %v143_v9 = vld [vmem:[%s2638_s1 + $0x3a0] sm:$0xff]  ;;  %443 = vmatpush.msra.mxu0 %v79_v8 }
   0xb   :  { %v207_v10 = vld [vmem:[%s2638_s1 + $0x5a0] sm:$0xff]  ;;  %463 = vmatpush.msra.mxu1 %v143_v9 }
   0xc   :  { %v271_v11 = vld [vmem:[%s2638_s1 + $0x7a0] sm:$0xff]  ;;  %483 = vmatpush.msra.mxu2 %v207_v10 }
   0xd   :  { %v75_v12 = vld [vmem:[%s2638_s1 + $0x180] sm:$0xff]  ;;  %503 = vmatpush.msra.mxu3 %v271_v11  ;;  %v80_v11 = vld [vmem:[%s2638_s1 + $0x1a8] sm:$0xff] }
   0xe   :  { %v139_v13 = vld [vmem:[%s2638_s1 + $0x380] sm:$0xff]  ;;  %444 = vmatpush.msra.mxu0 %v75_v12 }
   0xf   :  { %v203_v14 = vld [vmem:[%s2638_s1 + $0x580] sm:$0xff]  ;;  %464 = vmatpush.msra.mxu1 %v139_v13 }
  0x10   :  { %v267_v15 = vld [vmem:[%s2638_s1 + $0x780] sm:$0xff]  ;;  %484 = vmatpush.msra.mxu2 %v203_v14 }
  0x11   :  { %v71_v16 = vld [vmem:[%s2638_s1 + $0x160] sm:$0xff]  ;;  %504 = vmatpush.msra.mxu3 %v267_v15  ;;  %v76_v15 = vld [vmem:[%s2638_s1 + $0x188] sm:$0xff] }
  0x12   :  { %v135_v17 = vld [vmem:[%s2638_s1 + $0x360] sm:$0xff]  ;;  %445 = vmatpush.msra.mxu0 %v71_v16  ;;  %v1435_v16 = vld [vmem:[%s2639_s0 + $0x10] sm:$0xff] }
  0x13   :  { %v199_v18 = vld [vmem:[%s2638_s1 + $0x560] sm:$0xff]  ;;  %465 = vmatpush.msra.mxu1 %v135_v17 }
  0x14   :  { %v263_v19 = vld [vmem:[%s2638_s1 + $0x760] sm:$0xff]  ;;  %485 = vmatpush.msra.mxu2 %v199_v18  ;;  %v152_v18 = vld [vmem:[%s2638_s1 + $0x3e8] sm:$0xff] }
  0x15   :  { %v67_v20 = vld [vmem:[%s2638_s1 + $0x140] sm:$0xff]  ;;  %505 = vmatpush.msra.mxu3 %v263_v19 }
  0x16   :  { %v131_v21 = vld [vmem:[%s2638_s1 + $0x340] sm:$0xff]  ;;  %446 = vmatpush.msra.mxu0 %v67_v20  ;;  %v72_v20 = vld [vmem:[%s2638_s1 + $0x168] sm:$0xff] }
  0x17   :  { %v195_v22 = vld [vmem:[%s2638_s1 + $0x540] sm:$0xff]  ;;  %466 = vmatpush.msra.mxu1 %v131_v21 }
  0x18   :  { %v259_v23 = vld [vmem:[%s2638_s1 + $0x740] sm:$0xff]  ;;  %486 = vmatpush.msra.mxu2 %v195_v22  ;;  %v148_v22 = vld [vmem:[%s2638_s1 + $0x3c8] sm:$0xff] }
  0x19   :  { %v63_v24 = vld [vmem:[%s2638_s1 + $0x120] sm:$0xff]  ;;  %506 = vmatpush.msra.mxu3 %v259_v23 }
  0x1a   :  { %v127_v25 = vld [vmem:[%s2638_s1 + $0x320] sm:$0xff]  ;;  %447 = vmatpush.msra.mxu0 %v63_v24  ;;  %v68_v24 = vld [vmem:[%s2638_s1 + $0x148] sm:$0xff] }
  0x1b   :  { %v191_v26 = vld [vmem:[%s2638_s1 + $0x520] sm:$0xff]  ;;  %467 = vmatpush.msra.mxu1 %v127_v25 }
  0x1c   :  { %v255_v27 = vld [vmem:[%s2638_s1 + $0x720] sm:$0xff]  ;;  %487 = vmatpush.msra.mxu2 %v191_v26  ;;  %v144_v26 = vld [vmem:[%s2638_s1 + $0x3a8] sm:$0xff] }
  0x1d   :  { %v59_v28 = vld [vmem:[%s2638_s1 + $0x100] sm:$0xff]  ;;  %507 = vmatpush.msra.mxu3 %v255_v27 }
  0x1e   :  { %v123_v29 = vld [vmem:[%s2638_s1 + $0x300] sm:$0xff]  ;;  %448 = vmatpush.msra.mxu0 %v59_v28  ;;  %v64_v28 = vld [vmem:[%s2638_s1 + $0x128] sm:$0xff] }
  0x1f   :  { %v187_v30 = vld [vmem:[%s2638_s1 + $0x500] sm:$0xff]  ;;  %468 = vmatpush.msra.mxu1 %v123_v29 }
  0x20   :  { %v251_v31 = vld [vmem:[%s2638_s1 + $0x700] sm:$0xff]  ;;  %488 = vmatpush.msra.mxu2 %v187_v30  ;;  %v140_v30 = vld [vmem:[%s2638_s1 + $0x388] sm:$0xff] }
  0x21   :  { %v55_v32 = vld [vmem:[%s2638_s1 + $0xe0] sm:$0xff]  ;;  %508 = vmatpush.msra.mxu3 %v251_v31  ;;  %v1485_v31 = vld [vmem:[%s2639_s0 + $0x18] sm:$0xff] }
  0x22   :  { %v119_v33 = vld [vmem:[%s2638_s1 + $0x2e0] sm:$0xff]  ;;  %449 = vmatpush.msra.mxu0 %v55_v32 }
  0x23   :  { %v183_v34 = vld [vmem:[%s2638_s1 + $0x4e0] sm:$0xff]  ;;  %469 = vmatpush.msra.mxu1 %v119_v33 }
  0x24   :  { %v247_v35 = vld [vmem:[%s2638_s1 + $0x6e0] sm:$0xff]  ;;  %489 = vmatpush.msra.mxu2 %v183_v34  ;;  %v60_v34 = vld [vmem:[%s2638_s1 + $0x108] sm:$0xff] }
  0x25   :  { %v51_v36 = vld [vmem:[%s2638_s1 + $0xc0] sm:$0xff]  ;;  %509 = vmatpush.msra.mxu3 %v247_v35  ;;  %v136_v35 = vld [vmem:[%s2638_s1 + $0x368] sm:$0xff] }
  0x26   :  { %v115_v37 = vld [vmem:[%s2638_s1 + $0x2c0] sm:$0xff]  ;;  %450 = vmatpush.msra.mxu0 %v51_v36  ;;  %v1504_v36 = vld [vmem:[%s2639_s0 + $0x8] sm:$0xff] }
  0x27   :  { %v179_v38 = vld [vmem:[%s2638_s1 + $0x4c0] sm:$0xff]  ;;  %470 = vmatpush.msra.mxu1 %v115_v37 }
  0x28   :  { %v243_v39 = vld [vmem:[%s2638_s1 + $0x6c0] sm:$0xff]  ;;  %490 = vmatpush.msra.mxu2 %v179_v38 }
  0x29   :  { %v47_v40 = vld [vmem:[%s2638_s1 + $0xa0] sm:$0xff]  ;;  %510 = vmatpush.msra.mxu3 %v243_v39  ;;  %v56_v39 = vld [vmem:[%s2638_s1 + $0xe8] sm:$0xff] }
  0x2a   :  { %v111_v41 = vld [vmem:[%s2638_s1 + $0x2a0] sm:$0xff]  ;;  %451 = vmatpush.msra.mxu0 %v47_v40  ;;  %v132_v40 = vld [vmem:[%s2638_s1 + $0x348] sm:$0xff] }
  0x2b   :  { %v175_v42 = vld [vmem:[%s2638_s1 + $0x4a0] sm:$0xff]  ;;  %471 = vmatpush.msra.mxu1 %v111_v41 }
  0x2c   :  { %v239_v43 = vld [vmem:[%s2638_s1 + $0x6a0] sm:$0xff]  ;;  %491 = vmatpush.msra.mxu2 %v175_v42 }
  0x2d   :  { %v43_v44 = vld [vmem:[%s2638_s1 + $0x80] sm:$0xff]  ;;  %511 = vmatpush.msra.mxu3 %v239_v43  ;;  %v52_v43 = vld [vmem:[%s2638_s1 + $0xc8] sm:$0xff] }
  0x2e   :  { %v107_v45 = vld [vmem:[%s2638_s1 + $0x280] sm:$0xff]  ;;  %452 = vmatpush.msra.mxu0 %v43_v44  ;;  %v128_v44 = vld [vmem:[%s2638_s1 + $0x328] sm:$0xff] }
  0x2f   :  { %v171_v46 = vld [vmem:[%s2638_s1 + $0x480] sm:$0xff]  ;;  %472 = vmatpush.msra.mxu1 %v107_v45 }
  0x30   :  { %v235_v47 = vld [vmem:[%s2638_s1 + $0x680] sm:$0xff]  ;;  %492 = vmatpush.msra.mxu2 %v171_v46 }
  0x31   :  { %v39_v48 = vld [vmem:[%s2638_s1 + $0x60] sm:$0xff]  ;;  %512 = vmatpush.msra.mxu3 %v235_v47  ;;  %v48_v47 = vld [vmem:[%s2638_s1 + $0xa8] sm:$0xff] }
  0x32   :  { %v103_v49 = vld [vmem:[%s2638_s1 + $0x260] sm:$0xff]  ;;  %453 = vmatpush.msra.mxu0 %v39_v48  ;;  %v124_v48 = vld [vmem:[%s2638_s1 + $0x308] sm:$0xff] }
  0x33   :  { %v167_v50 = vld [vmem:[%s2638_s1 + $0x460] sm:$0xff]  ;;  %473 = vmatpush.msra.mxu1 %v103_v49 }
  0x34   :  { %v231_v51 = vld [vmem:[%s2638_s1 + $0x660] sm:$0xff]  ;;  %493 = vmatpush.msra.mxu2 %v167_v50 }
  0x35   :  { %v35_v52 = vld [vmem:[%s2638_s1 + $0x40] sm:$0xff]  ;;  %513 = vmatpush.msra.mxu3 %v231_v51  ;;  %v44_v51 = vld [vmem:[%s2638_s1 + $0x88] sm:$0xff] }
  0x36   :  { %v99_v53 = vld [vmem:[%s2638_s1 + $0x240] sm:$0xff]  ;;  %454 = vmatpush.msra.mxu0 %v35_v52  ;;  %v120_v52 = vld [vmem:[%s2638_s1 + $0x2e8] sm:$0xff] }
  0x37   :  { %v163_v54 = vld [vmem:[%s2638_s1 + $0x440] sm:$0xff]  ;;  %474 = vmatpush.msra.mxu1 %v99_v53 }
  0x38   :  { %v227_v55 = vld [vmem:[%s2638_s1 + $0x640] sm:$0xff]  ;;  %494 = vmatpush.msra.mxu2 %v163_v54 }
  0x39   :  { %v31_v56 = vld [vmem:[%s2638_s1 + $0x20] sm:$0xff]  ;;  %514 = vmatpush.msra.mxu3 %v227_v55  ;;  %v40_v55 = vld [vmem:[%s2638_s1 + $0x68] sm:$0xff] }
  0x3a   :  { %v95_v57 = vld [vmem:[%s2638_s1 + $0x220] sm:$0xff]  ;;  %455 = vmatpush.msra.mxu0 %v31_v56  ;;  %v116_v56 = vld [vmem:[%s2638_s1 + $0x2c8] sm:$0xff] }
  0x3b   :  { %v159_v58 = vld [vmem:[%s2638_s1 + $0x420] sm:$0xff]  ;;  %475 = vmatpush.msra.mxu1 %v95_v57 }
  0x3c   :  { %v223_v59 = vld [vmem:[%s2638_s1 + $0x620] sm:$0xff]  ;;  %495 = vmatpush.msra.mxu2 %v159_v58 }
  0x3d   :  { %v27_v60 = vld [vmem:[%s2638_s1] sm:$0xff]  ;;  %515 = vmatpush.msra.mxu3 %v223_v59  ;;  %v36_v59 = vld [vmem:[%s2638_s1 + $0x48] sm:$0xff] }
  0x3e   :  { %v91_v61 = vld [vmem:[%s2638_s1 + $0x200] sm:$0xff]  ;;  %456 = vmatpush.msra.mxu0 %v27_v60  ;;  %v112_v60 = vld [vmem:[%s2638_s1 + $0x2a8] sm:$0xff] }
  0x3f   :  { %v155_v62 = vld [vmem:[%s2638_s1 + $0x400] sm:$0xff]  ;;  %476 = vmatpush.msra.mxu1 %v91_v61 }
  0x40   :  { %v219_v63 = vld [vmem:[%s2638_s1 + $0x600] sm:$0xff]  ;;  %496 = vmatpush.msra.mxu2 %v155_v62  ;;  %477 = vmatmul.f32.vlgmr.msra.gmra.mxu1 %v1504_v36 }
  0x41   :  { %v343_v0 = vld [vmem:[%s2638_s1 + $0x9e0] sm:$0xff]  ;;  %516 = vmatpush.msra.mxu3 %v219_v63  ;;  %497 = vmatmul.f32.vlgmr.msra.gmra.mxu2 %v1435_v16  ;;  %v32_v63 = vld [vmem:[%s2638_s1 + $0x28] sm:$0xff] }
  0x42   :  { %v407_v1 = vld [vmem:[%s2638_s1 + $0xbe0] sm:$0xff]  ;;  %521 = vmatpush.msrb.mxu0 %v343_v0  ;;  %517 = vmatmul.f32.vlgmr.msra.gmra.mxu3 %v1485_v31  ;;  %v1591_v0 = vld [vmem:[%s2639_s0 + $0x30] sm:$0xff] }
  0x43   :  { %v423_v2 = vld [vmem:[%s2638_s1 + $0xc60] sm:$0xff]  ;;  %541 = vmatpush.msrb.mxu1 %v407_v1  ;;  %581 = vmatpush.msrb.mxu3 %v88_v3 }
  0x44   :  { %v339_v4 = vld [vmem:[%s2638_s1 + $0x9c0] sm:$0xff]  ;;  %573 = vmatpush.msrb.mxu2 %v423_v2  ;;  %v108_v2 = vld [vmem:[%s2638_s1 + $0x288] sm:$0xff] }
  0x45   :  { %v403_v5 = vld [vmem:[%s2638_s1 + $0xbc0] sm:$0xff]  ;;  %522 = vmatpush.msrb.mxu0 %v339_v4  ;;  %582 = vmatpush.msrb.mxu3 %v84_v7  ;;  %v28_v4 = vld [vmem:[%s2638_s1 + $0x8] sm:$0xff] }
  0x46   :  { %v419_v6 = vld [vmem:[%s2638_s1 + $0xc40] sm:$0xff]  ;;  %542 = vmatpush.msrb.mxu1 %v403_v5  ;;  %v216_v7 = vld [vmem:[%s2638_s1 + $0x5e8] sm:$0xff] }
  0x47   :  { %v335_v8 = vld [vmem:[%s2638_s1 + $0x9a0] sm:$0xff]  ;;  %574 = vmatpush.msrb.mxu2 %v419_v6  ;;  %583 = vmatpush.msrb.mxu3 %v80_v11  ;;  %v104_v6 = vld [vmem:[%s2638_s1 + $0x268] sm:$0xff] }
  0x48   :  { %v399_v9 = vld [vmem:[%s2638_s1 + $0xba0] sm:$0xff]  ;;  %523 = vmatpush.msrb.mxu0 %v335_v8  ;;  %v280_v8 = vld [vmem:[%s2638_s1 + $0x7e8] sm:$0xff] }
  0x49   :  { %v415_v10 = vld [vmem:[%s2638_s1 + $0xc20] sm:$0xff]  ;;  %543 = vmatpush.msrb.mxu1 %v399_v9  ;;  %584 = vmatpush.msrb.mxu3 %v76_v15  ;;  %v344_v9 = vld [vmem:[%s2638_s1 + $0x9e8] sm:$0xff] }
  0x4a   :  { %v331_v12 = vld [vmem:[%s2638_s1 + $0x980] sm:$0xff]  ;;  %575 = vmatpush.msrb.mxu2 %v415_v10  ;;  %v1628_v10 = vld [vmem:[%s2639_s0 + $0x28] sm:$0xff] }
  0x4b   :  { %v395_v13 = vld [vmem:[%s2638_s1 + $0xb80] sm:$0xff]  ;;  %524 = vmatpush.msrb.mxu0 %v331_v12  ;;  %585 = vmatpush.msrb.mxu3 %v72_v20  ;;  %v100_v11 = vld [vmem:[%s2638_s1 + $0x248] sm:$0xff] }
  0x4c   :  { %v411_v14 = vld [vmem:[%s2638_s1 + $0xc00] sm:$0xff]  ;;  %544 = vmatpush.msrb.mxu1 %v395_v13  ;;  %v212_v12 = vld [vmem:[%s2638_s1 + $0x5c8] sm:$0xff] }
  0x4d   :  { %v327_v17 = vld [vmem:[%s2638_s1 + $0x960] sm:$0xff]  ;;  %576 = vmatpush.msrb.mxu2 %v411_v14  ;;  %586 = vmatpush.msrb.mxu3 %v68_v24  ;;  %v276_v13 = vld [vmem:[%s2638_s1 + $0x7c8] sm:$0xff] }
  0x4e   :  { %v391_v19 = vld [vmem:[%s2638_s1 + $0xb60] sm:$0xff]  ;;  %525 = vmatpush.msrb.mxu0 %v327_v17  ;;  %1149 = vmatmul.msk.f32.vlgmr.msrb.gmra.mxu2 %vm437_vm0, %v1591_v0  ;;  %v340_v14 = vld [vmem:[%s2638_s1 + $0x9c8] sm:$0xff] }
  0x4f   :  { %v323_v21 = vld [vmem:[%s2638_s1 + $0x940] sm:$0xff]  ;;  %601 = vmatpush.msra.mxu2 %v152_v18  ;;  %545 = vmatpush.msrb.mxu1 %v391_v19  ;;  %v96_v15 = vld [vmem:[%s2638_s1 + $0x228] sm:$0xff] }
  0x50   :  { %v387_v23 = vld [vmem:[%s2638_s1 + $0xb40] sm:$0xff]  ;;  %526 = vmatpush.msrb.mxu0 %v323_v21  ;;  %587 = vmatpush.msrb.mxu3 %v64_v28  ;;  %v208_v17 = vld [vmem:[%s2638_s1 + $0x5a8] sm:$0xff] }
  0x51   :  { %v319_v25 = vld [vmem:[%s2638_s1 + $0x920] sm:$0xff]  ;;  %602 = vmatpush.msra.mxu2 %v148_v22  ;;  %546 = vmatpush.msrb.mxu1 %v387_v23  ;;  %v272_v18 = vld [vmem:[%s2638_s1 + $0x7a8] sm:$0xff] }
  0x52   :  { %v383_v27 = vld [vmem:[%s2638_s1 + $0xb20] sm:$0xff]  ;;  %527 = vmatpush.msrb.mxu0 %v319_v25  ;;  %588 = vmatpush.msrb.mxu3 %v60_v34  ;;  %v336_v19 = vld [vmem:[%s2638_s1 + $0x9a8] sm:$0xff] }
  0x53   :  { %v1477_v29 = vld [vmem:[%s2639_s0] sm:$0xff]  ;;  %603 = vmatpush.msra.mxu2 %v144_v26  ;;  %547 = vmatpush.msrb.mxu1 %v383_v27  ;;  %v92_v20 = vld [vmem:[%s2638_s1 + $0x208] sm:$0xff] }
  0x54   :  { %v315_v32 = vld [vmem:[%s2638_s1 + $0x900] sm:$0xff]  ;;  %457 = vmatmul.f32.vlgmr.msra.gmra.mxu0 %v1477_v29  ;;  %589 = vmatpush.msrb.mxu3 %v56_v39  ;;  %v204_v21 = vld [vmem:[%s2638_s1 + $0x588] sm:$0xff] }
  0x55   :  { %v379_v33 = vld [vmem:[%s2638_s1 + $0xb00] sm:$0xff]  ;;  %604 = vmatpush.msra.mxu2 %v140_v30  ;;  %528 = vmatpush.msrb.mxu0 %v315_v32  ;;  %v268_v22 = vld [vmem:[%s2638_s1 + $0x788] sm:$0xff] }
  0x56   :  { %v311_v37 = vld [vmem:[%s2638_s1 + $0x8e0] sm:$0xff]  ;;  %548 = vmatpush.msrb.mxu1 %v379_v33  ;;  %590 = vmatpush.msrb.mxu3 %v52_v43  ;;  %v332_v23 = vld [vmem:[%s2638_s1 + $0x988] sm:$0xff] }
  0x57   :  { %v375_v38 = vld [vmem:[%s2638_s1 + $0xae0] sm:$0xff]  ;;  %605 = vmatpush.msra.mxu2 %v136_v35  ;;  %529 = vmatpush.msrb.mxu0 %v311_v37  ;;  %v408_v24 = vld [vmem:[%s2638_s1 + $0xbe8] sm:$0xff] }
  0x58   :  { %v307_v41 = vld [vmem:[%s2638_s1 + $0x8c0] sm:$0xff]  ;;  %549 = vmatpush.msrb.mxu1 %v375_v38  ;;  %591 = vmatpush.msrb.mxu3 %v48_v47  ;;  %v200_v25 = vld [vmem:[%s2638_s1 + $0x568] sm:$0xff] }
  0x59   :  { %v371_v42 = vld [vmem:[%s2638_s1 + $0xac0] sm:$0xff]  ;;  %606 = vmatpush.msra.mxu2 %v132_v40  ;;  %530 = vmatpush.msrb.mxu0 %v307_v41  ;;  %v264_v26 = vld [vmem:[%s2638_s1 + $0x768] sm:$0xff] }
  0x5a   :  { %v303_v45 = vld [vmem:[%s2638_s1 + $0x8a0] sm:$0xff]  ;;  %550 = vmatpush.msrb.mxu1 %v371_v42  ;;  %592 = vmatpush.msrb.mxu3 %v44_v51  ;;  %v328_v27 = vld [vmem:[%s2638_s1 + $0x968] sm:$0xff] }
  0x5b   :  { %v367_v46 = vld [vmem:[%s2638_s1 + $0xaa0] sm:$0xff]  ;;  %607 = vmatpush.msra.mxu2 %v128_v44  ;;  %531 = vmatpush.msrb.mxu0 %v303_v45  ;;  %v404_v28 = vld [vmem:[%s2638_s1 + $0xbc8] sm:$0xff] }
  0x5c   :  { %v299_v49 = vld [vmem:[%s2638_s1 + $0x880] sm:$0xff]  ;;  %551 = vmatpush.msrb.mxu1 %v367_v46  ;;  %593 = vmatpush.msrb.mxu3 %v40_v55  ;;  %v196_v30 = vld [vmem:[%s2638_s1 + $0x548] sm:$0xff] }
  0x5d   :  { %v363_v50 = vld [vmem:[%s2638_s1 + $0xa80] sm:$0xff]  ;;  %608 = vmatpush.msra.mxu2 %v124_v48  ;;  %532 = vmatpush.msrb.mxu0 %v299_v49  ;;  %v260_v32 = vld [vmem:[%s2638_s1 + $0x748] sm:$0xff] }
  0x5e   :  { %v295_v53 = vld [vmem:[%s2638_s1 + $0x860] sm:$0xff]  ;;  %552 = vmatpush.msrb.mxu1 %v363_v50  ;;  %594 = vmatpush.msrb.mxu3 %v36_v59  ;;  %v324_v33 = vld [vmem:[%s2638_s1 + $0x948] sm:$0xff] }
  0x5f   :  { %v359_v54 = vld [vmem:[%s2638_s1 + $0xa60] sm:$0xff]  ;;  %609 = vmatpush.msra.mxu2 %v120_v52  ;;  %533 = vmatpush.msrb.mxu0 %v295_v53  ;;  %v400_v34 = vld [vmem:[%s2638_s1 + $0xba8] sm:$0xff] }
  0x60   :  { %v291_v57 = vld [vmem:[%s2638_s1 + $0x840] sm:$0xff]  ;;  %553 = vmatpush.msrb.mxu1 %v359_v54  ;;  %595 = vmatpush.msrb.mxu3 %v32_v63  ;;  %v192_v35 = vld [vmem:[%s2638_s1 + $0x528] sm:$0xff] }
  0x61   :  { %v355_v58 = vld [vmem:[%s2638_s1 + $0xa40] sm:$0xff]  ;;  %610 = vmatpush.msra.mxu2 %v116_v56  ;;  %534 = vmatpush.msrb.mxu0 %v291_v57  ;;  %v256_v37 = vld [vmem:[%s2638_s1 + $0x728] sm:$0xff] }
  0x62   :  { %v287_v61 = vld [vmem:[%s2638_s1 + $0x820] sm:$0xff]  ;;  %554 = vmatpush.msrb.mxu1 %v355_v58  ;;  %596 = vmatpush.msrb.mxu3 %v28_v4  ;;  %v320_v38 = vld [vmem:[%s2638_s1 + $0x928] sm:$0xff] }
  0x63   :  { %v351_v62 = vld [vmem:[%s2638_s1 + $0xa20] sm:$0xff]  ;;  %611 = vmatpush.msra.mxu2 %v112_v60  ;;  %535 = vmatpush.msrb.mxu0 %v287_v61  ;;  %v396_v39 = vld [vmem:[%s2638_s1 + $0xb88] sm:$0xff] }
  0x64   :  { %v283_v1 = vld [vmem:[%s2638_s1 + $0x800] sm:$0xff]  ;;  %555 = vmatpush.msrb.mxu1 %v351_v62  ;;  %661 = vmatpush.msra.mxu3 %v344_v9  ;;  %v188_v40 = vld [vmem:[%s2638_s1 + $0x508] sm:$0xff] }
  0x65   :  { %v347_v3 = vld [vmem:[%s2638_s1 + $0xa00] sm:$0xff]  ;;  %536 = vmatpush.msrb.mxu0 %v283_v1  ;;  %612 = vmatpush.msra.mxu2 %v108_v2  ;;  %v252_v41 = vld [vmem:[%s2638_s1 + $0x708] sm:$0xff] }
  0x66   :  { %v1608_v5 = vld [vmem:[%s2639_s0 + $0x20] sm:$0xff]  ;;  %556 = vmatpush.msrb.mxu1 %v347_v3  ;;  %662 = vmatpush.msra.mxu3 %v340_v14  ;;  %v316_v42 = vld [vmem:[%s2638_s1 + $0x908] sm:$0xff] }
  0x67   :  { %537 = vmatmul.f32.vlgmr.msrb.gmra.mxu0 %v1608_v5  ;;  %613 = vmatpush.msra.mxu2 %v104_v6  ;;  %v392_v43 = vld [vmem:[%s2638_s1 + $0xb68] sm:$0xff] }
  0x68   :  { %621 = vmatpush.msra.mxu0 %v216_v7  ;;  %641 = vmatpush.msra.mxu1 %v280_v8  ;;  %v184_v44 = vld [vmem:[%s2638_s1 + $0x4e8] sm:$0xff] }
  0x69   :  { %557 = vmatmul.f32.vlgmr.msrb.gmra.mxu1 %v1628_v10  ;;  %614 = vmatpush.msra.mxu2 %v100_v11  ;;  %v248_v45 = vld [vmem:[%s2638_s1 + $0x6e8] sm:$0xff] }
  0x6a   :  { %622 = vmatpush.msra.mxu0 %v212_v12  ;;  %642 = vmatpush.msra.mxu1 %v276_v13  ;;  %v312_v46 = vld [vmem:[%s2638_s1 + $0x8e8] sm:$0xff] }
  0x6b   :  { %615 = vmatpush.msra.mxu2 %v96_v15  ;;  %663 = vmatpush.msra.mxu3 %v336_v19  ;;  %v388_v47 = vld [vmem:[%s2638_s1 + $0xb48] sm:$0xff] }
  0x6c   :  { %623 = vmatpush.msra.mxu0 %v208_v17  ;;  %643 = vmatpush.msra.mxu1 %v272_v18  ;;  %v180_v48 = vld [vmem:[%s2638_s1 + $0x4c8] sm:$0xff]  ;;  %v89_v17 = vld [vmem:[%s2638_s1 + $0x1f0] sm:$0xff] }
  0x6d   :  { %616 = vmatpush.msra.mxu2 %v92_v20  ;;  %664 = vmatpush.msra.mxu3 %v332_v23  ;;  %v244_v49 = vld [vmem:[%s2638_s1 + $0x6c8] sm:$0xff]  ;;  %v153_v18 = vld [vmem:[%s2638_s1 + $0x3f0] sm:$0xff] }
  0x6e   :  { %624 = vmatpush.msra.mxu0 %v204_v21  ;;  %644 = vmatpush.msra.mxu1 %v268_v22  ;;  %v308_v50 = vld [vmem:[%s2638_s1 + $0x8c8] sm:$0xff]  ;;  %v85_v21 = vld [vmem:[%s2638_s1 + $0x1d0] sm:$0xff] }
  0x6f   :  { %681 = vmatpush.msrb.mxu2 %v408_v24  ;;  %665 = vmatpush.msra.mxu3 %v328_v27  ;;  %v384_v51 = vld [vmem:[%s2638_s1 + $0xb28] sm:$0xff]  ;;  %v149_v22 = vld [vmem:[%s2638_s1 + $0x3d0] sm:$0xff] }
  0x70   :  { %625 = vmatpush.msra.mxu0 %v200_v25  ;;  %645 = vmatpush.msra.mxu1 %v264_v26  ;;  %v176_v52 = vld [vmem:[%s2638_s1 + $0x4a8] sm:$0xff]  ;;  %v81_v25 = vld [vmem:[%s2638_s1 + $0x1b0] sm:$0xff] }
  0x71   :  { %682 = vmatpush.msrb.mxu2 %v404_v28  ;;  %666 = vmatpush.msra.mxu3 %v324_v33  ;;  %v240_v53 = vld [vmem:[%s2638_s1 + $0x6a8] sm:$0xff]  ;;  %v145_v26 = vld [vmem:[%s2638_s1 + $0x3b0] sm:$0xff] }
  0x72   :  { %626 = vmatpush.msra.mxu0 %v196_v30  ;;  %646 = vmatpush.msra.mxu1 %v260_v32  ;;  %v304_v54 = vld [vmem:[%s2638_s1 + $0x8a8] sm:$0xff]  ;;  %v77_v30 = vld [vmem:[%s2638_s1 + $0x190] sm:$0xff] }
  0x73   :  { %683 = vmatpush.msrb.mxu2 %v400_v34  ;;  %667 = vmatpush.msra.mxu3 %v320_v38  ;;  %v380_v55 = vld [vmem:[%s2638_s1 + $0xb08] sm:$0xff]  ;;  %v141_v32 = vld [vmem:[%s2638_s1 + $0x390] sm:$0xff] }
  0x74   :  { %627 = vmatpush.msra.mxu0 %v192_v35  ;;  %647 = vmatpush.msra.mxu1 %v256_v37  ;;  %v172_v56 = vld [vmem:[%s2638_s1 + $0x488] sm:$0xff]  ;;  %v217_v33 = vld [vmem:[%s2638_s1 + $0x5f0] sm:$0xff] }
  0x75   :  { %684 = vmatpush.msrb.mxu2 %v396_v39  ;;  %668 = vmatpush.msra.mxu3 %v316_v42  ;;  %v236_v57 = vld [vmem:[%s2638_s1 + $0x688] sm:$0xff]  ;;  %v281_v34 = vld [vmem:[%s2638_s1 + $0x7f0] sm:$0xff] }
  0x76   :  { %628 = vmatpush.msra.mxu0 %v188_v40  ;;  %648 = vmatpush.msra.mxu1 %v252_v41  ;;  %v300_v58 = vld [vmem:[%s2638_s1 + $0x888] sm:$0xff]  ;;  %v73_v35 = vld [vmem:[%s2638_s1 + $0x170] sm:$0xff] }
  0x77   :  { %685 = vmatpush.msrb.mxu2 %v392_v43  ;;  %669 = vmatpush.msra.mxu3 %v312_v46  ;;  %v376_v59 = vld [vmem:[%s2638_s1 + $0xae8] sm:$0xff]  ;;  %v137_v37 = vld [vmem:[%s2638_s1 + $0x370] sm:$0xff] }
  0x78   :  { %629 = vmatpush.msra.mxu0 %v184_v44  ;;  %649 = vmatpush.msra.mxu1 %v248_v45  ;;  %v168_v60 = vld [vmem:[%s2638_s1 + $0x468] sm:$0xff]  ;;  %v213_v38 = vld [vmem:[%s2638_s1 + $0x5d0] sm:$0xff] }
  0x79   :  { %686 = vmatpush.msrb.mxu2 %v388_v47  ;;  %670 = vmatpush.msra.mxu3 %v308_v50  ;;  %v232_v61 = vld [vmem:[%s2638_s1 + $0x668] sm:$0xff]  ;;  %v277_v39 = vld [vmem:[%s2638_s1 + $0x7d0] sm:$0xff] }
  0x7a   :  { %630 = vmatpush.msra.mxu0 %v180_v48  ;;  %650 = vmatpush.msra.mxu1 %v244_v49  ;;  %v296_v62 = vld [vmem:[%s2638_s1 + $0x868] sm:$0xff]  ;;  %v69_v40 = vld [vmem:[%s2638_s1 + $0x150] sm:$0xff] }
  0x7b   :  { %687 = vmatpush.msrb.mxu2 %v384_v51  ;;  %671 = vmatpush.msra.mxu3 %v304_v54  ;;  %v372_v63 = vld [vmem:[%s2638_s1 + $0xac8] sm:$0xff]  ;;  %v133_v41 = vld [vmem:[%s2638_s1 + $0x350] sm:$0xff] }
  0x7c   :  { %631 = vmatpush.msra.mxu0 %v176_v52  ;;  %651 = vmatpush.msra.mxu1 %v240_v53  ;;  %v164_v1 = vld [vmem:[%s2638_s1 + $0x448] sm:$0xff]  ;;  %v209_v42 = vld [vmem:[%s2638_s1 + $0x5b0] sm:$0xff] }
  0x7d   :  { %688 = vmatpush.msrb.mxu2 %v380_v55  ;;  %672 = vmatpush.msra.mxu3 %v300_v58  ;;  %v228_v2 = vld [vmem:[%s2638_s1 + $0x648] sm:$0xff]  ;;  %v273_v43 = vld [vmem:[%s2638_s1 + $0x7b0] sm:$0xff] }
  0x7e   :  { %632 = vmatpush.msra.mxu0 %v172_v56  ;;  %652 = vmatpush.msra.mxu1 %v236_v57  ;;  %v292_v3 = vld [vmem:[%s2638_s1 + $0x848] sm:$0xff]  ;;  %v65_v44 = vld [vmem:[%s2638_s1 + $0x130] sm:$0xff] }
  0x7f   :  { %689 = vmatpush.msrb.mxu2 %v376_v59  ;;  %v368_v4 = vld [vmem:[%s2638_s1 + $0xaa8] sm:$0xff]  ;;  %673 = vmatpush.msra.mxu3 %v296_v62  ;;  %v129_v45 = vld [vmem:[%s2638_s1 + $0x330] sm:$0xff] }
  0x80   :  { %633 = vmatpush.msra.mxu0 %v168_v60  ;;  %653 = vmatpush.msra.mxu1 %v232_v61  ;;  %v160_v6 = vld [vmem:[%s2638_s1 + $0x428] sm:$0xff]  ;;  %v205_v46 = vld [vmem:[%s2638_s1 + $0x590] sm:$0xff] }
  0x81   :  { %690 = vmatpush.msrb.mxu2 %v372_v63  ;;  %v224_v7 = vld [vmem:[%s2638_s1 + $0x628] sm:$0xff]  ;;  %674 = vmatpush.msra.mxu3 %v292_v3  ;;  %v269_v47 = vld [vmem:[%s2638_s1 + $0x790] sm:$0xff] }
  0x82   :  { %634 = vmatpush.msra.mxu0 %v164_v1  ;;  %654 = vmatpush.msra.mxu1 %v228_v2  ;;  %v288_v8 = vld [vmem:[%s2638_s1 + $0x828] sm:$0xff]  ;;  %v61_v48 = vld [vmem:[%s2638_s1 + $0x110] sm:$0xff] }
  0x83   :  { %691 = vmatpush.msrb.mxu2 %v368_v4  ;;  %v364_v9 = vld [vmem:[%s2638_s1 + $0xa88] sm:$0xff]  ;;  %597 = vmatmul.f32.vlgmr.msrb.gmra.mxu3 %v1477_v29  ;;  %v125_v49 = vld [vmem:[%s2638_s1 + $0x310] sm:$0xff] }
  0x84   :  { %v156_v11 = vld [vmem:[%s2638_s1 + $0x408] sm:$0xff]  ;;  %635 = vmatpush.msra.mxu0 %v160_v6  ;;  %655 = vmatpush.msra.mxu1 %v224_v7  ;;  %v201_v50 = vld [vmem:[%s2638_s1 + $0x570] sm:$0xff] }
  0x85   :  { %v220_v12 = vld [vmem:[%s2638_s1 + $0x608] sm:$0xff]  ;;  %675 = vmatpush.msra.mxu3 %v288_v8  ;;  %692 = vmatpush.msrb.mxu2 %v364_v9  ;;  %v265_v51 = vld [vmem:[%s2638_s1 + $0x770] sm:$0xff] }
  0x86   :  { %v284_v13 = vld [vmem:[%s2638_s1 + $0x808] sm:$0xff]  ;;  %636 = vmatpush.msra.mxu0 %v156_v11  ;;  %617 = vmatmul.f32.vlgmr.msra.gmra.mxu2 %v1504_v36  ;;  %v57_v52 = vld [vmem:[%s2638_s1 + $0xf0] sm:$0xff] }
  0x87   :  { %v360_v14 = vld [vmem:[%s2638_s1 + $0xa68] sm:$0xff]  ;;  %656 = vmatpush.msra.mxu1 %v220_v12  ;;  %676 = vmatpush.msra.mxu3 %v284_v13  ;;  %v121_v53 = vld [vmem:[%s2638_s1 + $0x2f0] sm:$0xff] }
  0x88   :  { %v424_v15 = vld [vmem:[%s2638_s1 + $0xc68] sm:$0xff]  ;;  %693 = vmatpush.msrb.mxu2 %v360_v14  ;;  %637 = vmatmul.f32.vlgmr.msra.gmra.mxu0 %v1435_v16  ;;  %v197_v54 = vld [vmem:[%s2638_s1 + $0x550] sm:$0xff] }
  0x89   :  { %v356_v19 = vld [vmem:[%s2638_s1 + $0xa48] sm:$0xff]  ;;  %713 = vmatpush.msrb.mxu0 %v424_v15  ;;  %721 = vmatpush.msrb.mxu1 %v89_v17  ;;  %v261_v55 = vld [vmem:[%s2638_s1 + $0x750] sm:$0xff] }
  0x8a   :  { %v420_v20 = vld [vmem:[%s2638_s1 + $0xc48] sm:$0xff]  ;;  %741 = vmatpush.msrb.mxu3 %v153_v18  ;;  %694 = vmatpush.msrb.mxu2 %v356_v19  ;;  %v53_v56 = vld [vmem:[%s2638_s1 + $0xd0] sm:$0xff] }
  0x8b   :  { %v352_v23 = vld [vmem:[%s2638_s1 + $0xa28] sm:$0xff]  ;;  %714 = vmatpush.msrb.mxu0 %v420_v20  ;;  %722 = vmatpush.msrb.mxu1 %v85_v21  ;;  %v117_v57 = vld [vmem:[%s2638_s1 + $0x2d0] sm:$0xff] }
  0x8c   :  { %v416_v24 = vld [vmem:[%s2638_s1 + $0xc28] sm:$0xff]  ;;  %742 = vmatpush.msrb.mxu3 %v149_v22  ;;  %695 = vmatpush.msrb.mxu2 %v352_v23  ;;  %v193_v58 = vld [vmem:[%s2638_s1 + $0x530] sm:$0xff] }
  0x8d   :  { %v348_v27 = vld [vmem:[%s2638_s1 + $0xa08] sm:$0xff]  ;;  %715 = vmatpush.msrb.mxu0 %v416_v24  ;;  %723 = vmatpush.msrb.mxu1 %v81_v25  ;;  %v257_v59 = vld [vmem:[%s2638_s1 + $0x730] sm:$0xff] }
  0x8e   :  { %v412_v28 = vld [vmem:[%s2638_s1 + $0xc08] sm:$0xff]  ;;  %743 = vmatpush.msrb.mxu3 %v145_v26  ;;  %696 = vmatpush.msrb.mxu2 %v348_v27  ;;  %v49_v60 = vld [vmem:[%s2638_s1 + $0xb0] sm:$0xff] }
  0x8f   :  { %677 = vmatmul.f32.vlgmr.msra.gmra.mxu3 %v1608_v5  ;;  %716 = vmatpush.msrb.mxu0 %v412_v28  ;;  %v113_v61 = vld [vmem:[%s2638_s1 + $0x2b0] sm:$0xff] }
  0x90   :  { %724 = vmatpush.msrb.mxu1 %v77_v30  ;;  %744 = vmatpush.msrb.mxu3 %v141_v32  ;;  %v189_v62 = vld [vmem:[%s2638_s1 + $0x510] sm:$0xff] }
  0x91   :  { %697 = vmatmul.f32.vlgmr.msrb.gmra.mxu2 %v1628_v10  ;;  %761 = vmatpush.msra.mxu0 %v217_v33  ;;  %v253_v63 = vld [vmem:[%s2638_s1 + $0x710] sm:$0xff] }
  0x92   :  { %781 = vmatpush.msra.mxu2 %v281_v34  ;;  %725 = vmatpush.msrb.mxu1 %v73_v35  ;;  %v45_v1 = vld [vmem:[%s2638_s1 + $0x90] sm:$0xff] }
  0x93   :  { %745 = vmatpush.msrb.mxu3 %v137_v37  ;;  %657 = vmatmul.f32.vlgmr.msra.gmra.mxu1 %v1485_v31  ;;  %v109_v2 = vld [vmem:[%s2638_s1 + $0x290] sm:$0xff] }
  0x94   :  { %762 = vmatpush.msra.mxu0 %v213_v38  ;;  %782 = vmatpush.msra.mxu2 %v277_v39  ;;  %v185_v3 = vld [vmem:[%s2638_s1 + $0x4f0] sm:$0xff] }
  0x95   :  { %726 = vmatpush.msrb.mxu1 %v69_v40  ;;  %746 = vmatpush.msrb.mxu3 %v133_v41  ;;  %v249_v4 = vld [vmem:[%s2638_s1 + $0x6f0] sm:$0xff] }
  0x96   :  { %763 = vmatpush.msra.mxu0 %v209_v42  ;;  %783 = vmatpush.msra.mxu2 %v273_v43  ;;  %v41_v6 = vld [vmem:[%s2638_s1 + $0x70] sm:$0xff]  ;;  %v90_v42 = vld [vmem:[%s2638_s1 + $0x1f8] sm:$0xff] }
  0x97   :  { %727 = vmatpush.msrb.mxu1 %v65_v44  ;;  %747 = vmatpush.msrb.mxu3 %v129_v45  ;;  %v105_v7 = vld [vmem:[%s2638_s1 + $0x270] sm:$0xff] }
  0x98   :  { %764 = vmatpush.msra.mxu0 %v205_v46  ;;  %784 = vmatpush.msra.mxu2 %v269_v47  ;;  %v181_v8 = vld [vmem:[%s2638_s1 + $0x4d0] sm:$0xff] }
  0x99   :  { %728 = vmatpush.msrb.mxu1 %v61_v48  ;;  %748 = vmatpush.msrb.mxu3 %v125_v49  ;;  %v245_v9 = vld [vmem:[%s2638_s1 + $0x6d0] sm:$0xff]  ;;  %v82_v49 = vld [vmem:[%s2638_s1 + $0x1b8] sm:$0xff] }
  0x9a   :  { %1150 = vmatmul.msk.f32.vlgmr.msrb.gmra.mxu0 %vm437_vm0, %v1591_v0  ;;  %785 = vmatpush.msra.mxu2 %v265_v51  ;;  %v37_v11 = vld [vmem:[%s2638_s1 + $0x50] sm:$0xff] }
  0x9b   :  { %765 = vmatpush.msra.mxu0 %v201_v50  ;;  %729 = vmatpush.msrb.mxu1 %v57_v52  ;;  %v101_v12 = vld [vmem:[%s2638_s1 + $0x250] sm:$0xff] }
  0x9c   :  { %749 = vmatpush.msrb.mxu3 %v121_v53  ;;  %786 = vmatpush.msra.mxu2 %v261_v55  ;;  %v177_v13 = vld [vmem:[%s2638_s1 + $0x4b0] sm:$0xff]  ;;  %v74_v55 = vld [vmem:[%s2638_s1 + $0x178] sm:$0xff] }
  0x9d   :  { %766 = vmatpush.msra.mxu0 %v197_v54  ;;  %730 = vmatpush.msrb.mxu1 %v53_v56  ;;  %v241_v14 = vld [vmem:[%s2638_s1 + $0x6b0] sm:$0xff]  ;;  %v154_v54 = vld [vmem:[%s2638_s1 + $0x3f8] sm:$0xff] }
  0x9e   :  { %750 = vmatpush.msrb.mxu3 %v117_v57  ;;  %787 = vmatpush.msra.mxu2 %v257_v59  ;;  %v33_v15 = vld [vmem:[%s2638_s1 + $0x30] sm:$0xff]  ;;  %v70_v59 = vld [vmem:[%s2638_s1 + $0x158] sm:$0xff] }
  0x9f   :  { %767 = vmatpush.msra.mxu0 %v193_v58  ;;  %731 = vmatpush.msrb.mxu1 %v49_v60  ;;  %v97_v17 = vld [vmem:[%s2638_s1 + $0x230] sm:$0xff]  ;;  %v150_v58 = vld [vmem:[%s2638_s1 + $0x3d8] sm:$0xff] }
  0xa0   :  { %751 = vmatpush.msrb.mxu3 %v113_v61  ;;  %788 = vmatpush.msra.mxu2 %v253_v63  ;;  %v173_v18 = vld [vmem:[%s2638_s1 + $0x490] sm:$0xff]  ;;  %v146_v61 = vld [vmem:[%s2638_s1 + $0x3b8] sm:$0xff] }
  0xa1   :  { %768 = vmatpush.msra.mxu0 %v189_v62  ;;  %732 = vmatpush.msrb.mxu1 %v45_v1  ;;  %v237_v19 = vld [vmem:[%s2638_s1 + $0x690] sm:$0xff]  ;;  %v66_v62 = vld [vmem:[%s2638_s1 + $0x138] sm:$0xff] }
  0xa2   :  { %752 = vmatpush.msrb.mxu3 %v109_v2  ;;  %789 = vmatpush.msra.mxu2 %v249_v4  ;;  %v29_v20 = vld [vmem:[%s2638_s1 + $0x10] sm:$0xff]  ;;  %v142_v2 = vld [vmem:[%s2638_s1 + $0x398] sm:$0xff] }
  0xa3   :  { %769 = vmatpush.msra.mxu0 %v185_v3  ;;  %733 = vmatpush.msrb.mxu1 %v41_v6  ;;  %v93_v21 = vld [vmem:[%s2638_s1 + $0x210] sm:$0xff]  ;;  %v62_v3 = vld [vmem:[%s2638_s1 + $0x118] sm:$0xff] }
  0xa4   :  { %753 = vmatpush.msrb.mxu3 %v105_v7  ;;  %790 = vmatpush.msra.mxu2 %v245_v9  ;;  %v169_v22 = vld [vmem:[%s2638_s1 + $0x470] sm:$0xff]  ;;  %v138_v7 = vld [vmem:[%s2638_s1 + $0x378] sm:$0xff] }
  0xa5   :  { %770 = vmatpush.msra.mxu0 %v181_v8  ;;  %734 = vmatpush.msrb.mxu1 %v37_v11  ;;  %v233_v23 = vld [vmem:[%s2638_s1 + $0x670] sm:$0xff]  ;;  %v58_v8 = vld [vmem:[%s2638_s1 + $0xf8] sm:$0xff] }
  0xa6   :  { %754 = vmatpush.msrb.mxu3 %v101_v12  ;;  %791 = vmatpush.msra.mxu2 %v241_v14  ;;  %v345_v24 = vld [vmem:[%s2638_s1 + $0x9f0] sm:$0xff]  ;;  %v134_v12 = vld [vmem:[%s2638_s1 + $0x358] sm:$0xff] }
  0xa7   :  { %771 = vmatpush.msra.mxu0 %v177_v13  ;;  %735 = vmatpush.msrb.mxu1 %v33_v15  ;;  %v409_v25 = vld [vmem:[%s2638_s1 + $0xbf0] sm:$0xff]  ;;  %v54_v13 = vld [vmem:[%s2638_s1 + $0xd8] sm:$0xff] }
  0xa8   :  { %755 = vmatpush.msrb.mxu3 %v97_v17  ;;  %792 = vmatpush.msra.mxu2 %v237_v19  ;;  %v165_v26 = vld [vmem:[%s2638_s1 + $0x450] sm:$0xff]  ;;  %v130_v17 = vld [vmem:[%s2638_s1 + $0x338] sm:$0xff] }
  0xa9   :  { %772 = vmatpush.msra.mxu0 %v173_v18  ;;  %736 = vmatpush.msrb.mxu1 %v29_v20  ;;  %v229_v27 = vld [vmem:[%s2638_s1 + $0x650] sm:$0xff]  ;;  %v50_v18 = vld [vmem:[%s2638_s1 + $0xb8] sm:$0xff] }
  0xaa   :  { %756 = vmatpush.msrb.mxu3 %v93_v21  ;;  %793 = vmatpush.msra.mxu2 %v233_v23  ;;  %v341_v28 = vld [vmem:[%s2638_s1 + $0x9d0] sm:$0xff]  ;;  %v126_v21 = vld [vmem:[%s2638_s1 + $0x318] sm:$0xff] }
  0xab   :  { %773 = vmatpush.msra.mxu0 %v169_v22  ;;  %v405_v30 = vld [vmem:[%s2638_s1 + $0xbd0] sm:$0xff]  ;;  %801 = vmatpush.msra.mxu1 %v345_v24  ;;  %v46_v22 = vld [vmem:[%s2638_s1 + $0x98] sm:$0xff] }
  0xac   :  { %821 = vmatpush.msra.mxu3 %v409_v25  ;;  %v161_v32 = vld [vmem:[%s2638_s1 + $0x430] sm:$0xff]  ;;  %794 = vmatpush.msra.mxu2 %v229_v27  ;;  %v122_v25 = vld [vmem:[%s2638_s1 + $0x2f8] sm:$0xff] }
  0xad   :  { %v225_v33 = vld [vmem:[%s2638_s1 + $0x630] sm:$0xff]  ;;  %774 = vmatpush.msra.mxu0 %v165_v26  ;;  %802 = vmatpush.msra.mxu1 %v341_v28  ;;  %v42_v26 = vld [vmem:[%s2638_s1 + $0x78] sm:$0xff] }
  0xae   :  { %v337_v34 = vld [vmem:[%s2638_s1 + $0x9b0] sm:$0xff]  ;;  %822 = vmatpush.msra.mxu3 %v405_v30  ;;  %795 = vmatpush.msra.mxu2 %v225_v33  ;;  %v282_v27 = vld [vmem:[%s2638_s1 + $0x7f8] sm:$0xff] }
  0xaf   :  { %v401_v35 = vld [vmem:[%s2638_s1 + $0xbb0] sm:$0xff]  ;;  %775 = vmatpush.msra.mxu0 %v161_v32  ;;  %803 = vmatpush.msra.mxu1 %v337_v34  ;;  %v118_v28 = vld [vmem:[%s2638_s1 + $0x2d8] sm:$0xff] }
  0xb0   :  { %v157_v37 = vld [vmem:[%s2638_s1 + $0x410] sm:$0xff]  ;;  %823 = vmatpush.msra.mxu3 %v401_v35  ;;  %737 = vmatmul.f32.vlgmr.msrb.gmra.mxu1 %v1477_v29  ;;  %v78_v29 = vld [vmem:[%s2638_s1 + $0x198] sm:$0xff] }
  0xb1   :  { %v221_v38 = vld [vmem:[%s2638_s1 + $0x610] sm:$0xff]  ;;  %757 = vmatmul.f32.vlgmr.msrb.gmra.mxu3 %v1504_v36  ;;  %776 = vmatpush.msra.mxu0 %v157_v37  ;;  %v86_v36 = vld [vmem:[%s2638_s1 + $0x1d8] sm:$0xff] }
  0xb2   :  { %v333_v39 = vld [vmem:[%s2638_s1 + $0x990] sm:$0xff]  ;;  %796 = vmatpush.msra.mxu2 %v221_v38  ;;  %777 = vmatmul.f32.vlgmr.msra.gmra.mxu0 %v1435_v16  ;;  %v38_v30 = vld [vmem:[%s2638_s1 + $0x58] sm:$0xff] }
  0xb3   :  { %v397_v40 = vld [vmem:[%s2638_s1 + $0xb90] sm:$0xff]  ;;  %804 = vmatpush.msra.mxu1 %v333_v39  ;;  %797 = vmatmul.f32.vlgmr.msra.gmra.mxu2 %v1485_v31  ;;  %v278_v32 = vld [vmem:[%s2638_s1 + $0x7d8] sm:$0xff] }
  0xb4   :  { %v425_v41 = vld [vmem:[%s2638_s1 + $0xc70] sm:$0xff]  ;;  %824 = vmatpush.msra.mxu3 %v397_v40  ;;  %861 = vmatpush.msrb.mxu2 %v90_v42  ;;  %v114_v33 = vld [vmem:[%s2638_s1 + $0x2b8] sm:$0xff] }
  0xb5   :  { %v329_v43 = vld [vmem:[%s2638_s1 + $0x970] sm:$0xff]  ;;  %853 = vmatpush.msrb.mxu0 %v425_v41  ;;  %v218_v34 = vld [vmem:[%s2638_s1 + $0x5f8] sm:$0xff] }
  0xb6   :  { %v393_v44 = vld [vmem:[%s2638_s1 + $0xb70] sm:$0xff]  ;;  %805 = vmatpush.msra.mxu1 %v329_v43  ;;  %862 = vmatpush.msrb.mxu2 %v86_v36  ;;  %v110_v35 = vld [vmem:[%s2638_s1 + $0x298] sm:$0xff] }
  0xb7   :  { %v421_v45 = vld [vmem:[%s2638_s1 + $0xc50] sm:$0xff]  ;;  %825 = vmatpush.msra.mxu3 %v393_v44  ;;  %v30_v37 = vld [vmem:[%s2638_s1 + $0x18] sm:$0xff] }
  0xb8   :  { %v325_v46 = vld [vmem:[%s2638_s1 + $0x950] sm:$0xff]  ;;  %854 = vmatpush.msrb.mxu0 %v421_v45  ;;  %863 = vmatpush.msrb.mxu2 %v82_v49  ;;  %v214_v38 = vld [vmem:[%s2638_s1 + $0x5d8] sm:$0xff] }
  0xb9   :  { %v389_v47 = vld [vmem:[%s2638_s1 + $0xb50] sm:$0xff]  ;;  %806 = vmatpush.msra.mxu1 %v325_v46  ;;  %v270_v39 = vld [vmem:[%s2638_s1 + $0x798] sm:$0xff] }
  0xba   :  { %v417_v48 = vld [vmem:[%s2638_s1 + $0xc30] sm:$0xff]  ;;  %826 = vmatpush.msra.mxu3 %v389_v47  ;;  %864 = vmatpush.msrb.mxu2 %v78_v29  ;;  %v106_v40 = vld [vmem:[%s2638_s1 + $0x278] sm:$0xff] }
  0xbb   :  { %v321_v50 = vld [vmem:[%s2638_s1 + $0x930] sm:$0xff]  ;;  %855 = vmatpush.msrb.mxu0 %v417_v48  ;;  %v210_v41 = vld [vmem:[%s2638_s1 + $0x5b8] sm:$0xff] }
  0xbc   :  { %v385_v51 = vld [vmem:[%s2638_s1 + $0xb30] sm:$0xff]  ;;  %807 = vmatpush.msra.mxu1 %v321_v50  ;;  %865 = vmatpush.msrb.mxu2 %v74_v55  ;;  %v266_v42 = vld [vmem:[%s2638_s1 + $0x778] sm:$0xff] }
  0xbd   :  { %v413_v52 = vld [vmem:[%s2638_s1 + $0xc10] sm:$0xff]  ;;  %827 = vmatpush.msra.mxu3 %v385_v51  ;;  %v102_v43 = vld [vmem:[%s2638_s1 + $0x258] sm:$0xff] }
  0xbe   :  { %v317_v31 = vld [vmem:[%s2638_s1 + $0x910] sm:$0xff]  ;;  %856 = vmatpush.msrb.mxu0 %v413_v52  ;;  %866 = vmatpush.msrb.mxu2 %v70_v59  ;;  %v342_v44 = vld [vmem:[%s2638_s1 + $0x9d8] sm:$0xff] }
  0xbf   :  { %v381_v53 = vld [vmem:[%s2638_s1 + $0xb10] sm:$0xff]  ;;  %808 = vmatpush.msra.mxu1 %v317_v31  ;;  %1151 = vmatmul.msk.f32.vlgmr.msrb.gmra.mxu0 %vm437_vm0, %v1591_v0  ;;  %v346_v0 = vld [vmem:[%s2638_s1 + $0x9f8] sm:$0xff] }
  0xc0   :  { %v313_v56 = vld [vmem:[%s2638_s1 + $0x8f0] sm:$0xff]  ;;  %828 = vmatpush.msra.mxu3 %v381_v53  ;;  %881 = vmatpush.msra.mxu0 %v154_v54  ;;  %v206_v45 = vld [vmem:[%s2638_s1 + $0x598] sm:$0xff] }
  0xc1   :  { %v377_v57 = vld [vmem:[%s2638_s1 + $0xaf0] sm:$0xff]  ;;  %809 = vmatpush.msra.mxu1 %v313_v56  ;;  %867 = vmatpush.msrb.mxu2 %v66_v62  ;;  %v262_v36 = vld [vmem:[%s2638_s1 + $0x758] sm:$0xff] }
  0xc2   :  { %v309_v16 = vld [vmem:[%s2638_s1 + $0x8d0] sm:$0xff]  ;;  %829 = vmatpush.msra.mxu3 %v377_v57  ;;  %882 = vmatpush.msra.mxu0 %v150_v58  ;;  %v98_v46 = vld [vmem:[%s2638_s1 + $0x238] sm:$0xff] }
  0xc3   :  { %v373_v60 = vld [vmem:[%s2638_s1 + $0xad0] sm:$0xff]  ;;  %810 = vmatpush.msra.mxu1 %v309_v16  ;;  %868 = vmatpush.msrb.mxu2 %v62_v3  ;;  %v338_v47 = vld [vmem:[%s2638_s1 + $0x9b8] sm:$0xff] }
  0xc4   :  { %v305_v63 = vld [vmem:[%s2638_s1 + $0x8b0] sm:$0xff]  ;;  %830 = vmatpush.msra.mxu3 %v373_v60  ;;  %883 = vmatpush.msra.mxu0 %v146_v61  ;;  %v202_v48 = vld [vmem:[%s2638_s1 + $0x578] sm:$0xff] }
  0xc5   :  { %v369_v1 = vld [vmem:[%s2638_s1 + $0xab0] sm:$0xff]  ;;  %811 = vmatpush.msra.mxu1 %v305_v63  ;;  %869 = vmatpush.msrb.mxu2 %v58_v8  ;;  %v258_v49 = vld [vmem:[%s2638_s1 + $0x738] sm:$0xff] }
  0xc6   :  { %v301_v4 = vld [vmem:[%s2638_s1 + $0x890] sm:$0xff]  ;;  %831 = vmatpush.msra.mxu3 %v369_v1  ;;  %884 = vmatpush.msra.mxu0 %v142_v2  ;;  %v94_v50 = vld [vmem:[%s2638_s1 + $0x218] sm:$0xff] }
  0xc7   :  { %v365_v6 = vld [vmem:[%s2638_s1 + $0xa90] sm:$0xff]  ;;  %812 = vmatpush.msra.mxu1 %v301_v4  ;;  %870 = vmatpush.msrb.mxu2 %v54_v13  ;;  %v334_v51 = vld [vmem:[%s2638_s1 + $0x998] sm:$0xff] }
  0xc8   :  { %v297_v9 = vld [vmem:[%s2638_s1 + $0x870] sm:$0xff]  ;;  %832 = vmatpush.msra.mxu3 %v365_v6  ;;  %885 = vmatpush.msra.mxu0 %v138_v7  ;;  %v410_v52 = vld [vmem:[%s2638_s1 + $0xbf8] sm:$0xff] }
  0xc9   :  { %v361_v11 = vld [vmem:[%s2638_s1 + $0xa70] sm:$0xff]  ;;  %813 = vmatpush.msra.mxu1 %v297_v9  ;;  %871 = vmatpush.msrb.mxu2 %v50_v18  ;;  %v254_v29 = vld [vmem:[%s2638_s1 + $0x718] sm:$0xff] }
  0xca   :  { %v293_v14 = vld [vmem:[%s2638_s1 + $0x850] sm:$0xff]  ;;  %833 = vmatpush.msra.mxu3 %v361_v11  ;;  %886 = vmatpush.msra.mxu0 %v134_v12  ;;  %v198_v31 = vld [vmem:[%s2638_s1 + $0x558] sm:$0xff] }
  0xcb   :  { %v357_v15 = vld [vmem:[%s2638_s1 + $0xa50] sm:$0xff]  ;;  %814 = vmatpush.msra.mxu1 %v293_v14  ;;  %872 = vmatpush.msrb.mxu2 %v46_v22  ;;  %v330_v53 = vld [vmem:[%s2638_s1 + $0x978] sm:$0xff] }
  0xcc   :  { %v289_v19 = vld [vmem:[%s2638_s1 + $0x830] sm:$0xff]  ;;  %834 = vmatpush.msra.mxu3 %v357_v15  ;;  %887 = vmatpush.msra.mxu0 %v130_v17  ;;  %v406_v54 = vld [vmem:[%s2638_s1 + $0xbd8] sm:$0xff] }
  0xcd   :  { %v353_v20 = vld [vmem:[%s2638_s1 + $0xa30] sm:$0xff]  ;;  %815 = vmatpush.msra.mxu1 %v289_v19  ;;  %873 = vmatpush.msrb.mxu2 %v42_v26  ;;  %v250_v55 = vld [vmem:[%s2638_s1 + $0x6f8] sm:$0xff]  ;;  %v1155_v19 = vld [vmem:[%s2639_s0] sm:$0xff] }
  0xce   :  { %v285_v23 = vld [vmem:[%s2638_s1 + $0x810] sm:$0xff]  ;;  %835 = vmatpush.msra.mxu3 %v353_v20  ;;  %888 = vmatpush.msra.mxu0 %v126_v21  ;;  %v194_v56 = vld [vmem:[%s2638_s1 + $0x538] sm:$0xff] }
  0xcf   :  { %v349_v24 = vld [vmem:[%s2638_s1 + $0xa10] sm:$0xff]  ;;  %816 = vmatpush.msra.mxu1 %v285_v23  ;;  %874 = vmatpush.msrb.mxu2 %v38_v30  ;;  %v326_v57 = vld [vmem:[%s2638_s1 + $0x958] sm:$0xff] }
  0xd0   :  { %836 = vmatpush.msra.mxu3 %v349_v24  ;;  %889 = vmatpush.msra.mxu0 %v122_v25  ;;  %v402_v58 = vld [vmem:[%s2638_s1 + $0xbb8] sm:$0xff]  ;;  %v2403_v24 = vld [vmem:[%s2640_s2] sm:$0xf] }
  0xd1   :  { %817 = vmatmul.f32.vlgmr.msra.gmra.mxu1 %v1608_v5  ;;  %837 = vmatmul.f32.vlgmr.msra.gmra.mxu3 %v1628_v10  ;;  %v34_v5 = vld [vmem:[%s2638_s1 + $0x38] sm:$0xff] }
  0xd2   :  { %921 = vmatpush.msrb.mxu3 %v282_v27  ;;  %890 = vmatpush.msra.mxu0 %v118_v28  ;;  %v274_v10 = vld [vmem:[%s2638_s1 + $0x7b8] sm:$0xff] }
  0xd3   :  { %875 = vmatpush.msrb.mxu2 %v34_v5  ;;  %901 = vmatpush.msrb.mxu1 %v218_v34  ;;  %v246_v59 = vld [vmem:[%s2638_s1 + $0x6d8] sm:$0xff]  ;;  %v458_v34 = vpop.f32.mrf.mxu0 }
  0xd4   :  { %922 = vmatpush.msrb.mxu3 %v278_v32  ;;  %891 = vmatpush.msra.mxu0 %v114_v33  ;;  %v190_v16 = vld [vmem:[%s2638_s1 + $0x518] sm:$0xff]  ;;  %v1019_v32 = vld [vmem:[%s2641_s3 + $0x70] sm:$0xff]  ;;  %v429_v33 = vperm.slane %v2403_v24, 0 }
  0xd5   :  { %876 = vmatpush.msrb.mxu2 %v30_v37  ;;  %902 = vmatpush.msrb.mxu1 %v214_v38  ;;  %v322_v60 = vld [vmem:[%s2638_s1 + $0x938] sm:$0xff] }
  0xd6   :  { %923 = vmatpush.msrb.mxu3 %v274_v10  ;;  %892 = vmatpush.msra.mxu0 %v110_v35  ;;  %v398_v61 = vld [vmem:[%s2638_s1 + $0xb98] sm:$0xff]  ;;  %v1018_v35 = vld [vmem:[%s2641_s3 + $0x68] sm:$0xff] }
  0xd7   :  { %941 = vmatpush.msra.mxu2 %v346_v0  ;;  %903 = vmatpush.msrb.mxu1 %v210_v41  ;;  %v242_v62 = vld [vmem:[%s2638_s1 + $0x6b8] sm:$0xff]  ;;  %v459_v0 = vadd.f32 %v458_v34, %v429_v33  ;;  %v1017_v41 = vld [vmem:[%s2641_s3 + $0x60] sm:$0xff] }
  0xd8   :  { %924 = vmatpush.msrb.mxu3 %v270_v39  ;;  %893 = vmatpush.msra.mxu0 %v106_v40  ;;  %v186_v63 = vld [vmem:[%s2638_s1 + $0x4f8] sm:$0xff]  ;;  %v1025_v34 = vld [vmem:[%s2641_s3 + $0xa0] sm:$0xff] }
  0xd9   :  { %942 = vmatpush.msra.mxu2 %v342_v44  ;;  %904 = vmatpush.msrb.mxu1 %v206_v45  ;;  %v318_v1 = vld [vmem:[%s2638_s1 + $0x918] sm:$0xff]  ;;  %v1157_v45 = vld [vmem:[%s2639_s0 + $0x8] sm:$0xff] }
  0xda   :  { %925 = vmatpush.msrb.mxu3 %v266_v42  ;;  %894 = vmatpush.msra.mxu0 %v102_v43  ;;  %v394_v2 = vld [vmem:[%s2638_s1 + $0xb78] sm:$0xff]  ;;  %v478_v43 = vpop.f32.mrf.mxu1 }
  0xdb   :  { %943 = vmatpush.msra.mxu2 %v338_v47  ;;  %905 = vmatpush.msrb.mxu1 %v202_v48  ;;  %v238_v3 = vld [vmem:[%s2638_s1 + $0x698] sm:$0xff]  ;;  %v479_v48 = vadd.f32 %v478_v43, %v459_v0  ;;  %v1022_v0 = vld [vmem:[%s2641_s3 + $0x88] sm:$0xff]  ;;  %v1021_v43 = vld [vmem:[%s2641_s3 + $0x80] sm:$0xff] }
  0xdc   :  { %926 = vmatpush.msrb.mxu3 %v262_v36  ;;  %895 = vmatpush.msra.mxu0 %v98_v46  ;;  %v182_v4 = vld [vmem:[%s2638_s1 + $0x4d8] sm:$0xff] }
  0xdd   :  { %944 = vmatpush.msra.mxu2 %v334_v51  ;;  %906 = vmatpush.msrb.mxu1 %v198_v31  ;;  %v314_v6 = vld [vmem:[%s2638_s1 + $0x8f8] sm:$0xff]  ;;  %v498_v51 = vpop.f32.mrf.mxu2  ;;  %v1035_v31 = vld [vmem:[%s2641_s3 + $0xf0] sm:$0xff] }
  0xde   :  { %927 = vmatpush.msrb.mxu3 %v258_v49  ;;  %896 = vmatpush.msra.mxu0 %v94_v50  ;;  %v390_v7 = vld [vmem:[%s2638_s1 + $0xb58] sm:$0xff]  ;;  %v1158_v49 = vld [vmem:[%s2639_s0 + $0x20] sm:$0xff]  ;;  %v1015_v50 = vld [vmem:[%s2641_s3 + $0x50] sm:$0xff] }
  0xdf   :  { %945 = vmatpush.msra.mxu2 %v330_v53  ;;  %907 = vmatpush.msrb.mxu1 %v194_v56  ;;  %v234_v8 = vld [vmem:[%s2638_s1 + $0x678] sm:$0xff]  ;;  %v1014_v53 = vld [vmem:[%s2641_s3 + $0x48] sm:$0xff]  ;;  %v499_v56 = vadd.f32 %v498_v51, %v479_v48 }
  0xe0   :  { %961 = vmatpush.msrb.mxu0 %v410_v52  ;;  %928 = vmatpush.msrb.mxu3 %v254_v29  ;;  %v178_v9 = vld [vmem:[%s2638_s1 + $0x4b8] sm:$0xff]  ;;  %v1159_v52 = vld [vmem:[%s2639_s0 + $0x10] sm:$0xff]  ;;  %v1050_v51 = vld [vmem:[%s2641_s3 + $0x168] sm:$0xff] }
  0xe1   :  { %946 = vmatpush.msra.mxu2 %v326_v57  ;;  %908 = vmatpush.msrb.mxu1 %v190_v16  ;;  %v310_v11 = vld [vmem:[%s2638_s1 + $0x8d8] sm:$0xff]  ;;  %v1013_v57 = vld [vmem:[%s2641_s3 + $0x40] sm:$0xff] }
  0xe2   :  { %962 = vmatpush.msrb.mxu0 %v406_v54  ;;  %929 = vmatpush.msrb.mxu3 %v250_v55  ;;  %v386_v12 = vld [vmem:[%s2638_s1 + $0xb38] sm:$0xff]  ;;  %v1034_v55 = vld [vmem:[%s2641_s3 + $0xe8] sm:$0xff]  ;;  %v1033_v16 = vld [vmem:[%s2641_s3 + $0xe0] sm:$0xff] }
  0xe3   :  { %947 = vmatpush.msra.mxu2 %v322_v60  ;;  %909 = vmatpush.msrb.mxu1 %v186_v63  ;;  %v230_v13 = vld [vmem:[%s2638_s1 + $0x658] sm:$0xff] }
  0xe4   :  { %963 = vmatpush.msrb.mxu0 %v402_v58  ;;  %930 = vmatpush.msrb.mxu3 %v246_v59  ;;  %v306_v14 = vld [vmem:[%s2638_s1 + $0x8b8] sm:$0xff]  ;;  %v518_v58 = vpop.f32.mrf.mxu3 }
  0xe5   :  { %948 = vmatpush.msra.mxu2 %v318_v1  ;;  %910 = vmatpush.msrb.mxu1 %v182_v4  ;;  %v382_v15 = vld [vmem:[%s2638_s1 + $0xb18] sm:$0xff] }
  0xe6   :  { %964 = vmatpush.msrb.mxu0 %v398_v61  ;;  %931 = vmatpush.msrb.mxu3 %v242_v62  ;;  %v226_v17 = vld [vmem:[%s2638_s1 + $0x638] sm:$0xff]  ;;  %v538_v61 = vpop.f32.mrf.mxu0  ;;  %v1160_v62 = vld [vmem:[%s2639_s0 + $0x28] sm:$0xff] }
  0xe7   :  { %949 = vmatpush.msra.mxu2 %v314_v6  ;;  %911 = vmatpush.msrb.mxu1 %v178_v9  ;;  %v174_v18 = vld [vmem:[%s2638_s1 + $0x498] sm:$0xff]  ;;  %v1031_v6 = vld [vmem:[%s2641_s3 + $0xd0] sm:$0xff]  ;;  %v558_v9 = vpop.f32.mrf.mxu1 }
  0xe8   :  { %965 = vmatpush.msrb.mxu0 %v394_v2  ;;  %932 = vmatpush.msrb.mxu3 %v238_v3  ;;  %v302_v20 = vld [vmem:[%s2638_s1 + $0x898] sm:$0xff]  ;;  %v519_v2 = vadd.f32 %v518_v58, %v499_v56  ;;  %v1011_v3 = vld [vmem:[%s2641_s3 + $0x30] sm:$0xff]  ;;  %v1041_v58 = vld [vmem:[%s2641_s3 + $0x120] sm:$0xff] }
  0xe9   :  { %950 = vmatpush.msra.mxu2 %v310_v11  ;;  %v378_v21 = vld [vmem:[%s2638_s1 + $0xaf8] sm:$0xff]  ;;  %912 = vmatpush.msrb.mxu1 %v174_v18  ;;  %v1043_v56 = vld [vmem:[%s2641_s3 + $0x130] sm:$0xff] }
  0xea   :  { %966 = vmatpush.msrb.mxu0 %v390_v7  ;;  %933 = vmatpush.msrb.mxu3 %v234_v8  ;;  %v222_v22 = vld [vmem:[%s2638_s1 + $0x618] sm:$0xff]  ;;  %v539_v7 = vadd.f32 %v538_v61, %v519_v2  ;;  %v1010_v8 = vld [vmem:[%s2641_s3 + $0x28] sm:$0xff]  ;;  %v1037_v61 = vld [vmem:[%s2641_s3 + $0x100] sm:$0xff] }
  0xeb   :  { %877 = vmatmul.f32.vlgmr.msrb.gmra.mxu2 %v1155_v19  ;;  %v170_v23 = vld [vmem:[%s2638_s1 + $0x478] sm:$0xff]  ;;  %897 = vmatmul.f32.vlgmr.msra.gmra.mxu0 %v1157_v45  ;;  %v430_v19 = vperm.slane %v2403_v24, 1 }
  0xec   :  { %967 = vmatpush.msrb.mxu0 %v386_v12  ;;  %934 = vmatpush.msrb.mxu3 %v230_v13  ;;  %v298_v25 = vld [vmem:[%s2638_s1 + $0x878] sm:$0xff]  ;;  %v1030_v12 = vld [vmem:[%s2641_s3 + $0xc8] sm:$0xff]  ;;  %v578_v13 = vpop.f32.mrf.mxu2 }
  0xed   :  { %951 = vmatpush.msra.mxu2 %v306_v14  ;;  %v1020_v26 = vld [vmem:[%s2641_s3 + $0x78] sm:$0xff]  ;;  %913 = vmatpush.msrb.mxu1 %v170_v23  ;;  %v1009_v14 = vld [vmem:[%s2641_s3 + $0x20] sm:$0xff] }
  0xee   :  { %968 = vmatpush.msrb.mxu0 %v382_v15  ;;  %935 = vmatpush.msrb.mxu3 %v226_v17  ;;  %v374_v27 = vld [vmem:[%s2638_s1 + $0xad8] sm:$0xff]  ;;  %v1029_v15 = vld [vmem:[%s2641_s3 + $0xc0] sm:$0xff]  ;;  %v559_v17 = vadd.f32 %v558_v9, %v539_v7 }
  0xef   :  { %952 = vmatpush.msra.mxu2 %v302_v20  ;;  %v166_v28 = vld [vmem:[%s2638_s1 + $0x458] sm:$0xff]  ;;  %v1161_v20 = vld [vmem:[%s2639_s0 + $0x30] sm:$0xff] }
  0xf0   :  { %969 = vmatpush.msrb.mxu0 %v378_v21  ;;  %936 = vmatpush.msrb.mxu3 %v222_v22  ;;  %v294_v30 = vld [vmem:[%s2638_s1 + $0x858] sm:$0xff]  ;;  %v1007_v22 = vld [vmem:[%s2641_s3 + $0x10] sm:$0xff] }
  0xf1   :  { %953 = vmatpush.msra.mxu2 %v298_v25  ;;  %v370_v5 = vld [vmem:[%s2638_s1 + $0xab8] sm:$0xff]  ;;  %914 = vmatpush.msrb.mxu1 %v166_v28  ;;  %v1027_v25 = vld [vmem:[%s2641_s3 + $0xb0] sm:$0xff] }
  0xf2   :  { %1063 = vmatpush.msra.mxu3 %v1020_v26  ;;  %970 = vmatpush.msrb.mxu0 %v374_v27  ;;  %v290_v10 = vld [vmem:[%s2638_s1 + $0x838] sm:$0xff]  ;;  %v579_v26 = vadd.f32 %v578_v13, %v559_v17  ;;  %v1006_v27 = vld [vmem:[%s2641_s3 + $0x8] sm:$0xff] }
  0xf3   :  { %954 = vmatpush.msra.mxu2 %v294_v30  ;;  %v162_v37 = vld [vmem:[%s2638_s1 + $0x438] sm:$0xff]  ;;  %v1026_v30 = vld [vmem:[%s2641_s3 + $0xa8] sm:$0xff] }
  0xf4   :  { %1064 = vmatpush.msra.mxu3 %v1019_v32  ;;  %v366_v38 = vld [vmem:[%s2638_s1 + $0xa98] sm:$0xff]  ;;  %971 = vmatpush.msrb.mxu0 %v370_v5  ;;  %v1005_v32 = vld [vmem:[%s2641_s3] sm:$0xff] }
  0xf5   :  { %v1156_v39 = vld [vmem:[%s2639_s0 + $0x18] sm:$0xff]  ;;  %955 = vmatpush.msra.mxu2 %v290_v10  ;;  %915 = vmatpush.msrb.mxu1 %v162_v37  ;;  %v1001_v10 = vmax.f32 %v579_v26, 0.0 }
  0xf6   :  { %937 = vmatmul.f32.vlgmr.msrb.gmra.mxu3 %v1156_v39  ;;  %v286_v40 = vld [vmem:[%s2638_s1 + $0x818] sm:$0xff]  ;;  %972 = vmatpush.msrb.mxu0 %v366_v38  ;;  %v1023_v39 = vld [vmem:[%s2641_s3 + $0x90] sm:$0xff] }
  0xf7   :  { %1065 = vmatpush.msra.mxu3 %v1018_v35  ;;  %v158_v42 = vld [vmem:[%s2638_s1 + $0x418] sm:$0xff]  ;;  %956 = vmatpush.msra.mxu2 %v286_v40 }
  0xf8   :  { %v362_v44 = vld [vmem:[%s2638_s1 + $0xa78] sm:$0xff]  ;;  %916 = vmatpush.msrb.mxu1 %v158_v42  ;;  %957 = vmatmul.f32.vlgmr.msra.gmra.mxu2 %v1158_v49  ;;  %v1051_v49 = vld [vmem:[%s2641_s3 + $0x170] sm:$0xff] }
  0xf9   :  { %v1016_v36 = vld [vmem:[%s2641_s3 + $0x58] sm:$0xff]  ;;  %1066 = vmatpush.msra.mxu3 %v1017_v41  ;;  %973 = vmatpush.msrb.mxu0 %v362_v44 }
  0xfa   :  { %v358_v46 = vld [vmem:[%s2638_s1 + $0xa58] sm:$0xff]  ;;  %917 = vmatmul.f32.vlgmr.msrb.gmra.mxu1 %v1159_v52  ;;  %v1049_v52 = vld [vmem:[%s2641_s3 + $0x160] sm:$0xff] }
  0xfb   :  { %v1036_v47 = vld [vmem:[%s2641_s3 + $0xf8] sm:$0xff]  ;;  %1067 = vmatpush.msra.mxu3 %v1016_v36  ;;  %974 = vmatpush.msrb.mxu0 %v358_v46 }
  0xfc   :  { %v354_v29 = vld [vmem:[%s2638_s1 + $0xa38] sm:$0xff]  ;;  %1083 = vmatpush.msra.mxu1 %v1036_v47 }
  0xfd   :  { %1068 = vmatpush.msra.mxu3 %v1015_v50  ;;  %v350_v54 = vld [vmem:[%s2638_s1 + $0xa18] sm:$0xff]  ;;  %975 = vmatpush.msrb.mxu0 %v354_v29 }
  0xfe   :  { %1084 = vmatpush.msra.mxu1 %v1035_v31  ;;  %v426_v59 = vld [vmem:[%s2638_s1 + $0xc78] sm:$0xff]  ;;  %v1047_v31 = vld [vmem:[%s2641_s3 + $0x150] sm:$0xff] }
  0xff   :  { %1069 = vmatpush.msra.mxu3 %v1014_v53  ;;  %976 = vmatpush.msrb.mxu0 %v350_v54  ;;  %v1012_v60 = vld [vmem:[%s2641_s3 + $0x38] sm:$0xff]  ;;  %v1046_v53 = vld [vmem:[%s2641_s3 + $0x148] sm:$0xff]  ;;  %v1045_v54 = vld [vmem:[%s2641_s3 + $0x140] sm:$0xff] }
 0x100   :  { %1085 = vmatpush.msra.mxu1 %v1034_v55  ;;  %977 = vmatmul.f32.vlgmr.msrb.gmra.mxu0 %v1160_v62  ;;  %v422_v63 = vld [vmem:[%s2638_s1 + $0xc58] sm:$0xff]  ;;  %v431_v62 = vperm.slane %v2403_v24, 2 }
 0x101   :  { %1070 = vmatpush.msra.mxu3 %v1013_v57  ;;  %v1032_v1 = vld [vmem:[%s2641_s3 + $0xd8] sm:$0xff]  ;;  %993 = vmatpush.msra.mxu0 %v426_v59  ;;  %v1042_v57 = vld [vmem:[%s2641_s3 + $0x128] sm:$0xff] }
 0x102   :  { %1086 = vmatpush.msra.mxu1 %v1033_v16  ;;  %v418_v4 = vld [vmem:[%s2638_s1 + $0xc38] sm:$0xff]  ;;  %v1039_v16 = vld [vmem:[%s2641_s3 + $0x110] sm:$0xff] }
 0x103   :  { %1071 = vmatpush.msra.mxu3 %v1012_v60  ;;  %994 = vmatpush.msra.mxu0 %v422_v63  ;;  %v414_v11 = vld [vmem:[%s2638_s1 + $0xc18] sm:$0xff]  ;;  %v1038_v60 = vld [vmem:[%s2641_s3 + $0x108] sm:$0xff] }
 0x104   :  { %1087 = vmatpush.msra.mxu1 %v1032_v1  ;;  %v1008_v18 = vld [vmem:[%s2641_s3 + $0x18] sm:$0xff] }
 0x105   :  { %1072 = vmatpush.msra.mxu3 %v1011_v3  ;;  %995 = vmatpush.msra.mxu0 %v418_v4  ;;  %v1028_v21 = vld [vmem:[%s2641_s3 + $0xb8] sm:$0xff]  ;;  %v638_v37 = vpop.f32.mrf.mxu0 }
 0x106   :  { %1088 = vmatpush.msra.mxu1 %v1031_v6  ;;  %v598_v23 = vpop.f32.mrf.mxu3  ;;  %v1024_v35 = vld [vmem:[%s2641_s3 + $0x98] sm:$0xff] }
 0x107   :  { %1073 = vmatpush.msra.mxu3 %v1010_v8  ;;  %996 = vmatpush.msra.mxu0 %v414_v11  ;;  %v599_v28 = vadd.f32 %v598_v23, %v430_v19  ;;  %v1052_v46 = vld [vmem:[%s2641_s3 + $0x178] sm:$0xff]  ;;  %v1053_v19 = vld [vmem:[%s2641_s3 + $0x180] sm:$0xff] }
 0x108   :  { %1089 = vmatpush.msra.mxu1 %v1030_v12  ;;  %1152 = vmatmul.msk.f32.vlgmr.msra.gmra.mxu0 %vm437_vm0, %v1161_v20  ;;  %v1048_v29 = vld [vmem:[%s2641_s3 + $0x158] sm:$0xff]  ;;  %v432_v20 = vperm.slane %v2403_v24, 3  ;;  %v1154_v24 = vld [vmem:[%s2642_s4] ss:$0 sm:$0xff] }
 0x109   :  { %1074 = vmatpush.msra.mxu3 %v1009_v14  ;;  %v618_v33 = vpop.f32.mrf.mxu2  ;;  %1103 = vmatpush.msrb.mxu2 %v1052_v46  ;;  %v1044_v55 = vld [vmem:[%s2641_s3 + $0x138] sm:$0xff] }
 0x10a   :  { %1090 = vmatpush.msra.mxu1 %v1029_v15  ;;  %v619_v5 = vadd.f32 %v618_v33, %v599_v28  ;;  %v1040_v59 = vld [vmem:[%s2641_s3 + $0x118] sm:$0xff] }
 0x10b   :  { %1075 = vmatpush.msra.mxu3 %v1008_v18  ;;  %1104 = vmatpush.msrb.mxu2 %v1051_v49  ;;  %v1054_v18 = vld [vmem:[%s2641_s3 + $0x188] sm:$0xff] }
 0x10c   :  { %1091 = vmatpush.msra.mxu1 %v1028_v21  ;;  %v639_v38 = vadd.f32 %v638_v37, %v619_v5  ;;  %1137 = vmatpush.msrb.mxu0 %v1054_v18 }
 0x10d   :  { %1076 = vmatpush.msra.mxu3 %v1007_v22  ;;  %1105 = vmatpush.msrb.mxu2 %v1050_v51 }
 0x10e   :  { %1092 = vmatpush.msra.mxu1 %v1027_v25  ;;  %1138 = vmatpush.msrb.mxu0 %v1053_v19 }
 0x10f   :  { %1077 = vmatpush.msra.mxu3 %v1006_v27  ;;  %1106 = vmatpush.msrb.mxu2 %v1049_v52 }
 0x110   :  { %1093 = vmatpush.msra.mxu1 %v1026_v30  ;;  %v658_v40 = vpop.f32.mrf.mxu1 }
 0x111   :  { %1078 = vmatpush.msra.mxu3 %v1005_v32  ;;  %v659_v41 = vadd.f32 %v658_v40, %v639_v38  ;;  %1107 = vmatpush.msrb.mxu2 %v1048_v29 }
 0x112   :  { %1079 = vmatmul.f32.vlgmr.msra.gmra.mxu3 %v1001_v10  ;;  %1094 = vmatpush.msra.mxu1 %v1025_v34  ;;  %v678_v42 = vpop.f32.mrf.mxu3 }
 0x113   :  { %v679_v44 = vadd.f32 %v678_v42, %v659_v41  ;;  %1108 = vmatpush.msrb.mxu2 %v1047_v31 }
 0x114   :  { %1095 = vmatpush.msra.mxu1 %v1024_v35  ;;  %v698_v45 = vpop.f32.mrf.mxu2 }
 0x115   :  { %v699_v36 = vadd.f32 %v698_v45, %v679_v44  ;;  %1109 = vmatpush.msrb.mxu2 %v1046_v53 }
 0x116   :  { %1096 = vmatpush.msra.mxu1 %v1023_v39 }
 0x117   :  { %v718_v47 = vpop.f32.mrf.mxu0  ;;  %1110 = vmatpush.msrb.mxu2 %v1045_v54 }
 0x118   :  { %1097 = vmatpush.msra.mxu1 %v1022_v0  ;;  %v719_v48 = vadd.f32 %v718_v47, %v699_v36 }
 0x119   :  { %1111 = vmatpush.msrb.mxu2 %v1044_v55 }
 0x11a   :  { %1098 = vmatpush.msra.mxu1 %v1021_v43  ;;  %v1002_v50 = vmax.f32 %v719_v48, 0.0 }
 0x11b   :  { %1112 = vmatpush.msrb.mxu2 %v1043_v56 }
 0x11c   :  { %1099 = vmatmul.f32.vlgmr.msra.gmra.mxu1 %v1002_v50 }
 0x11d   :  { %1113 = vmatpush.msrb.mxu2 %v1042_v57 }
 0x11f   :  { %1114 = vmatpush.msrb.mxu2 %v1041_v58 }
 0x121   :  { %1115 = vmatpush.msrb.mxu2 %v1040_v59 }
 0x123   :  { %1116 = vmatpush.msrb.mxu2 %v1039_v16 }
 0x125   :  { %1117 = vmatpush.msrb.mxu2 %v1038_v60 }
 0x127   :  { %1118 = vmatpush.msrb.mxu2 %v1037_v61 }
 0x12d   :  { %v738_v63 = vpop.f32.mrf.mxu1 }
 0x12e   :  { %v739_v1 = vadd.f32 %v738_v63, %v431_v62 }
 0x12f   :  { %v778_v4 = vpop.f32.mrf.mxu0 }
 0x134   :  { %v758_v2 = vpop.f32.mrf.mxu3 }
 0x135   :  { %v759_v3 = vadd.f32 %v758_v2, %v739_v1 }
 0x136   :  { %v798_v7 = vpop.f32.mrf.mxu2 }
 0x137   :  { %v779_v6 = vadd.f32 %v778_v4, %v759_v3 }
 0x139   :  { %v799_v9 = vadd.f32 %v798_v7, %v779_v6 }
 0x13c   :  { %v858_v13 = vpop.f32.mrf.mxu0 }
 0x14e   :  { %v818_v8 = vpop.f32.mrf.mxu1 }
 0x14f   :  { %v819_v11 = vadd.f32 %v818_v8, %v799_v9 }
 0x154   :  { %v838_v12 = vpop.f32.mrf.mxu3 }
 0x155   :  { %v839_v14 = vadd.f32 %v838_v12, %v819_v11 }
 0x157   :  { %v859_v15 = vadd.f32 %v858_v13, %v839_v14 }
 0x159   :  { %v1003_v17 = vmax.f32 %v859_v15, 0.0 }
 0x15b   :  { %1119 = vmatmul.f32.vlgmr.msrb.gmra.mxu2 %v1003_v17 }
 0x168   :  { %v898_v23 = vpop.f32.mrf.mxu0 }
 0x16e   :  { %v878_v21 = vpop.f32.mrf.mxu2 }
 0x16f   :  { %v879_v22 = vadd.f32 %v878_v21, %v432_v20 }
 0x171   :  { %v899_v25 = vadd.f32 %v898_v23, %v879_v22 }
 0x177   :  { %v918_v26 = vpop.f32.mrf.mxu1 }
 0x178   :  { %v919_v27 = vadd.f32 %v918_v26, %v899_v25 }
 0x179   :  { %v938_v28 = vpop.f32.mrf.mxu3 }
 0x17a   :  { %v939_v30 = vadd.f32 %v938_v28, %v919_v27 }
 0x17b   :  { %v958_v32 = vpop.f32.mrf.mxu2 }
 0x17c   :  { %v959_v5 = vadd.f32 %v958_v32, %v939_v30 }
 0x17d   :  { %v978_v33 = vpop.f32.mrf.mxu0 }
 0x17e   :  { %v979_v34 = vadd.f32 %v978_v33, %v959_v5 }
 0x185   :  { %v998_v10 = vpop.f32.mrf.mxu0 }
 0x186   :  { %v999_v35 = vadd.f32 %v998_v10, %v979_v34 }
 0x188   :  { %v1004_v37 = vmax.f32 %v999_v35, 0.0 }
 0x18a   :  { %1153 = vmatmul.msk.f32.vlgmr.msrb.gmra.mxu0 %vm1059_vm1, %v1004_v37 }
 0x195   :  { %v1080_v38 = vpop.f32.mrf.mxu3 }
 0x196   :  { %v1081_v40 = vadd.f32 %v1154_v24, %v1080_v38 }
 0x199   :  { %v1100_v39 = vpop.f32.mrf.mxu1 }
 0x19a   :  { %v1101_v41 = vadd.f32 %v1100_v39, %v1081_v40 }
 0x1de   :  { %v1120_v0 = vpop.f32.mrf.mxu2 }
 0x1df   :  { %v1121_v42 = vadd.f32 %v1120_v0, %v1101_v41 }
 0x207   :  { %v1140_v43 = vpop.f32.mrf.mxu0 }
 0x208   :  { %v1141_v44 = vadd.f32 %v1140_v43, %v1121_v42 }
 0x20a   :  { %1144 = vst.msk [vmem:[%s2643_s5] sm:$0xff] %vm1143_vm2, %v1141_v44 }

</bundles_post_ra>
